<compile_context>
chip_gen: v7x
topology: tpu7x:2x2x1
jax: 0.10.0
libtpu: 0.0.40
codegen_flags: <defaults>
</compile_context>

<pallas_src>
import jax
import jax.numpy as jnp
import numpy as np
from jax import lax
from jax.experimental import pallas as pl
from jax.experimental.pallas import tpu as pltpu

# Head sizes (name_num, pose_num, mood_num, glasses_num)
NAME_NUM, POSE_NUM, MOOD_NUM, GLASSES_NUM = 10, 4, 5, 2
B = 2
# Input spatial size implied by fc1 = Linear(512, 128):
# 30 -conv7-> 24 -pool2-> 12 -conv5-> 8 -pool2-> 4 ;  32 * 4 * 4 = 512
H_IN = W_IN = 30
IMG = H_IN * W_IN          # 900 flat positions per image
GATHER_W = 448             # per-image pool2/gather window on the conv2 output
OUT_W = 128                # lane-dense fused head output width


def _round128(v):
    return ((v + 127) // 128) * 128


def _widths(bsz):
    """Widths (multiples of 128) of the flat (b*900 + h*30 + w) intermediates."""
    w_y2 = _round128((bsz - 1) * IMG + GATHER_W)        # conv2 output
    w_m1 = _round128(4 * 60 + 4 * 2 + w_y2)             # pooled conv1 (conv2 tap reach)
    w_y1 = _round128(31 + w_m1)                         # conv1 output (pool1 shift reach)
    w_x = _round128(6 * 30 + 6 + w_y1)                  # shifted input (conv1 ki reach)
    # Static safety net (review): slack must cover every tap / pool offset so
    # no valid position can ever read a contaminated slack lane.
    assert GATHER_W >= 3 * 120 + 3 * 4 + 62 + 1
    assert w_y2 >= (bsz - 1) * IMG + GATHER_W
    assert w_m1 >= 4 * 60 + 4 * 2 + w_y2
    assert w_y1 >= 31 + w_m1
    assert w_x >= 6 * 30 + 6 + w_y1
    assert all(v % 128 == 0 for v in (w_y2, w_m1, w_y1, w_x))
    return w_y2, w_m1, w_y1, w_x


def _log_softmax(v):
    m = jnp.max(v, axis=-1, keepdims=True)
    s = v - m
    return s - jnp.log(jnp.sum(jnp.exp(s), axis=-1, keepdims=True))


def face_recg_kernel(xf8_ref, w1_ref, b1_ref, w2_ref, b2_ref,
                     csel_ref, spread_ref, fmask_ref,
                     fw1t_ref, fb1_ref, wa_ref, ba_ref, wb_ref, bb_ref,
                     out_ref, p2_scr, y2_scr, h2_scr):
    bsz = out_ref.shape[0]
    w_y2, w_m1, w_y1, _ = _widths(bsz)

    # ---- conv1 (1 -> 8, k=7, valid): 7 per-ki MXU dots; the kj shifts live on
    #      the sublanes of xf8 (built in the wrapper); accumulate in f32 ----
    y1 = jnp.dot(w1_ref[:, 0:8], xf8_ref[:, 0:w_y1],
                 preferred_element_type=jnp.float32)
    for ki in range(1, 7):
        y1 = y1 + jnp.dot(w1_ref[:, ki * 8:(ki + 1) * 8],
                          xf8_ref[:, ki * 30:ki * 30 + w_y1],
                          preferred_element_type=jnp.float32)
    y1 = y1 + b1_ref[...]                                # (8, w_y1) f32

    # ---- maxpool 2x2 + relu on the flat layout (shifts 0, 1, 30, 31) ----
    m1 = jnp.maximum(jnp.maximum(y1[:, 0:w_m1], y1[:, 1:1 + w_m1]),
                     jnp.maximum(y1[:, 30:30 + w_m1], y1[:, 31:31 + w_m1]))
    m1 = jnp.maximum(m1, 0.0)                            # (8, w_m1) f32

    # ---- conv2 (8 -> 32, k=5, valid): bf16 im2col with paired-tap (16, w_y2)
    #      full-tile 16-aligned stores, then one K=208 MXU dot ----
    # TODO(synk): nn.Dropout2d treated as identity (eval/inference semantics).
    def tap_off(t):
        return (t // 5) * 60 + (t % 5) * 2               # pooled grid has lane stride 2
    offs = [tap_off(t) for t in range(25)] + [tap_off(24)]   # pad to 26 taps (zero wts)
    for t in range(0, 26, 2):
        blk = jnp.concatenate([m1[:, offs[t]:offs[t] + w_y2],
                               m1[:, offs[t + 1]:offs[t + 1] + w_y2]], axis=0)
        p2_scr[t * 8:(t + 2) * 8, :] = blk.astype(jnp.bfloat16)
    y2_scr[...] = jnp.dot(w2_ref[...], p2_scr[...],
                          preferred_element_type=jnp.float32) + b2_ref[...]

    # ---- per image: maxpool 2x2 + relu on a 448-lane window, gather the valid
    #      4x4 grid and flatten to NCHW order with the (idle) MXU ----
    for b in range(bsz):
        y2b = y2_scr[:, b * IMG:b * IMG + GATHER_W]
        m2b = jnp.maximum(jnp.maximum(y2b[:, 0:384], y2b[:, 2:386]),
                          jnp.maximum(y2b[:, 60:444], y2b[:, 62:446]))
        m2b = jnp.maximum(m2b, 0.0)                      # (32, 384)
        comp = jnp.dot(m2b, csel_ref[...],
                       preferred_element_type=jnp.float32)               # (32, 16)
        wide = jnp.dot(comp, spread_ref[...],
                       preferred_element_type=jnp.float32)               # (32, 512)
        h2_scr[b:b + 1, :] = jnp.sum(wide * fmask_ref[...], axis=0, keepdims=True)

    # ---- fc1 + fused heads (f32), log-softmax, ONE lane-dense output ----
    h2 = h2_scr[...]                                     # (bsz, 512), NCHW order
    x1 = jnp.maximum(
        jnp.dot(h2, fw1t_ref[...], preferred_element_type=jnp.float32) + fb1_ref[...],
        0.0)
    ha = jnp.maximum(
        jnp.dot(x1, wa_ref[...], preferred_element_type=jnp.float32) + ba_ref[...],
        0.0)                                             # [name | pose | x2 | pad]
    x2 = ha[:, NAME_NUM + POSE_NUM:NAME_NUM + POSE_NUM + 64]
    hb = jnp.maximum(
        jnp.dot(x2, wb_ref[...], preferred_element_type=jnp.float32) + bb_ref[...],
        0.0)                                             # [mood | glasses | pad]

    name = _log_softmax(ha[:, 0:NAME_NUM])
    pose = _log_softmax(ha[:, NAME_NUM:NAME_NUM + POSE_NUM])
    mood = _log_softmax(hb[:, 0:MOOD_NUM])
    glasses = _log_softmax(hb[:, MOOD_NUM:MOOD_NUM + GLASSES_NUM])
    pad = jnp.zeros((bsz, OUT_W - (NAME_NUM + POSE_NUM + MOOD_NUM + GLASSES_NUM)),
                    jnp.float32)
    out_ref[...] = jnp.concatenate([name, pose, mood, glasses, pad], axis=1)


def init_params(key):
    """Deterministic synthetic parameters in PyTorch conventions."""
    ks = jax.random.split(key, 16)

    def unif(k, shape, fan_in):
        bound = 1.0 / np.sqrt(fan_in)
        return jax.random.uniform(k, shape, jnp.float32, -bound, bound)

    return dict(
        cw1=unif(ks[0], (8, 1, 7, 7), 1 * 7 * 7),   cb1=unif(ks[1], (8,), 1 * 7 * 7),
        cw2=unif(ks[2], (32, 8, 5, 5), 8 * 5 * 5),  cb2=unif(ks[3], (32,), 8 * 5 * 5),
        fw1=unif(ks[4], (128, 512), 512),           fb1=unif(ks[5], (128,), 512),
        fw2=unif(ks[6], (NAME_NUM, 128), 128),      fb2=unif(ks[7], (NAME_NUM,), 128),
        fw3=unif(ks[8], (POSE_NUM, 128), 128),      fb3=unif(ks[9], (POSE_NUM,), 128),
        fw4=unif(ks[10], (64, 128), 128),           fb4=unif(ks[11], (64,), 128),
        fw5=unif(ks[12], (MOOD_NUM, 64), 64),       fb5=unif(ks[13], (MOOD_NUM,), 64),
        fw6=unif(ks[14], (GLASSES_NUM, 64), 64),    fb6=unif(ks[15], (GLASSES_NUM,), 64),
    )


def face_recg_forward(x, p):
    """x: NCHW (B, 1, 30, 30) float32 -> (name, pose, mood, glasses) log-probs."""
    bsz = x.shape[0]
    w_y2, w_m1, w_y1, w_x = _widths(bsz)

    # Input as 8 lane-shifted copies of the flat row (b*900 + h*30 + w): the
    # kj = 0..6 shifts of the 7x7 conv1 kernel live on the sublane axis
    # (sublane 7 is a zero-weight pad).  Pure layout plumbing in glue.
    xflat = x.astype(jnp.float32).reshape(bsz * IMG)
    xflat = jnp.pad(xflat, (0, w_x + 8 - bsz * IMG))
    xf8 = jnp.stack([xflat[s:s + w_x] for s in range(8)], axis=0).astype(jnp.bfloat16)

    # Conv weights as matmul matrices (bf16 MXU operands; f32 biases / accum).
    w1m = jnp.pad(p['cw1'].reshape(8, 7, 7), ((0, 0), (0, 0), (0, 1)))
    w1m = w1m.reshape(8, 56).astype(jnp.bfloat16)                   # (cout, ki*8 + kj)
    b1 = p['cb1'].reshape(8, 1)
    w2m = jnp.transpose(p['cw2'], (0, 2, 3, 1)).reshape(32, 200)    # (cout, (ki*5+kj)*8+cin)
    w2m = jnp.pad(w2m, ((0, 0), (0, 8))).astype(jnp.bfloat16)       # pad K 200 -> 208
    b2 = p['cb2'].reshape(32, 1)

    # Gather / flatten constants (hoisted out of the kernel).
    csel = np.zeros((384, 16), np.float32)       # pooled lane (h*120+w*4) -> col h*4+w
    for hh in range(4):
        for ww in range(4):
            csel[hh * 120 + ww * 4, hh * 4 + ww] = 1.0
    spread = np.zeros((16, 512), np.float32)     # spread[j, l] = 1 iff l % 16 == j
    for j in range(16):
        spread[j, j::16] = 1.0
    fmask = np.zeros((32, 512), np.float32)      # fmask[c, l] = 1 iff l // 16 == c
    for c in range(32):
        fmask[c, c * 16:(c + 1) * 16] = 1.0
    csel, spread, fmask = jnp.asarray(csel), jnp.asarray(spread), jnp.asarray(fmask)

    # fc1 plus the two fused head layers, padded to 128 lanes (f32).
    fw1t = p['fw1'].T                                                   # (512, 128)
    fb1 = p['fb1'].reshape(1, 128)
    wa = jnp.concatenate([p['fw2'].T, p['fw3'].T, p['fw4'].T], axis=1)  # (128, 78)
    wa = jnp.pad(wa, ((0, 0), (0, 128 - 78)))
    ba = jnp.pad(jnp.concatenate([p['fb2'], p['fb3'], p['fb4']]),
                 (0, 128 - 78)).reshape(1, 128)
    wb = jnp.concatenate([p['fw5'].T, p['fw6'].T], axis=1)              # (64, 7)
    wb = jnp.pad(wb, ((0, 0), (0, 128 - 7)))
    bb = jnp.pad(jnp.concatenate([p['fb5'], p['fb6']]), (0, 128 - 7)).reshape(1, 128)

    inputs = (xf8, w1m, b1, w2m, b2, csel, spread, fmask,
              fw1t, fb1, wa, ba, wb, bb)

    out = pl.pallas_call(
        face_recg_kernel,
        out_shape=jax.ShapeDtypeStruct((bsz, OUT_W), jnp.float32),
        in_specs=[pl.BlockSpec(memory_space=pltpu.MemorySpace.VMEM) for _ in inputs],
        out_specs=pl.BlockSpec(memory_space=pltpu.MemorySpace.VMEM),
        scratch_shapes=[
            pltpu.VMEM((208, w_y2), jnp.bfloat16),   # conv2 im2col patch matrix
            pltpu.VMEM((32, w_y2), jnp.float32),     # conv2 output
            pltpu.VMEM((bsz, 512), jnp.float32),     # flattened features for fc1
        ],
        # TODO(synk): on v7x (2 TCs/chip) add grid=(bsz,) with per-image
        # BlockSpecs + dimension_semantics=("parallel",) to split the batch
        # across cores; the single-call structure is best on v5e/v6e (1 TC).
    )(*inputs)

    name = out[:, 0:NAME_NUM]
    pose = out[:, NAME_NUM:NAME_NUM + POSE_NUM]
    mood = out[:, NAME_NUM + POSE_NUM:NAME_NUM + POSE_NUM + MOOD_NUM]
    glasses = out[:, NAME_NUM + POSE_NUM + MOOD_NUM:
                  NAME_NUM + POSE_NUM + MOOD_NUM + GLASSES_NUM]
    return name, pose, mood, glasses


def reference_forward(x, p):
    """Pure-JAX replica of the PyTorch forward (eval mode), for validation."""
    prec = lax.Precision.HIGHEST
    y = lax.conv_general_dilated(x, p['cw1'], (1, 1), 'VALID',
                                 dimension_numbers=('NCHW', 'OIHW', 'NCHW'),
                                 precision=prec)
    y = y + p['cb1'][None, :, None, None]
    y = lax.reduce_window(y, -jnp.inf, lax.max, (1, 1, 2, 2), (1, 1, 2, 2), 'VALID')
    y = jnp.maximum(y, 0.0)
    y = lax.conv_general_dilated(y, p['cw2'], (1, 1), 'VALID',
                                 dimension_numbers=('NCHW', 'OIHW', 'NCHW'),
                                 precision=prec)
    y = y + p['cb2'][None, :, None, None]
    y = lax.reduce_window(y, -jnp.inf, lax.max, (1, 1, 2, 2), (1, 1, 2, 2), 'VALID')
    y = jnp.maximum(y, 0.0)
    y = y.reshape(x.shape[0], -1)                                       # (B, 512)

    def lin(v, w, b):
        return jnp.dot(v, w.T, precision=prec) + b

    x1 = jnp.maximum(lin(y, p['fw1'], p['fb1']), 0.0)
    name = jnp.maximum(lin(x1, p['fw2'], p['fb2']), 0.0)
    pose = jnp.maximum(lin(x1, p['fw3'], p['fb3']), 0.0)
    x2 = jnp.maximum(lin(x1, p['fw4'], p['fb4']), 0.0)
    mood = jnp.maximum(lin(x2, p['fw5'], p['fb5']), 0.0)
    glasses = jnp.maximum(lin(x2, p['fw6'], p['fb6']), 0.0)
    ls = lambda v: jax.nn.log_softmax(v, axis=1)
    return ls(name), ls(pose), ls(mood), ls(glasses)


if __name__ == "__main__":
    key = jax.random.PRNGKey(0)
    kx, kp = jax.random.split(key)
    x = jax.random.normal(kx, (B, 1, H_IN, W_IN), jnp.float32)
    params = init_params(kp)

    outs = jax.jit(face_recg_forward)(x, params)
    outs = jax.block_until_ready(outs)

    refs = reference_forward(x, params)
    for o, r in zip(outs, refs):
        np.testing.assert_allclose(np.asarray(o), np.asarray(r), rtol=1e-2, atol=1e-2)

    print("KERNEL_OK")
</pallas_src>

<mosaic_0001>
module attributes {stable_mosaic.version = 11 : i64} {
  func.func @face_recg_kernel(%arg0: memref<8x2048xbf16, #tpu.memory_space<vmem>>, %arg1: memref<8x56xbf16, #tpu.memory_space<vmem>>, %arg2: memref<8x1xf32, #tpu.memory_space<vmem>>, %arg3: memref<32x208xbf16, #tpu.memory_space<vmem>>, %arg4: memref<32x1xf32, #tpu.memory_space<vmem>>, %arg5: memref<384x16xf32, #tpu.memory_space<vmem>>, %arg6: memref<16x512xf32, #tpu.memory_space<vmem>>, %arg7: memref<32x512xf32, #tpu.memory_space<vmem>>, %arg8: memref<512x128xf32, #tpu.memory_space<vmem>>, %arg9: memref<1x128xf32, #tpu.memory_space<vmem>>, %arg10: memref<128x128xf32, #tpu.memory_space<vmem>>, %arg11: memref<1x128xf32, #tpu.memory_space<vmem>>, %arg12: memref<64x128xf32, #tpu.memory_space<vmem>>, %arg13: memref<1x128xf32, #tpu.memory_space<vmem>>, %arg14: memref<2x128xf32, #tpu.memory_space<vmem>>, %arg15: memref<208x1408xbf16, #tpu.memory_space<vmem>>, %arg16: memref<32x1408xf32, #tpu.memory_space<vmem>>, %arg17: memref<2x512xf32, #tpu.memory_space<vmem>>) attributes {dimension_semantics = [], scalar_prefetch = 0 : i64, scratch_operands = 3 : i64, tpu.core_type = #tpu.core_type<tc>} {
    %c0 = arith.constant 0 : index
    %c0_0 = arith.constant 0 : index
    %0 = vector.load %arg1[%c0, %c0_0] : memref<8x56xbf16, #tpu.memory_space<vmem>>, vector<8x8xbf16>
    %c0_1 = arith.constant 0 : index
    %c0_2 = arith.constant 0 : index
    %1 = vector.load %arg0[%c0_1, %c0_2] : memref<8x2048xbf16, #tpu.memory_space<vmem>>, vector<8x1792xbf16>
    %cst = arith.constant dense<0.000000e+00> : vector<8x1792xf32>
    %2 = tpu.matmul %0, %1, %cst {dimension_numbers = #tpu.dot_dimension_numbers<[1], [0], [0], [1], [0, 0, 1, 1], [], []>} : vector<8x8xbf16>, vector<8x1792xbf16>, vector<8x1792xf32> -> vector<8x1792xf32>
    %c0_3 = arith.constant 0 : index
    %c8 = arith.constant 8 : index
    %3 = vector.load %arg1[%c0_3, %c8] : memref<8x56xbf16, #tpu.memory_space<vmem>>, vector<8x8xbf16>
    %c0_4 = arith.constant 0 : index
    %c30 = arith.constant 30 : index
    %4 = vector.load %arg0[%c0_4, %c30] : memref<8x2048xbf16, #tpu.memory_space<vmem>>, vector<8x1792xbf16>
    %cst_5 = arith.constant dense<0.000000e+00> : vector<8x1792xf32>
    %5 = tpu.matmul %3, %4, %cst_5 {dimension_numbers = #tpu.dot_dimension_numbers<[1], [0], [0], [1], [0, 0, 1, 1], [], []>} : vector<8x8xbf16>, vector<8x1792xbf16>, vector<8x1792xf32> -> vector<8x1792xf32>
    %6 = arith.addf %2, %5 : vector<8x1792xf32>
    %c0_6 = arith.constant 0 : index
    %c16 = arith.constant 16 : index
    %7 = vector.load %arg1[%c0_6, %c16] : memref<8x56xbf16, #tpu.memory_space<vmem>>, vector<8x8xbf16>
    %c0_7 = arith.constant 0 : index
    %c60 = arith.constant 60 : index
    %8 = vector.load %arg0[%c0_7, %c60] : memref<8x2048xbf16, #tpu.memory_space<vmem>>, vector<8x1792xbf16>
    %cst_8 = arith.constant dense<0.000000e+00> : vector<8x1792xf32>
    %9 = tpu.matmul %7, %8, %cst_8 {dimension_numbers = #tpu.dot_dimension_numbers<[1], [0], [0], [1], [0, 0, 1, 1], [], []>} : vector<8x8xbf16>, vector<8x1792xbf16>, vector<8x1792xf32> -> vector<8x1792xf32>
    %10 = arith.addf %6, %9 : vector<8x1792xf32>
    %c0_9 = arith.constant 0 : index
    %c24 = arith.constant 24 : index
    %11 = vector.load %arg1[%c0_9, %c24] : memref<8x56xbf16, #tpu.memory_space<vmem>>, vector<8x8xbf16>
    %c0_10 = arith.constant 0 : index
    %c90 = arith.constant 90 : index
    %12 = vector.load %arg0[%c0_10, %c90] : memref<8x2048xbf16, #tpu.memory_space<vmem>>, vector<8x1792xbf16>
    %cst_11 = arith.constant dense<0.000000e+00> : vector<8x1792xf32>
    %13 = tpu.matmul %11, %12, %cst_11 {dimension_numbers = #tpu.dot_dimension_numbers<[1], [0], [0], [1], [0, 0, 1, 1], [], []>} : vector<8x8xbf16>, vector<8x1792xbf16>, vector<8x1792xf32> -> vector<8x1792xf32>
    %14 = arith.addf %10, %13 : vector<8x1792xf32>
    %c0_12 = arith.constant 0 : index
    %c32 = arith.constant 32 : index
    %15 = vector.load %arg1[%c0_12, %c32] : memref<8x56xbf16, #tpu.memory_space<vmem>>, vector<8x8xbf16>
    %c0_13 = arith.constant 0 : index
    %c120 = arith.constant 120 : index
    %16 = vector.load %arg0[%c0_13, %c120] : memref<8x2048xbf16, #tpu.memory_space<vmem>>, vector<8x1792xbf16>
    %cst_14 = arith.constant dense<0.000000e+00> : vector<8x1792xf32>
    %17 = tpu.matmul %15, %16, %cst_14 {dimension_numbers = #tpu.dot_dimension_numbers<[1], [0], [0], [1], [0, 0, 1, 1], [], []>} : vector<8x8xbf16>, vector<8x1792xbf16>, vector<8x1792xf32> -> vector<8x1792xf32>
    %18 = arith.addf %14, %17 : vector<8x1792xf32>
    %c0_15 = arith.constant 0 : index
    %c40 = arith.constant 40 : index
    %19 = vector.load %arg1[%c0_15, %c40] : memref<8x56xbf16, #tpu.memory_space<vmem>>, vector<8x8xbf16>
    %c0_16 = arith.constant 0 : index
    %c150 = arith.constant 150 : index
    %20 = vector.load %arg0[%c0_16, %c150] : memref<8x2048xbf16, #tpu.memory_space<vmem>>, vector<8x1792xbf16>
    %cst_17 = arith.constant dense<0.000000e+00> : vector<8x1792xf32>
    %21 = tpu.matmul %19, %20, %cst_17 {dimension_numbers = #tpu.dot_dimension_numbers<[1], [0], [0], [1], [0, 0, 1, 1], [], []>} : vector<8x8xbf16>, vector<8x1792xbf16>, vector<8x1792xf32> -> vector<8x1792xf32>
    %22 = arith.addf %18, %21 : vector<8x1792xf32>
    %c0_18 = arith.constant 0 : index
    %c48 = arith.constant 48 : index
    %23 = vector.load %arg1[%c0_18, %c48] : memref<8x56xbf16, #tpu.memory_space<vmem>>, vector<8x8xbf16>
    %c0_19 = arith.constant 0 : index
    %c180 = arith.constant 180 : index
    %24 = vector.load %arg0[%c0_19, %c180] : memref<8x2048xbf16, #tpu.memory_space<vmem>>, vector<8x1792xbf16>
    %cst_20 = arith.constant dense<0.000000e+00> : vector<8x1792xf32>
    %25 = tpu.matmul %23, %24, %cst_20 {dimension_numbers = #tpu.dot_dimension_numbers<[1], [0], [0], [1], [0, 0, 1, 1], [], []>} : vector<8x8xbf16>, vector<8x1792xbf16>, vector<8x1792xf32> -> vector<8x1792xf32>
    %26 = arith.addf %22, %25 : vector<8x1792xf32>
    %c0_21 = arith.constant 0 : index
    %c0_22 = arith.constant 0 : index
    %27 = vector.load %arg2[%c0_21, %c0_22] : memref<8x1xf32, #tpu.memory_space<vmem>>, vector<8x1xf32>
    %28 = vector.broadcast %27 : vector<8x1xf32> to vector<8x1792xf32>
    %29 = arith.addf %26, %28 : vector<8x1792xf32>
    %30 = vector.extract_strided_slice %29 {offsets = [0, 0], sizes = [8, 1664], strides = [1, 1]} : vector<8x1792xf32> to vector<8x1664xf32>
    %31 = vector.extract_strided_slice %29 {offsets = [0, 1], sizes = [8, 1664], strides = [1, 1]} : vector<8x1792xf32> to vector<8x1664xf32>
    %32 = arith.maximumf %30, %31 : vector<8x1664xf32>
    %33 = vector.extract_strided_slice %29 {offsets = [0, 30], sizes = [8, 1664], strides = [1, 1]} : vector<8x1792xf32> to vector<8x1664xf32>
    %34 = vector.extract_strided_slice %29 {offsets = [0, 31], sizes = [8, 1664], strides = [1, 1]} : vector<8x1792xf32> to vector<8x1664xf32>
    %35 = arith.maximumf %33, %34 : vector<8x1664xf32>
    %36 = arith.maximumf %32, %35 : vector<8x1664xf32>
    %cst_23 = arith.constant 0.000000e+00 : f32
    %37 = vector.broadcast %cst_23 : f32 to vector<8x1664xf32>
    %38 = arith.maximumf %36, %37 : vector<8x1664xf32>
    %39 = vector.extract_strided_slice %38 {offsets = [0, 0], sizes = [8, 1408], strides = [1, 1]} : vector<8x1664xf32> to vector<8x1408xf32>
    %40 = vector.extract_strided_slice %38 {offsets = [0, 2], sizes = [8, 1408], strides = [1, 1]} : vector<8x1664xf32> to vector<8x1408xf32>
    %41 = tpu.concatenate %39, %40 in 0 : vector<8x1408xf32>, vector<8x1408xf32> -> vector<16x1408xf32>
    %42 = arith.truncf %41 : vector<16x1408xf32> to vector<16x1408xbf16>
    %c0_24 = arith.constant 0 : index
    %c0_25 = arith.constant 0 : index
    %43 = vector.load %arg15[%c0_24, %c0_25] : memref<208x1408xbf16, #tpu.memory_space<vmem>>, vector<16x1408xbf16>
    tpu.vector_store %arg15[%c0_24, %c0_25], %42 {strides = array<i32>} : memref<208x1408xbf16, #tpu.memory_space<vmem>>, vector<16x1408xbf16>,
    %44 = vector.extract_strided_slice %38 {offsets = [0, 4], sizes = [8, 1408], strides = [1, 1]} : vector<8x1664xf32> to vector<8x1408xf32>
    %45 = vector.extract_strided_slice %38 {offsets = [0, 6], sizes = [8, 1408], strides = [1, 1]} : vector<8x1664xf32> to vector<8x1408xf32>
    %46 = tpu.concatenate %44, %45 in 0 : vector<8x1408xf32>, vector<8x1408xf32> -> vector<16x1408xf32>
    %47 = arith.truncf %46 : vector<16x1408xf32> to vector<16x1408xbf16>
    %c16_26 = arith.constant 16 : index
    %c0_27 = arith.constant 0 : index
    %48 = vector.load %arg15[%c16_26, %c0_27] : memref<208x1408xbf16, #tpu.memory_space<vmem>>, vector<16x1408xbf16>
    tpu.vector_store %arg15[%c16_26, %c0_27], %47 {strides = array<i32>} : memref<208x1408xbf16, #tpu.memory_space<vmem>>, vector<16x1408xbf16>,
    %49 = vector.extract_strided_slice %38 {offsets = [0, 8], sizes = [8, 1408], strides = [1, 1]} : vector<8x1664xf32> to vector<8x1408xf32>
    %50 = vector.extract_strided_slice %38 {offsets = [0, 60], sizes = [8, 1408], strides = [1, 1]} : vector<8x1664xf32> to vector<8x1408xf32>
    %51 = tpu.concatenate %49, %50 in 0 : vector<8x1408xf32>, vector<8x1408xf32> -> vector<16x1408xf32>
    %52 = arith.truncf %51 : vector<16x1408xf32> to vector<16x1408xbf16>
    %c32_28 = arith.constant 32 : index
    %c0_29 = arith.constant 0 : index
    %53 = vector.load %arg15[%c32_28, %c0_29] : memref<208x1408xbf16, #tpu.memory_space<vmem>>, vector<16x1408xbf16>
    tpu.vector_store %arg15[%c32_28, %c0_29], %52 {strides = array<i32>} : memref<208x1408xbf16, #tpu.memory_space<vmem>>, vector<16x1408xbf16>,
    %54 = vector.extract_strided_slice %38 {offsets = [0, 62], sizes = [8, 1408], strides = [1, 1]} : vector<8x1664xf32> to vector<8x1408xf32>
    %55 = vector.extract_strided_slice %38 {offsets = [0, 64], sizes = [8, 1408], strides = [1, 1]} : vector<8x1664xf32> to vector<8x1408xf32>
    %56 = tpu.concatenate %54, %55 in 0 : vector<8x1408xf32>, vector<8x1408xf32> -> vector<16x1408xf32>
    %57 = arith.truncf %56 : vector<16x1408xf32> to vector<16x1408xbf16>
    %c48_30 = arith.constant 48 : index
    %c0_31 = arith.constant 0 : index
    %58 = vector.load %arg15[%c48_30, %c0_31] : memref<208x1408xbf16, #tpu.memory_space<vmem>>, vector<16x1408xbf16>
    tpu.vector_store %arg15[%c48_30, %c0_31], %57 {strides = array<i32>} : memref<208x1408xbf16, #tpu.memory_space<vmem>>, vector<16x1408xbf16>,
    %59 = vector.extract_strided_slice %38 {offsets = [0, 66], sizes = [8, 1408], strides = [1, 1]} : vector<8x1664xf32> to vector<8x1408xf32>
    %60 = vector.extract_strided_slice %38 {offsets = [0, 68], sizes = [8, 1408], strides = [1, 1]} : vector<8x1664xf32> to vector<8x1408xf32>
    %61 = tpu.concatenate %59, %60 in 0 : vector<8x1408xf32>, vector<8x1408xf32> -> vector<16x1408xf32>
    %62 = arith.truncf %61 : vector<16x1408xf32> to vector<16x1408xbf16>
    %c64 = arith.constant 64 : index
    %c0_32 = arith.constant 0 : index
    %63 = vector.load %arg15[%c64, %c0_32] : memref<208x1408xbf16, #tpu.memory_space<vmem>>, vector<16x1408xbf16>
    tpu.vector_store %arg15[%c64, %c0_32], %62 {strides = array<i32>} : memref<208x1408xbf16, #tpu.memory_space<vmem>>, vector<16x1408xbf16>,
    %64 = vector.extract_strided_slice %38 {offsets = [0, 120], sizes = [8, 1408], strides = [1, 1]} : vector<8x1664xf32> to vector<8x1408xf32>
    %65 = vector.extract_strided_slice %38 {offsets = [0, 122], sizes = [8, 1408], strides = [1, 1]} : vector<8x1664xf32> to vector<8x1408xf32>
    %66 = tpu.concatenate %64, %65 in 0 : vector<8x1408xf32>, vector<8x1408xf32> -> vector<16x1408xf32>
    %67 = arith.truncf %66 : vector<16x1408xf32> to vector<16x1408xbf16>
    %c80 = arith.constant 80 : index
    %c0_33 = arith.constant 0 : index
    %68 = vector.load %arg15[%c80, %c0_33] : memref<208x1408xbf16, #tpu.memory_space<vmem>>, vector<16x1408xbf16>
    tpu.vector_store %arg15[%c80, %c0_33], %67 {strides = array<i32>} : memref<208x1408xbf16, #tpu.memory_space<vmem>>, vector<16x1408xbf16>,
    %69 = vector.extract_strided_slice %38 {offsets = [0, 124], sizes = [8, 1408], strides = [1, 1]} : vector<8x1664xf32> to vector<8x1408xf32>
    %70 = vector.extract_strided_slice %38 {offsets = [0, 126], sizes = [8, 1408], strides = [1, 1]} : vector<8x1664xf32> to vector<8x1408xf32>
    %71 = tpu.concatenate %69, %70 in 0 : vector<8x1408xf32>, vector<8x1408xf32> -> vector<16x1408xf32>
    %72 = arith.truncf %71 : vector<16x1408xf32> to vector<16x1408xbf16>
    %c96 = arith.constant 96 : index
    %c0_34 = arith.constant 0 : index
    %73 = vector.load %arg15[%c96, %c0_34] : memref<208x1408xbf16, #tpu.memory_space<vmem>>, vector<16x1408xbf16>
    tpu.vector_store %arg15[%c96, %c0_34], %72 {strides = array<i32>} : memref<208x1408xbf16, #tpu.memory_space<vmem>>, vector<16x1408xbf16>,
    %74 = vector.extract_strided_slice %38 {offsets = [0, 128], sizes = [8, 1408], strides = [1, 1]} : vector<8x1664xf32> to vector<8x1408xf32>
    %75 = vector.extract_strided_slice %38 {offsets = [0, 180], sizes = [8, 1408], strides = [1, 1]} : vector<8x1664xf32> to vector<8x1408xf32>
    %76 = tpu.concatenate %74, %75 in 0 : vector<8x1408xf32>, vector<8x1408xf32> -> vector<16x1408xf32>
    %77 = arith.truncf %76 : vector<16x1408xf32> to vector<16x1408xbf16>
    %c112 = arith.constant 112 : index
    %c0_35 = arith.constant 0 : index
    %78 = vector.load %arg15[%c112, %c0_35] : memref<208x1408xbf16, #tpu.memory_space<vmem>>, vector<16x1408xbf16>
    tpu.vector_store %arg15[%c112, %c0_35], %77 {strides = array<i32>} : memref<208x1408xbf16, #tpu.memory_space<vmem>>, vector<16x1408xbf16>,
    %79 = vector.extract_strided_slice %38 {offsets = [0, 182], sizes = [8, 1408], strides = [1, 1]} : vector<8x1664xf32> to vector<8x1408xf32>
    %80 = vector.extract_strided_slice %38 {offsets = [0, 184], sizes = [8, 1408], strides = [1, 1]} : vector<8x1664xf32> to vector<8x1408xf32>
    %81 = tpu.concatenate %79, %80 in 0 : vector<8x1408xf32>, vector<8x1408xf32> -> vector<16x1408xf32>
    %82 = arith.truncf %81 : vector<16x1408xf32> to vector<16x1408xbf16>
    %c128 = arith.constant 128 : index
    %c0_36 = arith.constant 0 : index
    %83 = vector.load %arg15[%c128, %c0_36] : memref<208x1408xbf16, #tpu.memory_space<vmem>>, vector<16x1408xbf16>
    tpu.vector_store %arg15[%c128, %c0_36], %82 {strides = array<i32>} : memref<208x1408xbf16, #tpu.memory_space<vmem>>, vector<16x1408xbf16>,
    %84 = vector.extract_strided_slice %38 {offsets = [0, 186], sizes = [8, 1408], strides = [1, 1]} : vector<8x1664xf32> to vector<8x1408xf32>
    %85 = vector.extract_strided_slice %38 {offsets = [0, 188], sizes = [8, 1408], strides = [1, 1]} : vector<8x1664xf32> to vector<8x1408xf32>
    %86 = tpu.concatenate %84, %85 in 0 : vector<8x1408xf32>, vector<8x1408xf32> -> vector<16x1408xf32>
    %87 = arith.truncf %86 : vector<16x1408xf32> to vector<16x1408xbf16>
    %c144 = arith.constant 144 : index
    %c0_37 = arith.constant 0 : index
    %88 = vector.load %arg15[%c144, %c0_37] : memref<208x1408xbf16, #tpu.memory_space<vmem>>, vector<16x1408xbf16>
    tpu.vector_store %arg15[%c144, %c0_37], %87 {strides = array<i32>} : memref<208x1408xbf16, #tpu.memory_space<vmem>>, vector<16x1408xbf16>,
    %89 = vector.extract_strided_slice %38 {offsets = [0, 240], sizes = [8, 1408], strides = [1, 1]} : vector<8x1664xf32> to vector<8x1408xf32>
    %90 = vector.extract_strided_slice %38 {offsets = [0, 242], sizes = [8, 1408], strides = [1, 1]} : vector<8x1664xf32> to vector<8x1408xf32>
    %91 = tpu.concatenate %89, %90 in 0 : vector<8x1408xf32>, vector<8x1408xf32> -> vector<16x1408xf32>
    %92 = arith.truncf %91 : vector<16x1408xf32> to vector<16x1408xbf16>
    %c160 = arith.constant 160 : index
    %c0_38 = arith.constant 0 : index
    %93 = vector.load %arg15[%c160, %c0_38] : memref<208x1408xbf16, #tpu.memory_space<vmem>>, vector<16x1408xbf16>
    tpu.vector_store %arg15[%c160, %c0_38], %92 {strides = array<i32>} : memref<208x1408xbf16, #tpu.memory_space<vmem>>, vector<16x1408xbf16>,
    %94 = vector.extract_strided_slice %38 {offsets = [0, 244], sizes = [8, 1408], strides = [1, 1]} : vector<8x1664xf32> to vector<8x1408xf32>
    %95 = vector.extract_strided_slice %38 {offsets = [0, 246], sizes = [8, 1408], strides = [1, 1]} : vector<8x1664xf32> to vector<8x1408xf32>
    %96 = tpu.concatenate %94, %95 in 0 : vector<8x1408xf32>, vector<8x1408xf32> -> vector<16x1408xf32>
    %97 = arith.truncf %96 : vector<16x1408xf32> to vector<16x1408xbf16>
    %c176 = arith.constant 176 : index
    %c0_39 = arith.constant 0 : index
    %98 = vector.load %arg15[%c176, %c0_39] : memref<208x1408xbf16, #tpu.memory_space<vmem>>, vector<16x1408xbf16>
    tpu.vector_store %arg15[%c176, %c0_39], %97 {strides = array<i32>} : memref<208x1408xbf16, #tpu.memory_space<vmem>>, vector<16x1408xbf16>,
    %99 = vector.extract_strided_slice %38 {offsets = [0, 248], sizes = [8, 1408], strides = [1, 1]} : vector<8x1664xf32> to vector<8x1408xf32>
    %100 = vector.extract_strided_slice %38 {offsets = [0, 248], sizes = [8, 1408], strides = [1, 1]} : vector<8x1664xf32> to vector<8x1408xf32>
    %101 = tpu.concatenate %99, %100 in 0 : vector<8x1408xf32>, vector<8x1408xf32> -> vector<16x1408xf32>
    %102 = arith.truncf %101 : vector<16x1408xf32> to vector<16x1408xbf16>
    %c192 = arith.constant 192 : index
    %c0_40 = arith.constant 0 : index
    %103 = vector.load %arg15[%c192, %c0_40] : memref<208x1408xbf16, #tpu.memory_space<vmem>>, vector<16x1408xbf16>
    tpu.vector_store %arg15[%c192, %c0_40], %102 {strides = array<i32>} : memref<208x1408xbf16, #tpu.memory_space<vmem>>, vector<16x1408xbf16>,
    %c0_41 = arith.constant 0 : index
    %c0_42 = arith.constant 0 : index
    %104 = vector.load %arg3[%c0_41, %c0_42] : memref<32x208xbf16, #tpu.memory_space<vmem>>, vector<32x208xbf16>
    %c0_43 = arith.constant 0 : index
    %c0_44 = arith.constant 0 : index
    %105 = vector.load %arg15[%c0_43, %c0_44] : memref<208x1408xbf16, #tpu.memory_space<vmem>>, vector<208x1408xbf16>
    %cst_45 = arith.constant dense<0.000000e+00> : vector<32x1408xf32>
    %106 = tpu.matmul %104, %105, %cst_45 {dimension_numbers = #tpu.dot_dimension_numbers<[1], [0], [0], [1], [0, 0, 1, 1], [], []>} : vector<32x208xbf16>, vector<208x1408xbf16>, vector<32x1408xf32> -> vector<32x1408xf32>
    %c0_46 = arith.constant 0 : index
    %c0_47 = arith.constant 0 : index
    %107 = vector.load %arg4[%c0_46, %c0_47] : memref<32x1xf32, #tpu.memory_space<vmem>>, vector<32x1xf32>
    %108 = vector.broadcast %107 : vector<32x1xf32> to vector<32x1408xf32>
    %109 = arith.addf %106, %108 : vector<32x1408xf32>
    %c0_48 = arith.constant 0 : index
    %c0_49 = arith.constant 0 : index
    %110 = vector.load %arg16[%c0_48, %c0_49] : memref<32x1408xf32, #tpu.memory_space<vmem>>, vector<32x1408xf32>
    tpu.vector_store %arg16[%c0_48, %c0_49], %109 {strides = array<i32>} : memref<32x1408xf32, #tpu.memory_space<vmem>>, vector<32x1408xf32>,
    %c0_50 = arith.constant 0 : index
    %c0_51 = arith.constant 0 : index
    %111 = vector.load %arg16[%c0_50, %c0_51] : memref<32x1408xf32, #tpu.memory_space<vmem>>, vector<32x448xf32>
    %112 = vector.extract_strided_slice %111 {offsets = [0, 0], sizes = [32, 384], strides = [1, 1]} : vector<32x448xf32> to vector<32x384xf32>
    %113 = vector.extract_strided_slice %111 {offsets = [0, 2], sizes = [32, 384], strides = [1, 1]} : vector<32x448xf32> to vector<32x384xf32>
    %114 = arith.maximumf %112, %113 : vector<32x384xf32>
    %115 = vector.extract_strided_slice %111 {offsets = [0, 60], sizes = [32, 384], strides = [1, 1]} : vector<32x448xf32> to vector<32x384xf32>
    %116 = vector.extract_strided_slice %111 {offsets = [0, 62], sizes = [32, 384], strides = [1, 1]} : vector<32x448xf32> to vector<32x384xf32>
    %117 = arith.maximumf %115, %116 : vector<32x384xf32>
    %118 = arith.maximumf %114, %117 : vector<32x384xf32>
    %cst_52 = arith.constant 0.000000e+00 : f32
    %119 = vector.broadcast %cst_52 : f32 to vector<32x384xf32>
    %120 = arith.maximumf %118, %119 : vector<32x384xf32>
    %c0_53 = arith.constant 0 : index
    %c0_54 = arith.constant 0 : index
    %121 = vector.load %arg5[%c0_53, %c0_54] : memref<384x16xf32, #tpu.memory_space<vmem>>, vector<384x16xf32>
    %cst_55 = arith.constant dense<0.000000e+00> : vector<32x16xf32>
    %122 = tpu.matmul %120, %121, %cst_55 {dimension_numbers = #tpu.dot_dimension_numbers<[1], [0], [0], [1], [0, 0, 1, 1], [], []>} : vector<32x384xf32>, vector<384x16xf32>, vector<32x16xf32> -> vector<32x16xf32>
    %c0_56 = arith.constant 0 : index
    %c0_57 = arith.constant 0 : index
    %123 = vector.load %arg6[%c0_56, %c0_57] : memref<16x512xf32, #tpu.memory_space<vmem>>, vector<16x512xf32>
    %cst_58 = arith.constant dense<0.000000e+00> : vector<32x512xf32>
    %124 = tpu.matmul %122, %123, %cst_58 {dimension_numbers = #tpu.dot_dimension_numbers<[1], [0], [0], [1], [0, 0, 1, 1], [], []>} : vector<32x16xf32>, vector<16x512xf32>, vector<32x512xf32> -> vector<32x512xf32>
    %c0_59 = arith.constant 0 : index
    %c0_60 = arith.constant 0 : index
    %125 = vector.load %arg7[%c0_59, %c0_60] : memref<32x512xf32, #tpu.memory_space<vmem>>, vector<32x512xf32>
    %126 = arith.mulf %124, %125 : vector<32x512xf32>
    %cst_61 = arith.constant dense<0.000000e+00> : vector<512xf32>
    %127 = vector.multi_reduction <add>, %126, %cst_61 [0] : vector<32x512xf32> to vector<512xf32>
    %128 = vector.shape_cast %127 : vector<512xf32> to vector<1x512xf32>
    %c0_62 = arith.constant 0 : index
    %c0_63 = arith.constant 0 : index
    %129 = vector.load %arg17[%c0_62, %c0_63] : memref<2x512xf32, #tpu.memory_space<vmem>>, vector<1x512xf32>
    tpu.vector_store %arg17[%c0_62, %c0_63], %128 {strides = array<i32>} : memref<2x512xf32, #tpu.memory_space<vmem>>, vector<1x512xf32>,
    %c0_64 = arith.constant 0 : index
    %c900 = arith.constant 900 : index
    %130 = vector.load %arg16[%c0_64, %c900] : memref<32x1408xf32, #tpu.memory_space<vmem>>, vector<32x448xf32>
    %131 = vector.extract_strided_slice %130 {offsets = [0, 0], sizes = [32, 384], strides = [1, 1]} : vector<32x448xf32> to vector<32x384xf32>
    %132 = vector.extract_strided_slice %130 {offsets = [0, 2], sizes = [32, 384], strides = [1, 1]} : vector<32x448xf32> to vector<32x384xf32>
    %133 = arith.maximumf %131, %132 : vector<32x384xf32>
    %134 = vector.extract_strided_slice %130 {offsets = [0, 60], sizes = [32, 384], strides = [1, 1]} : vector<32x448xf32> to vector<32x384xf32>
    %135 = vector.extract_strided_slice %130 {offsets = [0, 62], sizes = [32, 384], strides = [1, 1]} : vector<32x448xf32> to vector<32x384xf32>
    %136 = arith.maximumf %134, %135 : vector<32x384xf32>
    %137 = arith.maximumf %133, %136 : vector<32x384xf32>
    %cst_65 = arith.constant 0.000000e+00 : f32
    %138 = vector.broadcast %cst_65 : f32 to vector<32x384xf32>
    %139 = arith.maximumf %137, %138 : vector<32x384xf32>
    %c0_66 = arith.constant 0 : index
    %c0_67 = arith.constant 0 : index
    %140 = vector.load %arg5[%c0_66, %c0_67] : memref<384x16xf32, #tpu.memory_space<vmem>>, vector<384x16xf32>
    %cst_68 = arith.constant dense<0.000000e+00> : vector<32x16xf32>
    %141 = tpu.matmul %139, %140, %cst_68 {dimension_numbers = #tpu.dot_dimension_numbers<[1], [0], [0], [1], [0, 0, 1, 1], [], []>} : vector<32x384xf32>, vector<384x16xf32>, vector<32x16xf32> -> vector<32x16xf32>
    %c0_69 = arith.constant 0 : index
    %c0_70 = arith.constant 0 : index
    %142 = vector.load %arg6[%c0_69, %c0_70] : memref<16x512xf32, #tpu.memory_space<vmem>>, vector<16x512xf32>
    %cst_71 = arith.constant dense<0.000000e+00> : vector<32x512xf32>
    %143 = tpu.matmul %141, %142, %cst_71 {dimension_numbers = #tpu.dot_dimension_numbers<[1], [0], [0], [1], [0, 0, 1, 1], [], []>} : vector<32x16xf32>, vector<16x512xf32>, vector<32x512xf32> -> vector<32x512xf32>
    %c0_72 = arith.constant 0 : index
    %c0_73 = arith.constant 0 : index
    %144 = vector.load %arg7[%c0_72, %c0_73] : memref<32x512xf32, #tpu.memory_space<vmem>>, vector<32x512xf32>
    %145 = arith.mulf %143, %144 : vector<32x512xf32>
    %cst_74 = arith.constant dense<0.000000e+00> : vector<512xf32>
    %146 = vector.multi_reduction <add>, %145, %cst_74 [0] : vector<32x512xf32> to vector<512xf32>
    %147 = vector.shape_cast %146 : vector<512xf32> to vector<1x512xf32>
    %c1 = arith.constant 1 : index
    %c0_75 = arith.constant 0 : index
    %148 = vector.load %arg17[%c1, %c0_75] : memref<2x512xf32, #tpu.memory_space<vmem>>, vector<1x512xf32>
    tpu.vector_store %arg17[%c1, %c0_75], %147 {strides = array<i32>} : memref<2x512xf32, #tpu.memory_space<vmem>>, vector<1x512xf32>,
    %c0_76 = arith.constant 0 : index
    %c0_77 = arith.constant 0 : index
    %149 = vector.load %arg17[%c0_76, %c0_77] : memref<2x512xf32, #tpu.memory_space<vmem>>, vector<2x512xf32>
    %c0_78 = arith.constant 0 : index
    %c0_79 = arith.constant 0 : index
    %150 = vector.load %arg8[%c0_78, %c0_79] : memref<512x128xf32, #tpu.memory_space<vmem>>, vector<512x128xf32>
    %cst_80 = arith.constant dense<0.000000e+00> : vector<2x128xf32>
    %151 = tpu.matmul %149, %150, %cst_80 {dimension_numbers = #tpu.dot_dimension_numbers<[1], [0], [0], [1], [0, 0, 1, 1], [], []>} : vector<2x512xf32>, vector<512x128xf32>, vector<2x128xf32> -> vector<2x128xf32>
    %c0_81 = arith.constant 0 : index
    %c0_82 = arith.constant 0 : index
    %152 = vector.load %arg9[%c0_81, %c0_82] : memref<1x128xf32, #tpu.memory_space<vmem>>, vector<1x128xf32>
    %153 = vector.broadcast %152 : vector<1x128xf32> to vector<2x128xf32>
    %154 = arith.addf %151, %153 : vector<2x128xf32>
    %cst_83 = arith.constant 0.000000e+00 : f32
    %155 = vector.broadcast %cst_83 : f32 to vector<2x128xf32>
    %156 = arith.maximumf %154, %155 : vector<2x128xf32>
    %c0_84 = arith.constant 0 : index
    %c0_85 = arith.constant 0 : index
    %157 = vector.load %arg10[%c0_84, %c0_85] : memref<128x128xf32, #tpu.memory_space<vmem>>, vector<128x128xf32>
    %cst_86 = arith.constant dense<0.000000e+00> : vector<2x128xf32>
    %158 = tpu.matmul %156, %157, %cst_86 {dimension_numbers = #tpu.dot_dimension_numbers<[1], [0], [0], [1], [0, 0, 1, 1], [], []>} : vector<2x128xf32>, vector<128x128xf32>, vector<2x128xf32> -> vector<2x128xf32>
    %c0_87 = arith.constant 0 : index
    %c0_88 = arith.constant 0 : index
    %159 = vector.load %arg11[%c0_87, %c0_88] : memref<1x128xf32, #tpu.memory_space<vmem>>, vector<1x128xf32>
    %160 = vector.broadcast %159 : vector<1x128xf32> to vector<2x128xf32>
    %161 = arith.addf %158, %160 : vector<2x128xf32>
    %cst_89 = arith.constant 0.000000e+00 : f32
    %162 = vector.broadcast %cst_89 : f32 to vector<2x128xf32>
    %163 = arith.maximumf %161, %162 : vector<2x128xf32>
    %164 = vector.extract_strided_slice %163 {offsets = [0, 14], sizes = [2, 64], strides = [1, 1]} : vector<2x128xf32> to vector<2x64xf32>
    %c0_90 = arith.constant 0 : index
    %c0_91 = arith.constant 0 : index
    %165 = vector.load %arg12[%c0_90, %c0_91] : memref<64x128xf32, #tpu.memory_space<vmem>>, vector<64x128xf32>
    %cst_92 = arith.constant dense<0.000000e+00> : vector<2x128xf32>
    %166 = tpu.matmul %164, %165, %cst_92 {dimension_numbers = #tpu.dot_dimension_numbers<[1], [0], [0], [1], [0, 0, 1, 1], [], []>} : vector<2x64xf32>, vector<64x128xf32>, vector<2x128xf32> -> vector<2x128xf32>
    %c0_93 = arith.constant 0 : index
    %c0_94 = arith.constant 0 : index
    %167 = vector.load %arg13[%c0_93, %c0_94] : memref<1x128xf32, #tpu.memory_space<vmem>>, vector<1x128xf32>
    %168 = vector.broadcast %167 : vector<1x128xf32> to vector<2x128xf32>
    %169 = arith.addf %166, %168 : vector<2x128xf32>
    %cst_95 = arith.constant 0.000000e+00 : f32
    %170 = vector.broadcast %cst_95 : f32 to vector<2x128xf32>
    %171 = arith.maximumf %169, %170 : vector<2x128xf32>
    %172 = vector.extract_strided_slice %163 {offsets = [0, 0], sizes = [2, 10], strides = [1, 1]} : vector<2x128xf32> to vector<2x10xf32>
    %cst_96 = arith.constant dense<0xFF800000> : vector<2xf32>
    %173 = vector.multi_reduction <maximumf>, %172, %cst_96 [1] : vector<2x10xf32> to vector<2xf32>
    %174 = vector.shape_cast %173 : vector<2xf32> to vector<2x1xf32>
    %175 = vector.broadcast %174 : vector<2x1xf32> to vector<2x10xf32>
    %176 = arith.subf %172, %175 : vector<2x10xf32>
    %177 = math.exp %176 : vector<2x10xf32>
    %cst_97 = arith.constant dense<0.000000e+00> : vector<2xf32>
    %178 = vector.multi_reduction <add>, %177, %cst_97 [1] : vector<2x10xf32> to vector<2xf32>
    %179 = vector.shape_cast %178 : vector<2xf32> to vector<2x1xf32>
    %180 = math.log %179 : vector<2x1xf32>
    %181 = vector.broadcast %180 : vector<2x1xf32> to vector<2x10xf32>
    %182 = arith.subf %176, %181 : vector<2x10xf32>
    %183 = vector.extract_strided_slice %163 {offsets = [0, 10], sizes = [2, 4], strides = [1, 1]} : vector<2x128xf32> to vector<2x4xf32>
    %cst_98 = arith.constant dense<0xFF800000> : vector<2xf32>
    %184 = vector.multi_reduction <maximumf>, %183, %cst_98 [1] : vector<2x4xf32> to vector<2xf32>
    %185 = vector.shape_cast %184 : vector<2xf32> to vector<2x1xf32>
    %186 = vector.broadcast %185 : vector<2x1xf32> to vector<2x4xf32>
    %187 = arith.subf %183, %186 : vector<2x4xf32>
    %188 = math.exp %187 : vector<2x4xf32>
    %cst_99 = arith.constant dense<0.000000e+00> : vector<2xf32>
    %189 = vector.multi_reduction <add>, %188, %cst_99 [1] : vector<2x4xf32> to vector<2xf32>
    %190 = vector.shape_cast %189 : vector<2xf32> to vector<2x1xf32>
    %191 = math.log %190 : vector<2x1xf32>
    %192 = vector.broadcast %191 : vector<2x1xf32> to vector<2x4xf32>
    %193 = arith.subf %187, %192 : vector<2x4xf32>
    %194 = vector.extract_strided_slice %171 {offsets = [0, 0], sizes = [2, 5], strides = [1, 1]} : vector<2x128xf32> to vector<2x5xf32>
    %cst_100 = arith.constant dense<0xFF800000> : vector<2xf32>
    %195 = vector.multi_reduction <maximumf>, %194, %cst_100 [1] : vector<2x5xf32> to vector<2xf32>
    %196 = vector.shape_cast %195 : vector<2xf32> to vector<2x1xf32>
    %197 = vector.broadcast %196 : vector<2x1xf32> to vector<2x5xf32>
    %198 = arith.subf %194, %197 : vector<2x5xf32>
    %199 = math.exp %198 : vector<2x5xf32>
    %cst_101 = arith.constant dense<0.000000e+00> : vector<2xf32>
    %200 = vector.multi_reduction <add>, %199, %cst_101 [1] : vector<2x5xf32> to vector<2xf32>
    %201 = vector.shape_cast %200 : vector<2xf32> to vector<2x1xf32>
    %202 = math.log %201 : vector<2x1xf32>
    %203 = vector.broadcast %202 : vector<2x1xf32> to vector<2x5xf32>
    %204 = arith.subf %198, %203 : vector<2x5xf32>
    %205 = vector.extract_strided_slice %171 {offsets = [0, 5], sizes = [2, 2], strides = [1, 1]} : vector<2x128xf32> to vector<2x2xf32>
    %cst_102 = arith.constant dense<0xFF800000> : vector<2xf32>
    %206 = vector.multi_reduction <maximumf>, %205, %cst_102 [1] : vector<2x2xf32> to vector<2xf32>
    %207 = vector.shape_cast %206 : vector<2xf32> to vector<2x1xf32>
    %208 = vector.broadcast %207 : vector<2x1xf32> to vector<2x2xf32>
    %209 = arith.subf %205, %208 : vector<2x2xf32>
    %210 = math.exp %209 : vector<2x2xf32>
    %cst_103 = arith.constant dense<0.000000e+00> : vector<2xf32>
    %211 = vector.multi_reduction <add>, %210, %cst_103 [1] : vector<2x2xf32> to vector<2xf32>
    %212 = vector.shape_cast %211 : vector<2xf32> to vector<2x1xf32>
    %213 = math.log %212 : vector<2x1xf32>
    %214 = vector.broadcast %213 : vector<2x1xf32> to vector<2x2xf32>
    %215 = arith.subf %209, %214 : vector<2x2xf32>
    %cst_104 = arith.constant 0.000000e+00 : f32
    %216 = vector.broadcast %cst_104 : f32 to vector<2x107xf32>
    %217 = tpu.concatenate %182, %193, %204, %215, %216 in 1 : vector<2x10xf32>, vector<2x4xf32>, vector<2x5xf32>, vector<2x2xf32>, vector<2x107xf32> -> vector<2x128xf32>
    %c0_105 = arith.constant 0 : index
    %c0_106 = arith.constant 0 : index
    %218 = vector.load %arg14[%c0_105, %c0_106] : memref<2x128xf32, #tpu.memory_space<vmem>>, vector<2x128xf32>
    tpu.vector_store %arg14[%c0_105, %c0_106], %217 {strides = array<i32>} : memref<2x128xf32, #tpu.memory_space<vmem>>, vector<2x128xf32>,
    return
  }
}

</mosaic_0001>

<bundles_post_ra>
// kernel: face_recg_forward.1
= control target key start
LH: loop header
LB: loop body
LE: loop exit
PB: predicated region body
PF: predicated region fallthrough
CT: control target
= control target key end

     0   :  { %v7622_v2 = vmov 0   ;;  %s7623_s17 = smov 98   ;;  %s7625_s16 = smov 68   ;;  %vm130_vm0 = vcmask 801792   ;;  %vm149_vm1 = vcmask 1043456   ;;  %vm145_vm2 = vcmask 64512   ;;  %s10529_s0 = inlined_call_operand.vmem [shape: bf16[8,2048], index: 0, kind: input, shape index: {}]   ;;  %s10530_s1 = inlined_call_operand.vmem [shape: bf16[8,56], index: 1, kind: input, shape index: {}]   ;;  %s10531_s2 = inlined_call_operand.vmem [shape: f32[8,1], index: 2, kind: input, shape index: {}]   ;;  %s10532_s3 = inlined_call_operand.vmem [shape: bf16[32,208], index: 3, kind: input, shape index: {}]   ;;  %s10533_s4 = inlined_call_operand.vmem [shape: f32[32,1], index: 4, kind: input, shape index: {}]   ;;  %s10534_s5 = inlined_call_operand.vmem [shape: f32[384,16], index: 5, kind: input, shape index: {}]   ;;  %s10535_s6 = inlined_call_operand.vmem [shape: f32[16,512], index: 6, kind: input, shape index: {}]   ;;  %s10536_s7 = inlined_call_operand.vmem [shape: f32[32,512], index: 7, kind: input, shape index: {}]   ;;  %s10537_s8 = inlined_call_operand.vmem [shape: f32[512,128], index: 8, kind: input, shape index: {}]   ;;  %s10538_s10 = inlined_call_operand.vmem [shape: f32[128,128], index: 10, kind: input, shape index: {}]   ;;  %s10539_s9 = inlined_call_operand.vmem [shape: f32[1,128], index: 9, kind: input, shape index: {}]   ;;  %s10540_s12 = inlined_call_operand.vmem [shape: f32[64,128], index: 12, kind: input, shape index: {}]   ;;  %s10541_s11 = inlined_call_operand.vmem [shape: f32[1,128], index: 11, kind: input, shape index: {}]   ;;  %s10542_s13 = inlined_call_operand.vmem [shape: f32[1,128], index: 13, kind: input, shape index: {}]   ;;  %s10543_s14 = inlined_call_operand.vmem [shape: f32[2,128], index: 14, kind: output, shape index: {}]  }
   0x1   :  { %v50_v0 = vld [vmem:[%s10529_s0 + $0x8] sm:$0xff]  ;;  %v49_v1 = vld [vmem:[%s10529_s0] sm:$0xff]  ;;  %224 = vmatprep.mubr.bf16.mxu0 %v7622_v2  ;;  %265 = vmatprep.mubr.bf16.mxu1 %v7622_v2  ;;  %v51_v8 = vld [vmem:[%s10529_s0 + $0x10] sm:$0xff]  ;;  %s7626_s18 = smov 112   ;;  %s7627_s19 = smov 38   ;;  %vm843_vm3 = vcmask 556032  }
   0x2   :  { %v7737_v3 = vcombine.low %v50_v0, %v50_v0  ;;  %v7739_v4 = vcombine.low %v49_v1, %v49_v1  ;;  %7255 = vset.pattern.permute.xlu0 %v7622_v2  ;;  %7366 = vset.pattern.permute.xlu1 %v7622_v2  ;;  %v7747_v5 = vcombine.high %v50_v0, %v50_v0  ;;  %v7754_v7 = vld [vmem:[%s10530_s1] sm:$0xf]  ;;  %v52_v11 = vld [vmem:[%s10529_s0 + $0x18] sm:$0xff]  ;;  %s7624_s1 = smov 120   ;;  %v54_v17 = vld [vmem:[%s10529_s0 + $0x28] sm:$0xff]  ;;  %s7628_s20 = smov 104  }
   0x3   :  { %v7749_v6 = vcombine.high %v49_v1, %v49_v1  ;;  %v7765_v9 = vcombine.low %v7754_v7, %v7754_v7  ;;  %v7767_v10 = vcombine.low %v51_v8, %v51_v8  ;;  %v7776_v12 = vcombine.low %v52_v11, %v52_v11  ;;  %v53_v14 = vld [vmem:[%s10529_s0 + $0x20] sm:$0xff]  ;;  %v55_v20 = vld [vmem:[%s10529_s0 + $0x30] sm:$0xff]  ;;  %v7820_v23 = vld [vmem:[%s10529_s0 + $0x38] ss:$0 sps:$4 sm:$0xff]   ;;  %s7629_s21 = smov 8   ;;  %s7630_s22 = smov 96  }
   0x4   :  { %104 = vrot.lane.b32.xlu1 %v7737_v3, %s7623_s17  ;;  %100 = vrot.lane.b32.xlu0 %v7739_v4, %s7623_s17  ;;  %v7778_v13 = vcombine.high %v51_v8, %v51_v8  ;;  %v7787_v15 = vcombine.low %v53_v14, %v53_v14  ;;  %v7789_v16 = vcombine.high %v52_v11, %v52_v11  ;;  %v1990_v35 = vld [vmem:[%s10529_s0 + $0x4] sm:$0xff]  ;;  %v1991_v44 = vld [vmem:[%s10529_s0 + $0xc] sm:$0xff]  ;;  %s7631_s27 = smov 106   ;;  %s7632_s30 = smov 88   ;;  %vm1236_vm4 = vcmask 310272  }
   0x5   :  { %v7798_v18 = vcombine.low %v54_v17, %v54_v17  ;;  %v7800_v19 = vcombine.high %v53_v14, %v53_v14  ;;  %v7809_v21 = vcombine.low %v55_v20, %v55_v20  ;;  %v7811_v22 = vcombine.high %v54_v17, %v54_v17  ;;  %v1992_v49 = vld [vmem:[%s10529_s0 + $0x14] sm:$0xff]  ;;  %v1993_v57 = vld [vmem:[%s10529_s0 + $0x1c] sm:$0xff]  ;;  %v1994_v1 = vld [vmem:[%s10529_s0 + $0x24] sm:$0xff]  ;;  %s7636_s15 = smov 126   ;;  %s7641_s23 = smov 4  }
   0x6   :  { %v7822_v24 = vcombine.high %v55_v20, %v55_v20  ;;  %v7919_v38 = vcombine.high %v1990_v35, %v1990_v35  ;;  %v7924_v41 = vcombine.low %v1990_v35, %v1990_v35  ;;  %v7940_v48 = vcombine.low %v1991_v44, %v1991_v44  ;;  %v1996_v35 = vld [vmem:[%s10529_s0 + $0x34] sm:$0xff]  ;;  %s7642_s24 = smov 16   ;;  %s7643_s25 = smov 70  }
   0x7   :  { %v7952_v53 = vcombine.low %v1992_v49, %v1992_v49  ;;  %v7957_v56 = vcombine.high %v1991_v44, %v1991_v44  ;;  %v7970_v61 = vcombine.low %v1993_v57, %v1993_v57  ;;  %v7975_v0 = vcombine.high %v1992_v49, %v1992_v49  ;;  %s7644_s26 = smov 12  }
   0x8   :  { %106 = vrot.lane.b32.xlu1 %v7747_v5, %s7623_s17  ;;  %102 = vrot.lane.b32.xlu0 %v7749_v6, %s7623_s17  ;;  %v7988_v17 = vcombine.low %v1994_v1, %v1994_v1  ;;  %vm2068_vm5 = vcmask 867328   ;;  %vm2461_vm6 = vcmask 621568   ;;  %vm2884_vm7 = vcmask 1039360  }
   0x9   :  { %vm3057_vm8 = vcmask 1031168   ;;  %vm4063_vm9 = vcmask 654336   ;;  %vm3140_vm10 = vcmask 1014784   ;;  %vm3270_vm11 = vcmask 982016  }
   0xa   :  { %vm3328_vm12 = vcmask 539648   ;;  %vm3386_vm13 = vcmask 506880   ;;  %vm3501_vm14 = vcmask 31744   ;;  %vm3585_vm15 = vcmask 605184  }
   0xc   :  { %60 = vrot.lane.b32.xlu1 %v7765_v9, %s7624_s1  ;;  %108 = vrot.lane.b32.xlu0 %v7767_v10, %s7623_s17 }
  0x10   :  { %112 = vrot.lane.b32.xlu1 %v7776_v12, %s7623_s17  ;;  %110 = vrot.lane.b32.xlu0 %v7778_v13, %s7623_s17 }
  0x14   :  { %116 = vrot.lane.b32.xlu1 %v7787_v15, %s7623_s17  ;;  %114 = vrot.lane.b32.xlu0 %v7789_v16, %s7623_s17 }
  0x18   :  { %120 = vrot.lane.b32.xlu1 %v7798_v18, %s7623_s17  ;;  %118 = vrot.lane.b32.xlu0 %v7800_v19, %s7623_s17 }
  0x1c   :  { %124 = vrot.lane.b32.xlu1 %v7809_v21, %s7623_s17  ;;  %122 = vrot.lane.b32.xlu0 %v7811_v22, %s7623_s17 }
  0x20   :  { %128 = vrot.lane.b32.xlu1 %v7820_v23, %s7623_s17  ;;  %126 = vrot.lane.b32.xlu0 %v7822_v24, %s7623_s17 }
  0x24   :  { %815 = vrot.lane.b32.xlu1 %v7749_v6, %s7625_s16  ;;  %813 = vrot.lane.b32.xlu0 %v7739_v4, %s7625_s16 }
  0x28   :  { %819 = vrot.lane.b32.xlu1 %v7747_v5, %s7625_s16  ;;  %817 = vrot.lane.b32.xlu0 %v7737_v3, %s7625_s16 }
  0x2c   :  { %811 = vrot.lane.b32.xlu1 %v7765_v9, %s7626_s18  ;;  %821 = vrot.lane.b32.xlu0 %v7767_v10, %s7625_s16  ;;  %s7637_s18 = smov 66  }
  0x30   :  { %825 = vrot.lane.b32.xlu1 %v7776_v12, %s7625_s16  ;;  %823 = vrot.lane.b32.xlu0 %v7778_v13, %s7625_s16 }
  0x34   :  { %829 = vrot.lane.b32.xlu1 %v7787_v15, %s7625_s16  ;;  %827 = vrot.lane.b32.xlu0 %v7789_v16, %s7625_s16 }
  0x38   :  { %833 = vrot.lane.b32.xlu1 %v7798_v18, %s7625_s16  ;;  %831 = vrot.lane.b32.xlu0 %v7800_v19, %s7625_s16 }
  0x3c   :  { %837 = vrot.lane.b32.xlu1 %v7809_v21, %s7625_s16  ;;  %835 = vrot.lane.b32.xlu0 %v7811_v22, %s7625_s16 }
  0x40   :  { %841 = vrot.lane.b32.xlu1 %v7820_v23, %s7625_s16  ;;  %839 = vrot.lane.b32.xlu0 %v7822_v24, %s7625_s16 }
  0x44   :  { %1208 = vrot.lane.b32.xlu1 %v7749_v6, %s7627_s19  ;;  %1206 = vrot.lane.b32.xlu0 %v7739_v4, %s7627_s19 }
  0x48   :  { %1204 = vrot.lane.b32.xlu1 %v7765_v9, %s7628_s20  ;;  %1210 = vrot.lane.b32.xlu0 %v7737_v3, %s7627_s19  ;;  %s7639_s20 = smov 62  }
  0x4c   :  { %1214 = vrot.lane.b32.xlu1 %v7767_v10, %s7627_s19  ;;  %1212 = vrot.lane.b32.xlu0 %v7747_v5, %s7627_s19 }
  0x50   :  { %1218 = vrot.lane.b32.xlu1 %v7776_v12, %s7627_s19  ;;  %1216 = vrot.lane.b32.xlu0 %v7778_v13, %s7627_s19 }
  0x54   :  { %1222 = vrot.lane.b32.xlu1 %v7787_v15, %s7627_s19  ;;  %1220 = vrot.lane.b32.xlu0 %v7789_v16, %s7627_s19 }
  0x58   :  { %1226 = vrot.lane.b32.xlu1 %v7798_v18, %s7627_s19  ;;  %1224 = vrot.lane.b32.xlu0 %v7800_v19, %s7627_s19 }
  0x5c   :  { %1230 = vrot.lane.b32.xlu1 %v7809_v21, %s7627_s19  ;;  %1228 = vrot.lane.b32.xlu0 %v7811_v22, %s7627_s19 }
  0x60   :  { %1234 = vrot.lane.b32.xlu1 %v7820_v23, %s7627_s19  ;;  %1232 = vrot.lane.b32.xlu0 %v7822_v24, %s7627_s19  ;;  %s7638_s19 = smov 124  }
  0x64   :  { %1601 = vrot.lane.b32.xlu1 %v7749_v6, %s7629_s21  ;;  %1599 = vrot.lane.b32.xlu0 %v7739_v4, %s7629_s21 }
  0x68   :  { %1605 = vrot.lane.b32.xlu1 %v7747_v5, %s7629_s21  ;;  %1603 = vrot.lane.b32.xlu0 %v7737_v3, %s7629_s21 }
  0x6c   :  { %1597 = vrot.lane.b32.xlu1 %v7765_v9, %s7630_s22  ;;  %1607 = vrot.lane.b32.xlu0 %v7767_v10, %s7629_s21  ;;  %s7640_s22 = smov 74  }
  0x70   :  { %1611 = vrot.lane.b32.xlu1 %v7776_v12, %s7629_s21  ;;  %1609 = vrot.lane.b32.xlu0 %v7778_v13, %s7629_s21 }
  0x74   :  { %1615 = vrot.lane.b32.xlu1 %v7787_v15, %s7629_s21  ;;  %1613 = vrot.lane.b32.xlu0 %v7789_v16, %s7629_s21 }
  0x76   :  { %v105_v25 = vpop.permute.xlu1 %104  ;;  %v101_v26 = vpop.permute.xlu0 %100 }
  0x78   :  { %1619 = vrot.lane.b32.xlu1 %v7798_v18, %s7629_s21  ;;  %1617 = vrot.lane.b32.xlu0 %v7800_v19, %s7629_s21 }
  0x7a   :  { %v107_v27 = vpop.permute.xlu1 %106  ;;  %v103_v28 = vpop.permute.xlu0 %102 }
  0x7b   :  { %v132_v29 = vsel %vm130_vm0, %v103_v28, %v105_v25  ;;  %v131_v30 = vsel %vm130_vm0, %v101_v26, %v103_v28  ;;  %v133_v32 = vsel %vm130_vm0, %v105_v25, %v107_v27  ;;  %v7993_v25 = vcombine.high %v1993_v57, %v1993_v57  ;;  %v1995_v26 = vld [vmem:[%s10529_s0 + $0x2c] sm:$0xff] }
  0x7c   :  { %6476 = vmatprep.subr.msk.bf16.mxu0 %vm149_vm1, %v132_v29  ;;  %v151_v31 = vsel %vm149_vm1, %v131_v30, 0  ;;  %1623 = vrot.lane.b32.xlu1 %v7809_v21, %s7629_s21  ;;  %v157_v37 = vsel %vm149_vm1, %v133_v32, 0  ;;  %v483_v29 = vsel %vm149_vm1, %v7739_v4, 0  ;;  %v8014_v4 = vcombine.high %v1994_v1, %v1994_v1 }
  0x7d   :  { %193 = vmatpush1.bf16.msra.mxu0 %v151_v31  ;;  %1621 = vrot.lane.b32.xlu0 %v7811_v22, %s7629_s21  ;;  %v8010_v31 = vcombine.low %v1995_v26, %v1995_v26 }
  0x7e   :  { %v7907_v33 = vpop.permute.xlu1 %60  ;;  %v109_v34 = vpop.permute.xlu0 %108 }
  0x7f   :  { %v134_v36 = vsel %vm130_vm0, %v107_v27, %v109_v34 }
  0x80   :  { %6477 = vmatmul.mubr.msk.bf16.vlgmr.msra.gmra.mrb[0].mxu0 %vm145_vm2, %v7907_v33  ;;  %6478 = vmatprep.subr.msk.bf16.mxu1 %vm149_vm1, %v134_v36 }
  0x81   :  { %234 = vmatpush1.bf16.msra.mxu1 %v157_v37  ;;  %1627 = vrot.lane.b32.xlu1 %v7820_v23, %s7629_s21 }
  0x82   :  { %v113_v39 = vpop.permute.xlu1 %112  ;;  %v111_v40 = vpop.permute.xlu0 %110  ;;  %1625 = vrot.lane.b32.xlu0 %v7822_v24, %s7629_s21  ;;  %306 = vmatprep.mubr.bf16.mxu0 %v7622_v2 }
  0x83   :  { %v135_v42 = vsel %vm130_vm0, %v109_v34, %v111_v40  ;;  %v136_v43 = vsel %vm130_vm0, %v111_v40, %v113_v39  ;;  %v489_v34 = vsel %vm149_vm1, %v7737_v3, 0  ;;  %v8030_v3 = vcombine.low %v1996_v35, %v1996_v35 }
  0x84   :  { %6479 = vmatmul.mubr.msk.bf16.vlgmr.msra.gmra.mrb[0].mxu1 %vm145_vm2, %v7907_v33  ;;  %6480 = vmatprep.subr.msk.bf16.mxu0 %vm149_vm1, %v136_v43  ;;  %v163_v45 = vsel %vm149_vm1, %v135_v42, 0  ;;  %v501_v40 = vsel %vm149_vm1, %v7776_v12, 0  ;;  %v507_v12 = vsel %vm149_vm1, %v7787_v15, 0 }
  0x85   :  { %275 = vmatpush1.bf16.msra.mxu0 %v163_v45  ;;  %2040 = vrot.lane.b32.xlu1 %v7919_v38, %s7631_s27 }
  0x86   :  { %v117_v46 = vpop.permute.xlu1 %116  ;;  %v115_v47 = vpop.permute.xlu0 %114  ;;  %2038 = vrot.lane.b32.xlu0 %v7924_v41, %s7631_s27  ;;  %347 = vmatprep.mubr.bf16.mxu1 %v7622_v2 }
  0x87   :  { %v137_v50 = vsel %vm130_vm0, %v113_v39, %v115_v47  ;;  %v138_v51 = vsel %vm130_vm0, %v115_v47, %v117_v46 }
  0x88   :  { %6481 = vmatmul.mubr.msk.bf16.vlgmr.msra.gmra.mrb[4].mxu0 %vm145_vm2, %v7907_v33  ;;  %6482 = vmatprep.subr.msk.bf16.mxu1 %vm149_vm1, %v138_v51  ;;  %v169_v52 = vsel %vm149_vm1, %v137_v50, 0 }
  0x89   :  { %316 = vmatpush1.bf16.msra.mxu1 %v169_v52  ;;  %1998 = vrot.lane.b32.xlu1 %v7765_v9, %s7632_s30 }
  0x8a   :  { %v121_v54 = vpop.permute.xlu1 %120  ;;  %v119_v55 = vpop.permute.xlu0 %118  ;;  %2042 = vrot.lane.b32.xlu0 %v7940_v48, %s7631_s27  ;;  %388 = vmatprep.mubr.bf16.mxu0 %v7622_v2 }
  0x8b   :  { %v139_v58 = vsel %vm130_vm0, %v117_v46, %v119_v55  ;;  %v140_v59 = vsel %vm130_vm0, %v119_v55, %v121_v54 }
  0x8c   :  { %6483 = vmatmul.mubr.msk.bf16.vlgmr.msra.gmra.mrb[4].mxu1 %vm145_vm2, %v7907_v33  ;;  %6484 = vmatprep.subr.msk.bf16.mxu0 %vm149_vm1, %v140_v59  ;;  %v175_v60 = vsel %vm149_vm1, %v139_v58, 0 }
  0x8d   :  { %357 = vmatpush1.bf16.msra.mxu0 %v175_v60  ;;  %2046 = vrot.lane.b32.xlu1 %v7952_v53, %s7631_s27 }
  0x8e   :  { %v125_v62 = vpop.permute.xlu1 %124  ;;  %v123_v63 = vpop.permute.xlu0 %122  ;;  %2044 = vrot.lane.b32.xlu0 %v7957_v56, %s7631_s27  ;;  %429 = vmatprep.mubr.bf16.mxu1 %v7622_v2 }
  0x8f   :  { %v141_v8 = vsel %vm130_vm0, %v121_v54, %v123_v63  ;;  %v142_v11 = vsel %vm130_vm0, %v123_v63, %v125_v62 }
  0x90   :  { %6485 = vmatmul.mubr.msk.bf16.vlgmr.msra.gmra.mrb[8].mxu0 %vm145_vm2, %v7907_v33  ;;  %6486 = vmatprep.subr.msk.bf16.mxu1 %vm149_vm1, %v142_v11  ;;  %v181_v14 = vsel %vm149_vm1, %v141_v8, 0 }
  0x91   :  { %398 = vmatpush1.bf16.msra.mxu1 %v181_v14  ;;  %2050 = vrot.lane.b32.xlu1 %v7970_v61, %s7631_s27 }
  0x92   :  { %v129_v20 = vpop.permute.xlu1 %128  ;;  %v127_v23 = vpop.permute.xlu0 %126  ;;  %2048 = vrot.lane.b32.xlu0 %v7975_v0, %s7631_s27  ;;  %470 = vmatprep.mubr.bf16.mxu0 %v7622_v2 }
  0x93   :  { %v143_v27 = vsel %vm130_vm0, %v125_v62, %v127_v23  ;;  %v144_v28 = vsel %vm130_vm0, %v127_v23, %v129_v20  ;;  %6490 = vmatprep.subr.msk.bf16.mxu1 %vm149_vm1, %v7749_v6 }
  0x94   :  { %6487 = vmatmul.mubr.msk.bf16.vlgmr.msra.gmra.mrb[8].mxu1 %vm145_vm2, %v7907_v33  ;;  %6488 = vmatprep.subr.msk.bf16.mxu0 %vm149_vm1, %v144_v28  ;;  %v187_v30 = vsel %vm149_vm1, %v143_v27, 0 }
  0x95   :  { %439 = vmatpush1.bf16.msra.mxu0 %v187_v30  ;;  %2054 = vrot.lane.b32.xlu1 %v7988_v17, %s7631_s27 }
  0x96   :  { %2052 = vrot.lane.b32.xlu0 %v7993_v25, %s7631_s27  ;;  %525 = vmatpush1.bf16.msra.mxu1 %v483_v29  ;;  %v816_v6 = vpop.permute.xlu1 %815  ;;  %v814_v32 = vpop.permute.xlu0 %813 }
  0x97   :  { %556 = vmatprep.mubr.bf16.mxu1 %v7622_v2  ;;  %6492 = vmatprep.subr.msk.bf16.mxu0 %vm149_vm1, %v7747_v5  ;;  %v8035_v5 = vcombine.high %v1995_v26, %v1995_v26 }
  0x98   :  { %6489 = vmatmul.mubr.msk.bf16.vlgmr.msra.gmra.mrb[12].mxu0 %vm145_vm2, %v7907_v33  ;;  %6494 = vmatprep.subr.msk.bf16.mxu1 %vm149_vm1, %v7778_v13  ;;  %v495_v33 = vsel %vm149_vm1, %v7767_v10, 0  ;;  %v8048_v13 = vld [vmem:[%s10529_s0 + $0x3c] ss:$0 sps:$4 sm:$0xff]   ;;  %s7633_s0 = smov 76  }
  0x99   :  { %2058 = vrot.lane.b32.xlu1 %v8010_v31, %s7631_s27  ;;  %566 = vmatpush1.bf16.msra.mxu0 %v489_v34 }
  0x9a   :  { %2056 = vrot.lane.b32.xlu0 %v8014_v4, %s7631_s27  ;;  %v820_v36 = vpop.permute.xlu1 %819  ;;  %v818_v37 = vpop.permute.xlu0 %817  ;;  %597 = vmatprep.mubr.bf16.mxu0 %v7622_v2 }
  0x9b   :  { %6496 = vmatprep.subr.msk.bf16.mxu0 %vm149_vm1, %v7789_v16  ;;  %v8055_v16 = vcombine.high %v1996_v35, %v1996_v35 }
  0x9c   :  { %6491 = vmatmul.mubr.msk.bf16.vlgmr.msra.gmra.mrb[12].mxu1 %vm145_vm2, %v7754_v7 }
  0x9d   :  { %2062 = vrot.lane.b32.xlu1 %v8030_v3, %s7631_s27  ;;  %607 = vmatpush1.bf16.msra.mxu1 %v495_v33 }
  0x9e   :  { %2060 = vrot.lane.b32.xlu0 %v8035_v5, %s7631_s27  ;;  %v8052_v39 = vpop.permute.xlu1 %811  ;;  %v822_v10 = vpop.permute.xlu0 %821  ;;  %638 = vmatprep.mubr.bf16.mxu1 %v7622_v2 }
  0x9f   :  { %6498 = vmatprep.subr.msk.bf16.mxu1 %vm149_vm1, %v7800_v19  ;;  %v513_v19 = vsel %vm149_vm1, %v7798_v18, 0  ;;  %v519_v18 = vsel %vm149_vm1, %v7809_v21, 0  ;;  %v847_v45 = vsel %vm843_vm3, %v820_v36, %v822_v10 }
  0xa0   :  { %6493 = vmatmul.mubr.msk.bf16.vlgmr.msra.gmra.mrb[16].mxu0 %vm145_vm2, %v7754_v7 }
  0xa1   :  { %2066 = vrot.lane.b32.xlu1 %v8048_v13, %s7631_s27  ;;  %648 = vmatpush1.bf16.msra.mxu0 %v501_v40 }
  0xa2   :  { %2064 = vrot.lane.b32.xlu0 %v8055_v16, %s7631_s27  ;;  %v826_v42 = vpop.permute.xlu1 %825  ;;  %v824_v43 = vpop.permute.xlu0 %823  ;;  %679 = vmatprep.mubr.bf16.mxu0 %v7622_v2  ;;  %s7634_s27 = smov 80  }
  0xa3   :  { %6500 = vmatprep.subr.msk.bf16.mxu0 %vm149_vm1, %v7811_v22  ;;  %v845_v22 = vsel %vm843_vm3, %v816_v6, %v818_v37  ;;  %v849_v49 = vsel %vm843_vm3, %v824_v43, %v826_v42  ;;  %v848_v52 = vsel %vm843_vm3, %v822_v10, %v824_v43 }
  0xa4   :  { %6495 = vmatmul.mubr.msk.bf16.vlgmr.msra.gmra.mrb[16].mxu1 %vm145_vm2, %v7754_v7 }
  0xa5   :  { %2433 = vrot.lane.b32.xlu1 %v7919_v38, %s7633_s0  ;;  %689 = vmatpush1.bf16.msra.mxu1 %v507_v12 }
  0xa6   :  { %2431 = vrot.lane.b32.xlu0 %v7924_v41, %s7633_s0  ;;  %v830_v44 = vpop.permute.xlu1 %829  ;;  %v828_v15 = vpop.permute.xlu0 %827  ;;  %720 = vmatprep.mubr.bf16.mxu1 %v7622_v2 }
  0xa7   :  { %6502 = vmatprep.subr.msk.bf16.mxu1 %vm149_vm1, %v7822_v24  ;;  %v844_v24 = vsel %vm843_vm3, %v814_v32, %v816_v6 }
  0xa8   :  { %6497 = vmatmul.mubr.msk.bf16.vlgmr.msra.gmra.mrb[20].mxu0 %vm145_vm2, %v7754_v7  ;;  %v862_v47 = vsel %vm149_vm1, %v844_v24, 0 }
  0xa9   :  { %730 = vmatpush1.bf16.msra.mxu0 %v513_v19  ;;  %2437 = vrot.lane.b32.xlu1 %v7957_v56, %s7633_s0  ;;  %v850_v56 = vsel %vm843_vm3, %v826_v42, %v828_v15 }
  0xaa   :  { %6504 = vmatprep.subr.msk.bf16.mxu0 %vm149_vm1, %v845_v22  ;;  %2435 = vrot.lane.b32.xlu0 %v7940_v48, %s7633_s0  ;;  %v834_v38 = vpop.permute.xlu1 %833  ;;  %v832_v41 = vpop.permute.xlu0 %831  ;;  %v846_v48 = vsel %vm843_vm3, %v818_v37, %v820_v36  ;;  %v880_v60 = vsel %vm149_vm1, %v850_v56, 0 }
  0xab   :  { %761 = vmatprep.mubr.bf16.mxu0 %v7622_v2  ;;  %v868_v51 = vsel %vm149_vm1, %v846_v48, 0  ;;  %v853_v57 = vsel %vm843_vm3, %v832_v41, %v834_v38 }
  0xac   :  { %6499 = vmatmul.mubr.msk.bf16.vlgmr.msra.gmra.mrb[20].mxu1 %vm145_vm2, %v7754_v7 }
  0xad   :  { %771 = vmatpush1.bf16.msra.mxu1 %v519_v18  ;;  %2429 = vrot.lane.b32.xlu1 %v7765_v9, %s7634_s27 }
  0xae   :  { %6506 = vmatprep.subr.msk.bf16.mxu1 %vm149_vm1, %v847_v45  ;;  %2439 = vrot.lane.b32.xlu0 %v7952_v53, %s7633_s0  ;;  %v838_v21 = vpop.permute.xlu1 %837  ;;  %v836_v46 = vpop.permute.xlu0 %835  ;;  %v851_v53 = vsel %vm843_vm3, %v828_v15, %v830_v44 }
  0xaf   :  { %802 = vmatprep.mubr.bf16.mxu1 %v7622_v2  ;;  %v855_v62 = vsel %vm843_vm3, %v836_v46, %v838_v21  ;;  %v854_v8 = vsel %vm843_vm3, %v834_v38, %v836_v46 }
  0xb0   :  { %6501 = vmatmul.mubr.msk.bf16.vlgmr.msra.gmra.mrb[24].mxu0 %vm145_vm2, %v7754_v7  ;;  %v892_v20 = vsel %vm149_vm1, %v854_v8, 0 }
  0xb1   :  { %904 = vmatpush1.bf16.msra.mxu0 %v862_v47  ;;  %2443 = vrot.lane.b32.xlu1 %v7970_v61, %s7633_s0  ;;  %v852_v61 = vsel %vm843_vm3, %v830_v44, %v832_v41 }
  0xb2   :  { %6508 = vmatprep.subr.msk.bf16.mxu0 %vm149_vm1, %v849_v49  ;;  %2441 = vrot.lane.b32.xlu0 %v7975_v0, %s7633_s0  ;;  %v842_v9 = vpop.permute.xlu1 %841  ;;  %v840_v50 = vpop.permute.xlu0 %839  ;;  %v886_v1 = vsel %vm149_vm1, %v852_v61, 0 }
  0xb3   :  { %935 = vmatprep.mubr.bf16.mxu0 %v7622_v2  ;;  %v857_v11 = vsel %vm843_vm3, %v840_v50, %v842_v9  ;;  %v856_v23 = vsel %vm843_vm3, %v838_v21, %v840_v50 }
  0xb4   :  { %6503 = vmatmul.mubr.msk.bf16.vlgmr.msra.gmra.mrb[24].mxu1 %vm145_vm2, %v7754_v7  ;;  %v874_v7 = vsel %vm149_vm1, %v848_v52, 0  ;;  %v898_v29 = vsel %vm149_vm1, %v856_v23, 0 }
  0xb5   :  { %945 = vmatpush1.bf16.msra.mxu1 %v868_v51  ;;  %2447 = vrot.lane.b32.xlu1 %v7988_v17, %s7633_s0 }
  0xb6   :  { %6510 = vmatprep.subr.msk.bf16.mxu1 %vm149_vm1, %v851_v53  ;;  %2445 = vrot.lane.b32.xlu0 %v7993_v25, %s7633_s0  ;;  %v1209_v54 = vpop.permute.xlu1 %1208  ;;  %v1207_v55 = vpop.permute.xlu0 %1206 }
  0xb7   :  { %976 = vmatprep.mubr.bf16.mxu1 %v7622_v2  ;;  %v1237_v30 = vsel %vm1236_vm4, %v1207_v55, %v1209_v54 }
  0xb8   :  { %6505 = vmatmul.mubr.msk.bf16.vlgmr.msra.gmra.mrb[28].mxu0 %vm145_vm2, %v8052_v39 }
  0xb9   :  { %986 = vmatpush1.bf16.msra.mxu0 %v874_v7  ;;  %2451 = vrot.lane.b32.xlu1 %v8010_v31, %s7633_s0 }
  0xba   :  { %6512 = vmatprep.subr.msk.bf16.mxu0 %vm149_vm1, %v853_v57  ;;  %2449 = vrot.lane.b32.xlu0 %v8014_v4, %s7633_s0  ;;  %v8135_v58 = vpop.permute.xlu1 %1204  ;;  %v1211_v59 = vpop.permute.xlu0 %1210  ;;  %v1255_v4 = vsel %vm149_vm1, %v1237_v30, 0 }
  0xbb   :  { %1017 = vmatprep.mubr.bf16.mxu0 %v7622_v2  ;;  %v1238_v25 = vsel %vm1236_vm4, %v1209_v54, %v1211_v59 }
  0xbc   :  { %6507 = vmatmul.mubr.msk.bf16.vlgmr.msra.gmra.mrb[28].mxu1 %vm145_vm2, %v8052_v39 }
  0xbd   :  { %1027 = vmatpush1.bf16.msra.mxu1 %v880_v60  ;;  %1058 = vmatprep.mubr.bf16.mxu1 %v7622_v2 }
  0xbe   :  { %6514 = vmatprep.subr.msk.bf16.mxu1 %vm149_vm1, %v855_v62  ;;  %v1215_v63 = vpop.permute.xlu1 %1214  ;;  %v1213_v0 = vpop.permute.xlu0 %1212  ;;  %2455 = vrot.lane.b32.xlu1 %v8030_v3, %s7633_s0 }
  0xbf   :  { %2453 = vrot.lane.b32.xlu0 %v8035_v5, %s7633_s0  ;;  %v1240_v28 = vsel %vm1236_vm4, %v1213_v0, %v1215_v63  ;;  %v1239_v34 = vsel %vm1236_vm4, %v1211_v59, %v1213_v0 }
  0xc0   :  { %6509 = vmatmul.mubr.msk.bf16.vlgmr.msra.gmra.mrb[32].mxu0 %vm145_vm2, %v8052_v39  ;;  %v1261_v37 = vsel %vm149_vm1, %v1239_v34, 0 }
  0xc1   :  { %1068 = vmatpush1.bf16.msra.mxu0 %v886_v1  ;;  %1099 = vmatprep.mubr.bf16.mxu0 %v7622_v2 }
  0xc2   :  { %6516 = vmatprep.subr.msk.bf16.mxu0 %vm149_vm1, %v857_v11  ;;  %v1219_v14 = vpop.permute.xlu1 %1218  ;;  %v1217_v17 = vpop.permute.xlu0 %1216  ;;  %2459 = vrot.lane.b32.xlu1 %v8048_v13, %s7633_s0 }
  0xc3   :  { %2457 = vrot.lane.b32.xlu0 %v8055_v16, %s7633_s0  ;;  %v1242_v32 = vsel %vm1236_vm4, %v1217_v17, %v1219_v14  ;;  %v1241_v5 = vsel %vm1236_vm4, %v1215_v63, %v1217_v17 }
  0xc4   :  { %6511 = vmatmul.mubr.msk.bf16.vlgmr.msra.gmra.mrb[32].mxu1 %vm145_vm2, %v8052_v39  ;;  %v1267_v16 = vsel %vm149_vm1, %v1241_v5, 0 }
  0xc5   :  { %1109 = vmatpush1.bf16.msra.mxu1 %v892_v20  ;;  %1140 = vmatprep.mubr.bf16.mxu1 %v7622_v2 }
  0xc6   :  { %6518 = vmatprep.subr.msk.bf16.mxu1 %vm149_vm1, %v1238_v25  ;;  %v1223_v26 = vpop.permute.xlu1 %1222  ;;  %v1221_v27 = vpop.permute.xlu0 %1220 }
  0xc7   :  { %v1244_v36 = vsel %vm1236_vm4, %v1221_v27, %v1223_v26 }
  0xc8   :  { %6513 = vmatmul.mubr.msk.bf16.vlgmr.msra.gmra.mrb[36].mxu0 %vm145_vm2, %v8052_v39 }
  0xc9   :  { %1150 = vmatpush1.bf16.msra.mxu0 %v898_v29  ;;  %1181 = vmatprep.mubr.bf16.mxu0 %v7622_v2 }
  0xca   :  { %6520 = vmatprep.subr.msk.bf16.mxu0 %vm149_vm1, %v1240_v28  ;;  %v1227_v31 = vpop.permute.xlu1 %1226  ;;  %v1225_v6 = vpop.permute.xlu0 %1224 }
  0xcb   :  { %v1246_v10 = vsel %vm1236_vm4, %v1225_v6, %v1227_v31  ;;  %v1245_v19 = vsel %vm1236_vm4, %v1223_v26, %v1225_v6 }
  0xcc   :  { %6515 = vmatmul.mubr.msk.bf16.vlgmr.msra.gmra.mrb[36].mxu1 %vm145_vm2, %v8052_v39  ;;  %v1279_v18 = vsel %vm149_vm1, %v1245_v19, 0 }
  0xcd   :  { %1297 = vmatpush1.bf16.msra.mxu1 %v1255_v4  ;;  %1328 = vmatprep.mubr.bf16.mxu1 %v7622_v2 }
  0xce   :  { %6522 = vmatprep.subr.msk.bf16.mxu1 %vm149_vm1, %v1242_v32  ;;  %v1231_v35 = vpop.permute.xlu1 %1230  ;;  %v1229_v3 = vpop.permute.xlu0 %1228  ;;  %v2822_v32 = vld [vmem:[%s10531_s2] sm:$0xff]  ;;  %s7635_s2 = smov 127  }
  0xcf   :  { %v1248_v43 = vsel %vm1236_vm4, %v1229_v3, %v1231_v35  ;;  %v1247_v38 = vsel %vm1236_vm4, %v1227_v31, %v1229_v3  ;;  %2825 = vperm.xlu0 %7255, %v2822_v32  }
  0xd0   :  { %6517 = vmatmul.mubr.msk.bf16.vlgmr.msra.gmra.mrb[40].mxu0 %vm145_vm2, %v8052_v39  ;;  %v1243_v39 = vsel %vm1236_vm4, %v1219_v14, %v1221_v27  ;;  %v1285_v21 = vsel %vm149_vm1, %v1247_v38, 0 }
  0xd1   :  { %1338 = vmatpush1.bf16.msra.mxu0 %v1261_v37  ;;  %1369 = vmatprep.mubr.bf16.mxu0 %v7622_v2  ;;  %v1273_v12 = vsel %vm149_vm1, %v1243_v39, 0 }
  0xd2   :  { %6524 = vmatprep.subr.msk.bf16.mxu0 %vm149_vm1, %v1244_v36  ;;  %v1235_v33 = vpop.permute.xlu1 %1234  ;;  %v1233_v13 = vpop.permute.xlu0 %1232 }
  0xd3   :  { %v1250_v22 = vsel %vm1236_vm4, %v1233_v13, %v1235_v33  ;;  %v1249_v46 = vsel %vm1236_vm4, %v1231_v35, %v1233_v13  ;;  %vm3701_vm4 = vcmask 130048  }
  0xd4   :  { %6519 = vmatmul.mubr.msk.bf16.vlgmr.msra.gmra.mrb[40].mxu1 %vm145_vm2, %v8135_v58  ;;  %v1291_v9 = vsel %vm149_vm1, %v1249_v46, 0 }
  0xd5   :  { %1379 = vmatpush1.bf16.msra.mxu1 %v1267_v16  ;;  %1410 = vmatprep.mubr.bf16.mxu1 %v7622_v2 }
  0xd6   :  { %6526 = vmatprep.subr.msk.bf16.mxu1 %vm149_vm1, %v1246_v10  ;;  %v1602_v40 = vpop.permute.xlu1 %1601  ;;  %v1600_v42 = vpop.permute.xlu0 %1599 }
  0xd7   :  { %v1630_v50 = vsel %vm145_vm2, %v1600_v42, %v1602_v40 }
  0xd8   :  { %6521 = vmatmul.mubr.msk.bf16.vlgmr.msra.gmra.mrb[44].mxu0 %vm145_vm2, %v8135_v58  ;;  %v1648_v54 = vsel %vm149_vm1, %v1630_v50, 0 }
  0xd9   :  { %1420 = vmatpush1.bf16.msra.mxu0 %v1273_v12  ;;  %1451 = vmatprep.mubr.bf16.mxu0 %v7622_v2 }
  0xda   :  { %6528 = vmatprep.subr.msk.bf16.mxu0 %vm149_vm1, %v1248_v43  ;;  %v1606_v44 = vpop.permute.xlu1 %1605  ;;  %v1604_v15 = vpop.permute.xlu0 %1603 }
  0xdb   :  { %v1631_v45 = vsel %vm145_vm2, %v1602_v40, %v1604_v15  ;;  %v1632_v55 = vsel %vm145_vm2, %v1604_v15, %v1606_v44 }
  0xdc   :  { %6523 = vmatmul.mubr.msk.bf16.vlgmr.msra.gmra.mrb[44].mxu1 %vm145_vm2, %v8135_v58  ;;  %v1654_v59 = vsel %vm149_vm1, %v1632_v55, 0 }
  0xdd   :  { %1461 = vmatpush1.bf16.msra.mxu1 %v1279_v18  ;;  %1492 = vmatprep.mubr.bf16.mxu1 %v7622_v2 }
  0xde   :  { %6530 = vmatprep.subr.msk.bf16.mxu1 %vm149_vm1, %v1250_v22  ;;  %v8209_v41 = vpop.permute.xlu1 %1597  ;;  %v1608_v24 = vpop.permute.xlu0 %1607 }
  0xdf   :  { %v1633_v49 = vsel %vm145_vm2, %v1606_v44, %v1608_v24 }
  0xe0   :  { %6525 = vmatmul.mubr.msk.bf16.vlgmr.msra.gmra.mrb[48].mxu0 %vm145_vm2, %v8135_v58 }
  0xe1   :  { %1502 = vmatpush1.bf16.msra.mxu0 %v1285_v21  ;;  %1533 = vmatprep.mubr.bf16.mxu0 %v7622_v2 }
  0xe2   :  { %6532 = vmatprep.subr.msk.bf16.mxu0 %vm149_vm1, %v1631_v45  ;;  %v1612_v47 = vpop.permute.xlu1 %1611  ;;  %v1610_v48 = vpop.permute.xlu0 %1609 }
  0xe3   :  { %v1635_v53 = vsel %vm145_vm2, %v1610_v48, %v1612_v47  ;;  %v1634_v60 = vsel %vm145_vm2, %v1608_v24, %v1610_v48 }
  0xe4   :  { %6527 = vmatmul.mubr.msk.bf16.vlgmr.msra.gmra.mrb[48].mxu1 %vm145_vm2, %v8135_v58  ;;  %v1660_v0 = vsel %vm149_vm1, %v1634_v60, 0 }
  0xe5   :  { %1543 = vmatpush1.bf16.msra.mxu1 %v1291_v9  ;;  %1574 = vmatprep.mubr.bf16.mxu1 %v7622_v2 }
  0xe6   :  { %6534 = vmatprep.subr.msk.bf16.mxu1 %vm149_vm1, %v1633_v49  ;;  %v1616_v51 = vpop.permute.xlu1 %1615  ;;  %v1614_v52 = vpop.permute.xlu0 %1613 }
  0xe7   :  { %v1637_v57 = vsel %vm145_vm2, %v1614_v52, %v1616_v51 }
  0xe8   :  { %6529 = vmatmul.mubr.msk.bf16.vlgmr.msra.gmra.mrb[52].mxu0 %vm145_vm2, %v8135_v58 }
  0xe9   :  { %1690 = vmatpush1.bf16.msra.mxu0 %v1648_v54  ;;  %1721 = vmatprep.mubr.bf16.mxu0 %v7622_v2 }
  0xea   :  { %6536 = vmatprep.subr.msk.bf16.mxu0 %vm149_vm1, %v1635_v53  ;;  %v1620_v7 = vpop.permute.xlu1 %1619  ;;  %v1618_v56 = vpop.permute.xlu0 %1617 }
  0xeb   :  { %v1639_v63 = vsel %vm145_vm2, %v1618_v56, %v1620_v7  ;;  %v1638_v17 = vsel %vm145_vm2, %v1616_v51, %v1618_v56 }
  0xec   :  { %6531 = vmatmul.mubr.msk.bf16.vlgmr.msra.gmra.mrb[52].mxu1 %vm145_vm2, %v8135_v58  ;;  %v1636_v58 = vsel %vm145_vm2, %v1612_v47, %v1614_v52  ;;  %v1672_v25 = vsel %vm149_vm1, %v1638_v17, 0 }
  0xed   :  { %1731 = vmatpush1.bf16.msra.mxu1 %v1654_v59  ;;  %1762 = vmatprep.mubr.bf16.mxu1 %v7622_v2  ;;  %v1666_v11 = vsel %vm149_vm1, %v1636_v58, 0 }
  0xee   :  { %6538 = vmatprep.subr.msk.bf16.mxu1 %vm149_vm1, %v1637_v57  ;;  %v1624_v61 = vpop.permute.xlu1 %1623 }
  0xef   :  { %v1622_v62 = vpop.permute.xlu0 %1621 }
  0xf0   :  { %6533 = vmatmul.mubr.msk.bf16.vlgmr.msra.gmra.mrb[56].mxu0 %vm145_vm2, %v8209_v41  ;;  %v1641_v8 = vsel %vm145_vm2, %v1622_v62, %v1624_v61  ;;  %v1640_v27 = vsel %vm145_vm2, %v1620_v7, %v1622_v62 }
  0xf1   :  { %1772 = vmatpush1.bf16.msra.mxu0 %v1660_v0  ;;  %1803 = vmatprep.mubr.bf16.mxu0 %v7622_v2  ;;  %v1678_v29 = vsel %vm149_vm1, %v1640_v27, 0 }
  0xf2   :  { %6540 = vmatprep.subr.msk.bf16.mxu0 %vm149_vm1, %v1639_v63 }
  0xf3   :  { %v1628_v1 = vpop.permute.xlu1 %1627 }
  0xf4   :  { %6535 = vmatmul.mubr.msk.bf16.vlgmr.msra.gmra.mrb[56].mxu1 %vm145_vm2, %v8209_v41  ;;  %v1626_v14 = vpop.permute.xlu0 %1625 }
  0xf5   :  { %1813 = vmatpush1.bf16.msra.mxu1 %v1666_v11  ;;  %1844 = vmatprep.mubr.bf16.mxu1 %v7622_v2  ;;  %v1643_v23 = vsel %vm145_vm2, %v1626_v14, %v1628_v1  ;;  %v1642_v31 = vsel %vm145_vm2, %v1624_v61, %v1626_v14 }
  0xf6   :  { %6542 = vmatprep.subr.msk.bf16.mxu1 %vm149_vm1, %v1641_v8  ;;  %v1684_v34 = vsel %vm149_vm1, %v1642_v31, 0 }
  0xf7   :  { %v2041_v20 = vpop.permute.xlu1 %2040 }
  0xf8   :  { %6537 = vmatmul.mubr.msk.bf16.vlgmr.msra.gmra.mrb[60].mxu0 %vm145_vm2, %v8209_v41  ;;  %v2039_v26 = vpop.permute.xlu0 %2038 }
  0xf9   :  { %1854 = vmatpush1.bf16.msra.mxu0 %v1672_v25  ;;  %1885 = vmatprep.mubr.bf16.mxu0 %v7622_v2  ;;  %v2069_v3 = vsel %vm2068_vm5, %v2039_v26, %v2041_v20 }
  0xfa   :  { %6544 = vmatprep.subr.msk.bf16.mxu0 %vm149_vm1, %v1643_v23  ;;  %v2087_v5 = vsel %vm149_vm1, %v2069_v3, 0 }
  0xfb   :  { %v8260_v28 = vpop.permute.xlu1 %1998 }
  0xfc   :  { %6539 = vmatmul.mubr.msk.bf16.vlgmr.msra.gmra.mrb[60].mxu1 %vm145_vm2, %v8209_v41  ;;  %v2043_v30 = vpop.permute.xlu0 %2042 }
  0xfd   :  { %1895 = vmatpush1.bf16.msra.mxu1 %v1678_v29  ;;  %v2070_v6 = vsel %vm2068_vm5, %v2041_v20, %v2043_v30  ;;  %1926 = vmatprep.mubr.bf16.mxu1 %v7622_v2 }
  0xfe   :  { %6561 = vmatprep.subr.msk.bf16.mxu1 %vm149_vm1, %v2070_v6 }
  0xff   :  { %v2047_v4 = vpop.permute.xlu1 %2046 }
 0x100   :  { %6541 = vmatmul.mubr.msk.bf16.vlgmr.msra.gmra.mrb[64].mxu0 %vm145_vm2, %v8209_v41  ;;  %v2045_v35 = vpop.permute.xlu0 %2044 }
 0x101   :  { %1936 = vmatpush1.bf16.msra.mxu0 %v1684_v34  ;;  %1967 = vmatprep.mubr.bf16.mxu0 %v7622_v2  ;;  %v2072_v36 = vsel %vm2068_vm5, %v2045_v35, %v2047_v4  ;;  %v2071_v13 = vsel %vm2068_vm5, %v2043_v30, %v2045_v35 }
 0x102   :  { %6563 = vmatprep.subr.msk.bf16.mxu0 %vm149_vm1, %v2072_v36  ;;  %v2093_v39 = vsel %vm149_vm1, %v2071_v13, 0 }
 0x103   :  { %v2051_v37 = vpop.permute.xlu1 %2050 }
 0x104   :  { %6543 = vmatmul.mubr.msk.bf16.vlgmr.msra.gmra.mrb[64].mxu1 %vm145_vm2, %v8209_v41  ;;  %v2049_v33 = vpop.permute.xlu0 %2048 }
 0x105   :  { %2129 = vmatpush1.bf16.msra.mxu1 %v2087_v5  ;;  %2160 = vmatprep.mubr.bf16.mxu1 %v7622_v2  ;;  %v2074_v10 = vsel %vm2068_vm5, %v2049_v33, %v2051_v37  ;;  %v2073_v42 = vsel %vm2068_vm5, %v2047_v4, %v2049_v33 }
 0x106   :  { %6565 = vmatprep.subr.msk.bf16.mxu1 %vm149_vm1, %v2074_v10  ;;  %v2099_v19 = vsel %vm149_vm1, %v2073_v42, 0 }
 0x107   :  { %v2055_v16 = vpop.permute.xlu1 %2054 }
 0x108   :  { %6545 = vmatmul.mubr.msk.bf16.vlgmr.msra.gmra.mrb[68].mxu0 %vm145_vm2, %v8209_v41  ;;  %v2053_v40 = vpop.permute.xlu0 %2052 }
 0x109   :  { %2170 = vmatpush1.bf16.msra.mxu0 %v2093_v39  ;;  %2201 = vmatprep.mubr.bf16.mxu0 %v7622_v2  ;;  %v2076_v43 = vsel %vm2068_vm5, %v2053_v40, %v2055_v16  ;;  %v2075_v15 = vsel %vm2068_vm5, %v2051_v37, %v2053_v40 }
 0x10a   :  { %6567 = vmatprep.subr.msk.bf16.mxu0 %vm149_vm1, %v2076_v43  ;;  %v2105_v38 = vsel %vm149_vm1, %v2075_v15, 0 }
 0x10b   :  { %v2059_v12 = vpop.permute.xlu1 %2058 }
 0x10c   :  { %6562 = vmatmul.mubr.msk.bf16.vlgmr.msra.gmra.mrb[68].mxu1 %vm145_vm2, %v8260_v28  ;;  %v2057_v44 = vpop.permute.xlu0 %2056 }
 0x10d   :  { %2211 = vmatpush1.bf16.msra.mxu1 %v2099_v19  ;;  %2242 = vmatprep.mubr.bf16.mxu1 %v7622_v2  ;;  %v2078_v22 = vsel %vm2068_vm5, %v2057_v44, %v2059_v12  ;;  %v2077_v24 = vsel %vm2068_vm5, %v2055_v16, %v2057_v44 }
 0x10e   :  { %6569 = vmatprep.subr.msk.bf16.mxu1 %vm149_vm1, %v2078_v22  ;;  %v2111_v46 = vsel %vm149_vm1, %v2077_v24, 0 }
 0x10f   :  { %v2063_v18 = vpop.permute.xlu1 %2062 }
 0x110   :  { %6564 = vmatmul.mubr.msk.bf16.vlgmr.msra.gmra.mrb[72].mxu0 %vm145_vm2, %v8260_v28  ;;  %v2061_v41 = vpop.permute.xlu0 %2060 }
 0x111   :  { %2252 = vmatpush1.bf16.msra.mxu0 %v2105_v38  ;;  %2283 = vmatprep.mubr.bf16.mxu0 %v7622_v2  ;;  %v2080_v45 = vsel %vm2068_vm5, %v2061_v41, %v2063_v18  ;;  %v2079_v48 = vsel %vm2068_vm5, %v2059_v12, %v2061_v41 }
 0x112   :  { %6571 = vmatprep.subr.msk.bf16.mxu0 %vm149_vm1, %v2080_v45  ;;  %v2117_v50 = vsel %vm149_vm1, %v2079_v48, 0 }
 0x113   :  { %v2067_v21 = vpop.permute.xlu1 %2066 }
 0x114   :  { %6566 = vmatmul.mubr.msk.bf16.vlgmr.msra.gmra.mrb[72].mxu1 %vm145_vm2, %v8260_v28  ;;  %v2065_v47 = vpop.permute.xlu0 %2064 }
 0x115   :  { %2293 = vmatpush1.bf16.msra.mxu1 %v2111_v46  ;;  %2324 = vmatprep.mubr.bf16.mxu1 %v7622_v2  ;;  %v2082_v49 = vsel %vm2068_vm5, %v2065_v47, %v2067_v21  ;;  %v2081_v52 = vsel %vm2068_vm5, %v2063_v18, %v2065_v47  ;;  %vm3759_vm5 = vcmask 97280  }
 0x116   :  { %6573 = vmatprep.subr.msk.bf16.mxu1 %vm149_vm1, %v2082_v49  ;;  %v2123_v55 = vsel %vm149_vm1, %v2081_v52, 0 }
 0x117   :  { %v2434_v9 = vpop.permute.xlu1 %2433 }
 0x118   :  { %6568 = vmatmul.mubr.msk.bf16.vlgmr.msra.gmra.mrb[76].mxu0 %vm145_vm2, %v8260_v28  ;;  %v2432_v51 = vpop.permute.xlu0 %2431 }
 0x119   :  { %2334 = vmatpush1.bf16.msra.mxu0 %v2117_v50  ;;  %2365 = vmatprep.mubr.bf16.mxu0 %v7622_v2  ;;  %v2462_v53 = vsel %vm2461_vm6, %v2432_v51, %v2434_v9 }
 0x11a   :  { %v2480_v57 = vsel %vm149_vm1, %v2462_v53, 0 }
 0x11b   :  { %v2438_v54 = vpop.permute.xlu1 %2437 }
 0x11c   :  { %6570 = vmatmul.mubr.msk.bf16.vlgmr.msra.gmra.mrb[76].mxu1 %vm145_vm2, %v8260_v28  ;;  %v2436_v7 = vpop.permute.xlu0 %2435 }
 0x11d   :  { %2375 = vmatpush1.bf16.msra.mxu1 %v2123_v55  ;;  %v2463_v56 = vsel %vm2461_vm6, %v2434_v9, %v2436_v7  ;;  %2406 = vmatprep.mubr.bf16.mxu1 %v7622_v2  ;;  %v2464_v59 = vsel %vm2461_vm6, %v2436_v7, %v2438_v54 }
 0x11e   :  { %6575 = vmatprep.subr.msk.bf16.mxu0 %vm149_vm1, %v2463_v56  ;;  %v2486_v63 = vsel %vm149_vm1, %v2464_v59, 0 }
 0x11f   :  { %v2430_v60 = vpop.permute.xlu1 %2429 }
 0x120   :  { %6572 = vmatmul.mubr.msk.bf16.vlgmr.msra.gmra.mrb[80].mxu0 %vm145_vm2, %v8260_v28  ;;  %v2440_v61 = vpop.permute.xlu0 %2439 }
 0x121   :  { %2522 = vmatpush1.bf16.msra.mxu0 %v2480_v57  ;;  %v2465_v62 = vsel %vm2461_vm6, %v2438_v54, %v2440_v61  ;;  %2553 = vmatprep.mubr.bf16.mxu0 %v7622_v2 }
 0x122   :  { %6577 = vmatprep.subr.msk.bf16.mxu1 %vm149_vm1, %v2465_v62 }
 0x123   :  { %v2444_v0 = vpop.permute.xlu1 %2443 }
 0x124   :  { %6574 = vmatmul.mubr.msk.bf16.vlgmr.msra.gmra.mrb[80].mxu1 %vm145_vm2, %v8260_v28  ;;  %v2442_v58 = vpop.permute.xlu0 %2441 }
 0x125   :  { %2563 = vmatpush1.bf16.msra.mxu1 %v2486_v63  ;;  %v2466_v1 = vsel %vm2461_vm6, %v2440_v61, %v2442_v58  ;;  %v2467_v8 = vsel %vm2461_vm6, %v2442_v58, %v2444_v0  ;;  %2594 = vmatprep.mubr.bf16.mxu1 %v7622_v2 }
 0x126   :  { %6579 = vmatprep.subr.msk.bf16.mxu0 %vm149_vm1, %v2467_v8  ;;  %v2492_v11 = vsel %vm149_vm1, %v2466_v1, 0 }
 0x127   :  { %v2448_v14 = vpop.permute.xlu1 %2447 }
 0x128   :  { %6576 = vmatmul.mubr.msk.bf16.vlgmr.msra.gmra.mrb[84].mxu0 %vm145_vm2, %v2430_v60  ;;  %v2446_v17 = vpop.permute.xlu0 %2445 }
 0x129   :  { %2604 = vmatpush1.bf16.msra.mxu0 %v2492_v11  ;;  %v2468_v20 = vsel %vm2461_vm6, %v2444_v0, %v2446_v17  ;;  %v2469_v23 = vsel %vm2461_vm6, %v2446_v17, %v2448_v14  ;;  %2635 = vmatprep.mubr.bf16.mxu0 %v7622_v2 }
 0x12a   :  { %6581 = vmatprep.subr.msk.bf16.mxu1 %vm149_vm1, %v2469_v23  ;;  %v2498_v25 = vsel %vm149_vm1, %v2468_v20, 0 }
 0x12b   :  { %v2452_v26 = vpop.permute.xlu1 %2451 }
 0x12c   :  { %6578 = vmatmul.mubr.msk.bf16.vlgmr.msra.gmra.mrb[84].mxu1 %vm145_vm2, %v2430_v60  ;;  %v2450_v27 = vpop.permute.xlu0 %2449 }
 0x12d   :  { %2645 = vmatpush1.bf16.msra.mxu1 %v2498_v25  ;;  %v2470_v28 = vsel %vm2461_vm6, %v2448_v14, %v2450_v27  ;;  %v2471_v29 = vsel %vm2461_vm6, %v2450_v27, %v2452_v26  ;;  %2676 = vmatprep.mubr.bf16.mxu1 %v7622_v2 }
 0x12e   :  { %6583 = vmatprep.subr.msk.bf16.mxu0 %vm149_vm1, %v2471_v29  ;;  %v2504_v30 = vsel %vm149_vm1, %v2470_v28, 0 }
 0x130   :  { %6580 = vmatmul.mubr.msk.bf16.vlgmr.msra.gmra.mrb[88].mxu0 %vm145_vm2, %v2430_v60  ;;  %v2456_v31 = vpop.permute.xlu1 %2455 }
 0x131   :  { %2686 = vmatpush1.bf16.msra.mxu0 %v2504_v30  ;;  %v2454_v6 = vpop.permute.xlu0 %2453  ;;  %2717 = vmatprep.mubr.bf16.mxu0 %v7622_v2 }
 0x132   :  { %v2472_v32 = vsel %vm2461_vm6, %v2452_v26, %v2454_v6  ;;  %v2473_v4 = vsel %vm2461_vm6, %v2454_v6, %v2456_v31 }
 0x133   :  { %6585 = vmatprep.subr.msk.bf16.mxu1 %vm149_vm1, %v2473_v4  ;;  %v2510_v34 = vsel %vm149_vm1, %v2472_v32, 0 }
 0x134   :  { %6582 = vmatmul.mubr.msk.bf16.vlgmr.msra.gmra.mrb[88].mxu1 %vm145_vm2, %v2430_v60  ;;  %v2460_v35 = vpop.permute.xlu1 %2459 }
 0x135   :  { %2727 = vmatpush1.bf16.msra.mxu1 %v2510_v34  ;;  %v2458_v3 = vpop.permute.xlu0 %2457  ;;  %2758 = vmatprep.mubr.bf16.mxu1 %v7622_v2 }
 0x136   :  { %v2474_v36 = vsel %vm2461_vm6, %v2456_v31, %v2458_v3  ;;  %v2475_v37 = vsel %vm2461_vm6, %v2458_v3, %v2460_v35 }
 0x137   :  { %6587 = vmatprep.subr.msk.bf16.mxu0 %vm149_vm1, %v2475_v37  ;;  %v2516_v5 = vsel %vm149_vm1, %v2474_v36, 0  ;;  %vm3643_vm1 = vcmask 572416  }
 0x138   :  { %6584 = vmatmul.mubr.msk.bf16.vlgmr.msra.gmra.mrb[92].mxu0 %vm145_vm2, %v2430_v60 }
 0x139   :  { %2768 = vmatpush1.bf16.msra.mxu0 %v2516_v5  ;;  %2799 = vmatprep.mubr.bf16.mxu0 %v7622_v2 }
 0x13c   :  { %6586 = vmatmul.mubr.msk.bf16.vlgmr.msra.gmra.mrb[92].mxu1 %vm145_vm2, %v2430_v60 }
 0x140   :  { %6588 = vmatmul.mubr.msk.bf16.vlgmr.msra.gmra.mrb[96].mxu0 %vm145_vm2, %v2430_v60 }
 0x153   :  { %v226_v33 = vpop.f32.mrb[0].mxu0 }
 0x154   :  { %v228_v13 = vpop.f32.mrb[1].mxu0 }
 0x155   :  { %v230_v10 = vpop.f32.mrb[2].mxu0 }
 0x156   :  { %v231_v16 = vpop.f32.mrb[3].mxu0 }
 0x157   :  { %v267_v39 = vpop.f32.mrb[0].mxu1 }
 0x158   :  { %v269_v40 = vpop.f32.mrb[1].mxu1 }
 0x159   :  { %v271_v42 = vpop.f32.mrb[2].mxu1 }
 0x15a   :  { %v272_v43 = vpop.f32.mrb[3].mxu1 }
 0x15b   :  { %v308_v12 = vpop.f32.mrb[4].mxu0 }
 0x15c   :  { %v310_v19 = vpop.f32.mrb[5].mxu0 }
 0x15d   :  { %v312_v44 = vpop.f32.mrb[6].mxu0 }
 0x15e   :  { %v313_v15 = vpop.f32.mrb[7].mxu0 }
 0x15f   :  { %v349_v22 = vpop.f32.mrb[4].mxu1 }
 0x160   :  { %v351_v18 = vpop.f32.mrb[5].mxu1 }
 0x161   :  { %v353_v38 = vpop.f32.mrb[6].mxu1 }
 0x162   :  { %v354_v41 = vpop.f32.mrb[7].mxu1 }
 0x163   :  { %v390_v24 = vpop.f32.mrb[8].mxu0 }
 0x164   :  { %v392_v45 = vpop.f32.mrb[9].mxu0 }
 0x165   :  { %v394_v21 = vpop.f32.mrb[10].mxu0 }
 0x166   :  { %v395_v46 = vpop.f32.mrb[11].mxu0 }
 0x167   :  { %v431_v47 = vpop.f32.mrb[8].mxu1 }
 0x168   :  { %v433_v48 = vpop.f32.mrb[9].mxu1 }
 0x169   :  { %v435_v49 = vpop.f32.mrb[10].mxu1 }
 0x16a   :  { %v436_v9 = vpop.f32.mrb[11].mxu1 }
 0x16b   :  { %v472_v50 = vpop.f32.mrb[12].mxu0 }
 0x16c   :  { %v474_v51 = vpop.f32.mrb[13].mxu0 }
 0x16d   :  { %v476_v52 = vpop.f32.mrb[14].mxu0 }
 0x16e   :  { %v477_v53 = vpop.f32.mrb[15].mxu0 }
 0x16f   :  { %v558_v54 = vpop.f32.mrb[12].mxu1 }
 0x170   :  { %v559_v55 = vadd.f32 %v558_v54, %v226_v33  ;;  %v560_v7 = vpop.f32.mrb[13].mxu1 }
 0x171   :  { %v561_v56 = vadd.f32 %v560_v7, %v228_v13  ;;  %v562_v57 = vpop.f32.mrb[14].mxu1 }
 0x172   :  { %v563_v59 = vpop.f32.mrb[15].mxu1 }
 0x173   :  { %v599_v60 = vpop.f32.mrb[16].mxu0 }
 0x174   :  { %v600_v61 = vadd.f32 %v599_v60, %v267_v39  ;;  %v601_v62 = vpop.f32.mrb[17].mxu0 }
 0x175   :  { %v602_v63 = vadd.f32 %v601_v62, %v269_v40  ;;  %v603_v0 = vpop.f32.mrb[18].mxu0 }
 0x176   :  { %v604_v58 = vpop.f32.mrb[19].mxu0 }
 0x177   :  { %v640_v1 = vpop.f32.mrb[16].mxu1 }
 0x178   :  { %v641_v8 = vadd.f32 %v640_v1, %v308_v12  ;;  %v642_v11 = vpop.f32.mrb[17].mxu1 }
 0x179   :  { %v643_v14 = vadd.f32 %v642_v11, %v310_v19  ;;  %v644_v17 = vpop.f32.mrb[18].mxu1 }
 0x17a   :  { %v645_v20 = vpop.f32.mrb[19].mxu1 }
 0x17b   :  { %v681_v23 = vpop.f32.mrb[20].mxu0 }
 0x17c   :  { %v682_v25 = vadd.f32 %v681_v23, %v349_v22  ;;  %v683_v26 = vpop.f32.mrb[21].mxu0 }
 0x17d   :  { %v684_v27 = vadd.f32 %v683_v26, %v351_v18  ;;  %v685_v28 = vpop.f32.mrb[22].mxu0 }
 0x17e   :  { %v686_v29 = vpop.f32.mrb[23].mxu0 }
 0x17f   :  { %v722_v30 = vpop.f32.mrb[20].mxu1 }
 0x180   :  { %v723_v31 = vadd.f32 %v722_v30, %v390_v24  ;;  %v724_v6 = vpop.f32.mrb[21].mxu1 }
 0x181   :  { %v725_v32 = vadd.f32 %v724_v6, %v392_v45  ;;  %v726_v4 = vpop.f32.mrb[22].mxu1 }
 0x182   :  { %v727_v34 = vpop.f32.mrb[23].mxu1 }
 0x183   :  { %v763_v35 = vpop.f32.mrb[24].mxu0 }
 0x184   :  { %v764_v3 = vadd.f32 %v763_v35, %v431_v47  ;;  %v765_v36 = vpop.f32.mrb[25].mxu0 }
 0x185   :  { %v766_v37 = vadd.f32 %v765_v36, %v433_v48  ;;  %v767_v5 = vpop.f32.mrb[26].mxu0 }
 0x186   :  { %v768_v33 = vpop.f32.mrb[27].mxu0 }
 0x187   :  { %v804_v13 = vpop.f32.mrb[24].mxu1 }
 0x188   :  { %v805_v10 = vadd.f32 %v804_v13, %v472_v50  ;;  %v806_v16 = vpop.f32.mrb[25].mxu1 }
 0x189   :  { %v807_v39 = vadd.f32 %v806_v16, %v474_v51  ;;  %v808_v40 = vpop.f32.mrb[26].mxu1 }
 0x18a   :  { %v809_v42 = vpop.f32.mrb[27].mxu1 }
 0x18b   :  { %v937_v43 = vpop.f32.mrb[28].mxu0 }
 0x18c   :  { %v1190_v12 = vadd.f32 %v937_v43, %v559_v55  ;;  %v939_v19 = vpop.f32.mrb[29].mxu0 }
 0x18d   :  { %v1191_v44 = vadd.f32 %v939_v19, %v561_v56  ;;  %v941_v15 = vpop.f32.mrb[30].mxu0 }
 0x18e   :  { %v942_v22 = vpop.f32.mrb[31].mxu0 }
 0x18f   :  { %v978_v18 = vpop.f32.mrb[28].mxu1 }
 0x190   :  { %v1192_v38 = vadd.f32 %v978_v18, %v600_v61  ;;  %v980_v41 = vpop.f32.mrb[29].mxu1 }
 0x191   :  { %v1193_v24 = vadd.f32 %v980_v41, %v602_v63  ;;  %v982_v45 = vpop.f32.mrb[30].mxu1 }
 0x192   :  { %v983_v21 = vpop.f32.mrb[31].mxu1 }
 0x193   :  { %v1019_v46 = vpop.f32.mrb[32].mxu0 }
 0x194   :  { %v1194_v47 = vadd.f32 %v1019_v46, %v641_v8  ;;  %v1021_v48 = vpop.f32.mrb[33].mxu0 }
 0x195   :  { %v1195_v49 = vadd.f32 %v1021_v48, %v643_v14  ;;  %v1023_v9 = vpop.f32.mrb[34].mxu0 }
 0x196   :  { %v1024_v50 = vpop.f32.mrb[35].mxu0 }
 0x197   :  { %v1060_v51 = vpop.f32.mrb[32].mxu1 }
 0x198   :  { %v1196_v52 = vadd.f32 %v1060_v51, %v682_v25  ;;  %v1062_v53 = vpop.f32.mrb[33].mxu1 }
 0x199   :  { %v1197_v54 = vadd.f32 %v1062_v53, %v684_v27  ;;  %v1064_v55 = vpop.f32.mrb[34].mxu1 }
 0x19a   :  { %v1065_v7 = vpop.f32.mrb[35].mxu1 }
 0x19b   :  { %v1101_v56 = vpop.f32.mrb[36].mxu0 }
 0x19c   :  { %v1198_v57 = vadd.f32 %v1101_v56, %v723_v31  ;;  %v1103_v59 = vpop.f32.mrb[37].mxu0 }
 0x19d   :  { %v1199_v60 = vadd.f32 %v1103_v59, %v725_v32  ;;  %v1105_v61 = vpop.f32.mrb[38].mxu0 }
 0x19e   :  { %v1106_v62 = vpop.f32.mrb[39].mxu0 }
 0x19f   :  { %v1142_v63 = vpop.f32.mrb[36].mxu1 }
 0x1a0   :  { %v1200_v0 = vadd.f32 %v1142_v63, %v764_v3  ;;  %v1144_v58 = vpop.f32.mrb[37].mxu1 }
 0x1a1   :  { %v1201_v1 = vadd.f32 %v1144_v58, %v766_v37  ;;  %v1146_v8 = vpop.f32.mrb[38].mxu1 }
 0x1a2   :  { %v1147_v11 = vpop.f32.mrb[39].mxu1 }
 0x1a3   :  { %v1183_v14 = vpop.f32.mrb[40].mxu0 }
 0x1a4   :  { %v1202_v17 = vadd.f32 %v1183_v14, %v805_v10  ;;  %v1185_v20 = vpop.f32.mrb[41].mxu0 }
 0x1a5   :  { %v1203_v23 = vadd.f32 %v1185_v20, %v807_v39  ;;  %v1187_v25 = vpop.f32.mrb[42].mxu0 }
 0x1a6   :  { %v1188_v26 = vpop.f32.mrb[43].mxu0 }
 0x1a7   :  { %v1330_v27 = vpop.f32.mrb[40].mxu1 }
 0x1a8   :  { %v1583_v28 = vadd.f32 %v1330_v27, %v1190_v12  ;;  %v1332_v29 = vpop.f32.mrb[41].mxu1 }
 0x1a9   :  { %v1584_v30 = vadd.f32 %v1332_v29, %v1191_v44  ;;  %v1334_v31 = vpop.f32.mrb[42].mxu1 }
 0x1aa   :  { %v1335_v6 = vpop.f32.mrb[43].mxu1 }
 0x1ab   :  { %v1371_v32 = vpop.f32.mrb[44].mxu0 }
 0x1ac   :  { %v1585_v4 = vadd.f32 %v1371_v32, %v1192_v38  ;;  %v1373_v34 = vpop.f32.mrb[45].mxu0 }
 0x1ad   :  { %v1586_v35 = vadd.f32 %v1373_v34, %v1193_v24  ;;  %v1375_v3 = vpop.f32.mrb[46].mxu0 }
 0x1ae   :  { %v1376_v36 = vpop.f32.mrb[47].mxu0 }
 0x1af   :  { %v1412_v37 = vpop.f32.mrb[44].mxu1 }
 0x1b0   :  { %v1587_v5 = vadd.f32 %v1412_v37, %v1194_v47  ;;  %v1414_v33 = vpop.f32.mrb[45].mxu1 }
 0x1b1   :  { %v1588_v13 = vadd.f32 %v1414_v33, %v1195_v49  ;;  %v1416_v10 = vpop.f32.mrb[46].mxu1 }
 0x1b2   :  { %v1417_v16 = vpop.f32.mrb[47].mxu1 }
 0x1b3   :  { %v1453_v39 = vpop.f32.mrb[48].mxu0 }
 0x1b4   :  { %v1589_v40 = vadd.f32 %v1453_v39, %v1196_v52  ;;  %v1455_v42 = vpop.f32.mrb[49].mxu0 }
 0x1b5   :  { %v1590_v43 = vadd.f32 %v1455_v42, %v1197_v54  ;;  %v1457_v12 = vpop.f32.mrb[50].mxu0 }
 0x1b6   :  { %v1458_v19 = vpop.f32.mrb[51].mxu0 }
 0x1b7   :  { %v1494_v44 = vpop.f32.mrb[48].mxu1 }
 0x1b8   :  { %v1591_v15 = vadd.f32 %v1494_v44, %v1198_v57  ;;  %v1496_v22 = vpop.f32.mrb[49].mxu1 }
 0x1b9   :  { %v1592_v18 = vadd.f32 %v1496_v22, %v1199_v60  ;;  %v1498_v38 = vpop.f32.mrb[50].mxu1 }
 0x1ba   :  { %v1499_v41 = vpop.f32.mrb[51].mxu1 }
 0x1bb   :  { %v1535_v24 = vpop.f32.mrb[52].mxu0 }
 0x1bc   :  { %v1593_v45 = vadd.f32 %v1535_v24, %v1200_v0  ;;  %v1537_v21 = vpop.f32.mrb[53].mxu0 }
 0x1bd   :  { %v1594_v46 = vadd.f32 %v1537_v21, %v1201_v1  ;;  %v1539_v47 = vpop.f32.mrb[54].mxu0 }
 0x1be   :  { %v1540_v48 = vpop.f32.mrb[55].mxu0 }
 0x1bf   :  { %v1576_v49 = vpop.f32.mrb[52].mxu1 }
 0x1c0   :  { %v1595_v9 = vadd.f32 %v1576_v49, %v1202_v17  ;;  %v1578_v50 = vpop.f32.mrb[53].mxu1 }
 0x1c1   :  { %v1596_v51 = vadd.f32 %v1578_v50, %v1203_v23  ;;  %v1580_v52 = vpop.f32.mrb[54].mxu1 }
 0x1c2   :  { %v1581_v53 = vpop.f32.mrb[55].mxu1 }
 0x1c3   :  { %v1723_v54 = vpop.f32.mrb[56].mxu0 }
 0x1c4   :  { %v1976_v55 = vadd.f32 %v1723_v54, %v1583_v28  ;;  %v1725_v7 = vpop.f32.mrb[57].mxu0 }
 0x1c5   :  { %v1977_v56 = vadd.f32 %v1725_v7, %v1584_v30  ;;  %v1727_v57 = vpop.f32.mrb[58].mxu0 }
 0x1c6   :  { %v1728_v59 = vpop.f32.mrb[59].mxu0 }
 0x1c7   :  { %v1764_v60 = vpop.f32.mrb[56].mxu1 }
 0x1c8   :  { %v1978_v61 = vadd.f32 %v1764_v60, %v1585_v4  ;;  %v1766_v62 = vpop.f32.mrb[57].mxu1 }
 0x1c9   :  { %v1979_v63 = vadd.f32 %v1766_v62, %v1586_v35  ;;  %v1768_v0 = vpop.f32.mrb[58].mxu1 }
 0x1ca   :  { %v1769_v58 = vpop.f32.mrb[59].mxu1 }
 0x1cb   :  { %v1805_v1 = vpop.f32.mrb[60].mxu0 }
 0x1cc   :  { %v1980_v8 = vadd.f32 %v1805_v1, %v1587_v5  ;;  %v1807_v11 = vpop.f32.mrb[61].mxu0 }
 0x1cd   :  { %v1981_v14 = vadd.f32 %v1807_v11, %v1588_v13  ;;  %v1809_v17 = vpop.f32.mrb[62].mxu0 }
 0x1ce   :  { %v1810_v20 = vpop.f32.mrb[63].mxu0 }
 0x1cf   :  { %v1846_v23 = vpop.f32.mrb[60].mxu1 }
 0x1d0   :  { %v1982_v25 = vadd.f32 %v1846_v23, %v1589_v40  ;;  %v1848_v26 = vpop.f32.mrb[61].mxu1 }
 0x1d1   :  { %v1983_v27 = vadd.f32 %v1848_v26, %v1590_v43  ;;  %v1850_v28 = vpop.f32.mrb[62].mxu1 }
 0x1d2   :  { %v1851_v29 = vpop.f32.mrb[63].mxu1 }
 0x1d3   :  { %v1887_v30 = vpop.f32.mrb[64].mxu0 }
 0x1d4   :  { %v1984_v31 = vadd.f32 %v1887_v30, %v1591_v15  ;;  %v1889_v6 = vpop.f32.mrb[65].mxu0 }
 0x1d5   :  { %v1985_v32 = vadd.f32 %v1889_v6, %v1592_v18  ;;  %v1891_v4 = vpop.f32.mrb[66].mxu0 }
 0x1d6   :  { %v1892_v34 = vpop.f32.mrb[67].mxu0 }
 0x1d7   :  { %v1928_v35 = vpop.f32.mrb[64].mxu1 }
 0x1d8   :  { %v1986_v3 = vadd.f32 %v1928_v35, %v1593_v45  ;;  %v1930_v36 = vpop.f32.mrb[65].mxu1 }
 0x1d9   :  { %v1987_v37 = vadd.f32 %v1930_v36, %v1594_v46  ;;  %v1932_v5 = vpop.f32.mrb[66].mxu1 }
 0x1da   :  { %v1933_v33 = vpop.f32.mrb[67].mxu1 }
 0x1db   :  { %v1969_v13 = vpop.f32.mrb[68].mxu0 }
 0x1dc   :  { %v1988_v10 = vadd.f32 %v1969_v13, %v1595_v9  ;;  %v1971_v16 = vpop.f32.mrb[69].mxu0 }
 0x1dd   :  { %v1989_v39 = vadd.f32 %v1971_v16, %v1596_v51  ;;  %v1973_v40 = vpop.f32.mrb[70].mxu0 }
 0x1de   :  { %v1974_v42 = vpop.f32.mrb[71].mxu0 }
 0x1df   :  { %v2162_v43 = vpop.f32.mrb[68].mxu1 }
 0x1e0   :  { %v2415_v12 = vadd.f32 %v2162_v43, %v1976_v55  ;;  %v2164_v19 = vpop.f32.mrb[69].mxu1 }
 0x1e1   :  { %v2416_v44 = vadd.f32 %v2164_v19, %v1977_v56  ;;  %v2166_v15 = vpop.f32.mrb[70].mxu1 }
 0x1e2   :  { %v2167_v22 = vpop.f32.mrb[71].mxu1 }
 0x1e3   :  { %v2203_v18 = vpop.f32.mrb[72].mxu0 }
 0x1e4   :  { %v2417_v38 = vadd.f32 %v2203_v18, %v1978_v61  ;;  %v2205_v41 = vpop.f32.mrb[73].mxu0 }
 0x1e5   :  { %v2418_v24 = vadd.f32 %v2205_v41, %v1979_v63  ;;  %v2207_v45 = vpop.f32.mrb[74].mxu0 }
 0x1e6   :  { %v2208_v21 = vpop.f32.mrb[75].mxu0 }
 0x1e7   :  { %v2244_v46 = vpop.f32.mrb[72].mxu1 }
 0x1e8   :  { %v2419_v47 = vadd.f32 %v2244_v46, %v1980_v8  ;;  %v2246_v48 = vpop.f32.mrb[73].mxu1 }
 0x1e9   :  { %v2420_v49 = vadd.f32 %v2246_v48, %v1981_v14  ;;  %v2248_v9 = vpop.f32.mrb[74].mxu1 }
 0x1ea   :  { %v2249_v50 = vpop.f32.mrb[75].mxu1 }
 0x1eb   :  { %v2285_v51 = vpop.f32.mrb[76].mxu0 }
 0x1ec   :  { %v2421_v52 = vadd.f32 %v2285_v51, %v1982_v25  ;;  %v2287_v53 = vpop.f32.mrb[77].mxu0 }
 0x1ed   :  { %v2422_v54 = vadd.f32 %v2287_v53, %v1983_v27  ;;  %v2289_v55 = vpop.f32.mrb[78].mxu0 }
 0x1ee   :  { %v2290_v7 = vpop.f32.mrb[79].mxu0 }
 0x1ef   :  { %v2326_v56 = vpop.f32.mrb[76].mxu1 }
 0x1f0   :  { %v2423_v57 = vadd.f32 %v2326_v56, %v1984_v31  ;;  %v2328_v59 = vpop.f32.mrb[77].mxu1 }
 0x1f1   :  { %v2424_v60 = vadd.f32 %v2328_v59, %v1985_v32  ;;  %v2330_v61 = vpop.f32.mrb[78].mxu1  ;;  %v8369_v32 = vpop.permute.xlu0 %2825 }
 0x1f2   :  { %v2331_v62 = vpop.f32.mrb[79].mxu1 }
 0x1f3   :  { %v2367_v63 = vpop.f32.mrb[80].mxu0 }
 0x1f4   :  { %v2425_v0 = vadd.f32 %v2367_v63, %v1986_v3  ;;  %v2369_v58 = vpop.f32.mrb[81].mxu0 }
 0x1f5   :  { %v2426_v1 = vadd.f32 %v2369_v58, %v1987_v37  ;;  %v2371_v8 = vpop.f32.mrb[82].mxu0 }
 0x1f6   :  { %v2372_v11 = vpop.f32.mrb[83].mxu0 }
 0x1f7   :  { %v2408_v14 = vpop.f32.mrb[80].mxu1 }
 0x1f8   :  { %v2427_v17 = vadd.f32 %v2408_v14, %v1988_v10  ;;  %v2410_v20 = vpop.f32.mrb[81].mxu1 }
 0x1f9   :  { %v2428_v23 = vadd.f32 %v2410_v20, %v1989_v39  ;;  %v2412_v25 = vpop.f32.mrb[82].mxu1 }
 0x1fa   :  { %v2413_v26 = vpop.f32.mrb[83].mxu1 }
 0x1fb   :  { %v2555_v27 = vpop.f32.mrb[84].mxu0 }
 0x1fc   :  { %v2808_v28 = vadd.f32 %v2555_v27, %v2415_v12  ;;  %v2557_v29 = vpop.f32.mrb[85].mxu0 }
 0x1fd   :  { %v2809_v30 = vadd.f32 %v2557_v29, %v2416_v44  ;;  %v2559_v31 = vpop.f32.mrb[86].mxu0 }
 0x1fe   :  { %v2560_v6 = vpop.f32.mrb[87].mxu0  ;;  %v2828_v46 = vadd.f32 %v8369_v32, %v2808_v28 }
 0x1ff   :  { %v2596_v4 = vpop.f32.mrb[84].mxu1  ;;  %v2829_v33 = vadd.f32 %v8369_v32, %v2809_v30 }
 0x200   :  { %v2810_v34 = vadd.f32 %v2596_v4, %v2417_v38  ;;  %v2598_v35 = vpop.f32.mrb[85].mxu1 }
 0x201   :  { %v2811_v3 = vadd.f32 %v2598_v35, %v2418_v24  ;;  %v2600_v36 = vpop.f32.mrb[86].mxu1 }
 0x202   :  { %v2830_v37 = vadd.f32 %v8369_v32, %v2810_v34  ;;  %v2601_v5 = vpop.f32.mrb[87].mxu1 }
 0x203   :  { %v2637_v13 = vpop.f32.mrb[88].mxu0  ;;  %v2831_v43 = vadd.f32 %v8369_v32, %v2811_v3 }
 0x204   :  { %v2812_v10 = vadd.f32 %v2637_v13, %v2419_v47  ;;  %v2639_v16 = vpop.f32.mrb[89].mxu0  ;;  %v7256_v39 = vpack.i.bf16 %v2830_v37, %v2829_v33 }
 0x205   :  { %v2813_v40 = vadd.f32 %v2639_v16, %v2420_v49  ;;  %v2641_v42 = vpop.f32.mrb[90].mxu0 }
 0x206   :  { %v2832_v12 = vadd.f32 %v8369_v32, %v2812_v10  ;;  %v2642_v19 = vpop.f32.mrb[91].mxu0  ;;  %7257 = vrot.lane.b32.xlu1 %v7256_v39, %s7635_s2 }
 0x207   :  { %v2678_v44 = vpop.f32.mrb[88].mxu1  ;;  %v2833_v24 = vadd.f32 %v8369_v32, %v2813_v40 }
 0x208   :  { %v7261_v15 = vpack.i.bf16 %v2832_v12, %v2831_v43  ;;  %v2814_v22 = vadd.f32 %v2678_v44, %v2421_v52  ;;  %v2680_v18 = vpop.f32.mrb[89].mxu1 }
 0x209   :  { %v2815_v38 = vadd.f32 %v2680_v18, %v2422_v54  ;;  %v2682_v41 = vpop.f32.mrb[90].mxu1 }
 0x20a   :  { %v2834_v45 = vadd.f32 %v8369_v32, %v2814_v22  ;;  %v2683_v21 = vpop.f32.mrb[91].mxu1  ;;  %7262 = vrot.lane.b32.xlu1 %v7261_v15, %s7635_s2 }
 0x20b   :  { %v2835_v47 = vadd.f32 %v8369_v32, %v2815_v38  ;;  %v2719_v48 = vpop.f32.mrb[92].mxu0 }
 0x20c   :  { %v7266_v49 = vpack.i.bf16 %v2834_v45, %v2833_v24  ;;  %v2816_v9 = vadd.f32 %v2719_v48, %v2423_v57  ;;  %v2721_v50 = vpop.f32.mrb[93].mxu0 }
 0x20d   :  { %v7271_v51 = vpack.i.bf16 %v2828_v46, %v2835_v47  ;;  %v2817_v52 = vadd.f32 %v2721_v50, %v2424_v60  ;;  %v2723_v53 = vpop.f32.mrb[94].mxu0 }
 0x20e   :  { %v2724_v54 = vpop.f32.mrb[95].mxu0  ;;  %7267 = vrot.lane.b32.xlu0 %v7266_v49, %s7635_s2  ;;  %v8384_v7 = vadd.f32 %v8369_v32, %v2816_v9 }
 0x20f   :  { %v2760_v55 = vpop.f32.mrb[92].mxu1  ;;  %7272 = vrot.lane.b32.xlu1 %v7271_v51, %s7635_s2  ;;  %v2837_v38 = vadd.f32 %v8369_v32, %v2817_v52 }
 0x210   :  { %v2818_v56 = vadd.f32 %v2760_v55, %v2425_v0  ;;  %v2762_v59 = vpop.f32.mrb[93].mxu1 }
 0x211   :  { %v2819_v61 = vadd.f32 %v2762_v59, %v2426_v1  ;;  %v2764_v62 = vpop.f32.mrb[94].mxu1 }
 0x212   :  { %v2765_v63 = vpop.f32.mrb[95].mxu1  ;;  %2872 = vrot.lane.b32.xlu0 %v8384_v7, %s7635_s2 }
 0x213   :  { %v2801_v57 = vpop.f32.mrb[96].mxu0  ;;  %v8416_v41 = vadd.f32 %v8369_v32, %v2819_v61 }
 0x214   :  { %v2820_v60 = vadd.f32 %v2801_v57, %v2427_v17  ;;  %v2803_v58 = vpop.f32.mrb[97].mxu0 }
 0x215   :  { %v2821_v8 = vadd.f32 %v2803_v58, %v2428_v23  ;;  %v2805_v11 = vpop.f32.mrb[98].mxu0 }
 0x216   :  { %v2806_v14 = vpop.f32.mrb[99].mxu0  ;;  %v8409_v22 = vadd.f32 %v8369_v32, %v2820_v60 }
 0x217   :  { %v8426_v21 = vadd.f32 %v8369_v32, %v2821_v8 }
 0x278   :  { %v7258_v20 = vpop.permute.xlu1 %7257 }
 0x279   :  { %v7260_v25 = vunpack.i.h.bf16 %v7258_v20  ;;  %v7259_v26 = vunpack.i.l.bf16 %v7258_v20 }
 0x27b   :  { %v2886_v0 = vsel %vm2884_vm7, %v7259_v26, %v7260_v25 }
 0x27c   :  { %v7263_v27 = vpop.permute.xlu1 %7262  ;;  %v2912_v30 = vmax.f32 %v2829_v33, %v2886_v0 }
 0x27d   :  { %v7265_v28 = vunpack.i.h.bf16 %v7263_v27  ;;  %v7264_v1 = vunpack.i.l.bf16 %v7263_v27 }
 0x27f   :  { %v2887_v29 = vsel %vm2884_vm7, %v7260_v25, %v7264_v1  ;;  %v2888_v17 = vsel %vm2884_vm7, %v7264_v1, %v7265_v28 }
 0x280   :  { %v2913_v31 = vmax.f32 %v2830_v37, %v2887_v29  ;;  %v7268_v6 = vpop.permute.xlu0 %7267  ;;  %v2914_v10 = vmax.f32 %v2831_v43, %v2888_v17  ;;  %v8406_v43 = vadd.f32 %v8369_v32, %v2818_v56 }
 0x281   :  { %v7270_v4 = vunpack.i.h.bf16 %v7268_v6  ;;  %v7269_v23 = vunpack.i.l.bf16 %v7268_v6  ;;  %v7273_v34 = vpop.permute.xlu1 %7272 }
 0x282   :  { %v7274_v35 = vunpack.i.l.bf16 %v7273_v34  ;;  %v7276_v3 = vpack.i.bf16 %v2913_v31, %v2912_v30  ;;  %v7275_v13 = vunpack.i.h.bf16 %v7273_v34 }
 0x283   :  { %v2889_v36 = vsel %vm2884_vm7, %v7265_v28, %v7269_v23  ;;  %v2890_v5 = vsel %vm2884_vm7, %v7269_v23, %v7270_v4 }
 0x284   :  { %v8393_v16 = vmax.f32 %v2832_v12, %v2889_v36  ;;  %v2916_v39 = vmax.f32 %v2833_v24, %v2890_v5  ;;  %v2891_v33 = vsel %vm2884_vm7, %v7270_v4, %v7274_v35  ;;  %7277 = vrot.lane.b32.xlu1 %v7276_v3, %s7623_s17  ;;  %v2873_v40 = vpop.permute.xlu0 %2872  ;;  %v2885_v19 = vsel %vm2884_vm7, %v7275_v13, %v7259_v26 }
 0x285   :  { %v8397_v37 = vmax.f32 %v2834_v45, %v2891_v33  ;;  %v2892_v15 = vsel %vm2884_vm7, %v7274_v35, %v2873_v40  ;;  %v2911_v12 = vmax.f32 %v2828_v46, %v2885_v19  ;;  %v7291_v24 = vpack.i.bf16 %v8406_v43, %v2837_v38 }
 0x286   :  { %v7281_v42 = vpack.i.bf16 %v8393_v16, %v2914_v10  ;;  %v8411_v18 = vmax.f32 %v2835_v47, %v2892_v15  ;;  %v7296_v45 = vpack.i.bf16 %v8409_v22, %v8416_v41 }
 0x287   :  { %v7286_v44 = vpack.i.bf16 %v8397_v37, %v2916_v39 }
 0x288   :  { %7282 = vrot.lane.b32.xlu0 %v7281_v42, %s7623_s17 }
 0x289   :  { %7287 = vrot.lane.b32.xlu1 %v7286_v44, %s7623_s17 }
 0x28c   :  { %2940 = vrot.lane.b32.xlu0 %v2911_v12, %s7623_s17 }
 0x28d   :  { %2954 = vrot.lane.b32.xlu1 %v8411_v18, %s7623_s17 }
 0x290   :  { %7292 = vrot.lane.b32.xlu0 %v7291_v24, %s7635_s2 }
 0x291   :  { %7297 = vrot.lane.b32.xlu1 %v7296_v45, %s7635_s2 }
 0x294   :  { %2882 = vrot.lane.b32.xlu0 %v8426_v21, %s7635_s2 }
 0x2f6   :  { %v7278_v46 = vpop.permute.xlu1 %7277 }
 0x2f7   :  { %v7280_v47 = vunpack.i.h.bf16 %v7278_v46  ;;  %v7279_v48 = vunpack.i.l.bf16 %v7278_v46 }
 0x2f9   :  { %v2970_v49 = vsel %vm130_vm0, %v7279_v48, %v7280_v47 }
 0x2fa   :  { %v7283_v9 = vpop.permute.xlu0 %7282  ;;  %v2996_v53 = vmax.f32 %v2912_v30, %v2970_v49 }
 0x2fb   :  { %v7285_v50 = vunpack.i.h.bf16 %v7283_v9  ;;  %v7284_v51 = vunpack.i.l.bf16 %v7283_v9  ;;  %v7288_v52 = vpop.permute.xlu1 %7287 }
 0x2fc   :  { %v7290_v54 = vunpack.i.h.bf16 %v7288_v52  ;;  %v7289_v55 = vunpack.i.l.bf16 %v7288_v52  ;;  %v8438_v8 = vmax.f32 %v2996_v53, 0.0 }
 0x2fd   :  { %v2971_v56 = vsel %vm130_vm0, %v7280_v47, %v7284_v51  ;;  %v2972_v32 = vsel %vm130_vm0, %v7284_v51, %v7285_v50 }
 0x2fe   :  { %v2997_v59 = vmax.f32 %v2913_v31, %v2971_v56  ;;  %v2974_v61 = vsel %vm130_vm0, %v7289_v55, %v7290_v54  ;;  %v2941_v62 = vpop.permute.xlu0 %2940  ;;  %v2973_v63 = vsel %vm130_vm0, %v7285_v50, %v7289_v55  ;;  %v2998_v20 = vmax.f32 %v2914_v10, %v2972_v32 }
 0x2ff   :  { %v3000_v57 = vmax.f32 %v2916_v39, %v2974_v61  ;;  %v2969_v60 = vsel %vm130_vm0, %v2941_v62, %v7279_v48  ;;  %v8436_v58 = vpop.permute.xlu1 %2954  ;;  %v2999_v25 = vmax.f32 %v8393_v16, %v2973_v63 }
 0x300   :  { %v8440_v11 = vmax.f32 %v2997_v59, 0.0  ;;  %v2995_v14 = vmax.f32 %v2911_v12, %v2969_v60  ;;  %v8452_v31 = vmax.f32 %v2998_v20, 0.0  ;;  %v2975_v36 = vsel %vm130_vm0, %v7290_v54, %v8436_v58 }
 0x301   :  { %v8443_v26 = vmax.f32 %v3000_v57, 0.0  ;;  %v8457_v23 = vmax.f32 %v2999_v25, 0.0 }
 0x302   :  { %v8445_v27 = vmax.f32 %v2995_v14, 0.0  ;;  %v7293_v0 = vpop.permute.xlu0 %7292  ;;  %v7306_v28 = vpack.i.bf16 %v8440_v11, %v8438_v8 }
 0x303   :  { %v7295_v1 = vunpack.i.h.bf16 %v7293_v0  ;;  %v7294_v29 = vunpack.i.l.bf16 %v7293_v0  ;;  %v8449_v30 = vpop.permute.xlu1 %7297  ;;  %v7326_v10 = vpack.i.bf16 %v8457_v23, %v8452_v31 }
 0x304   :  { %7307 = vrot.lane.b32.xlu0 %v7306_v28, %s7636_s15  ;;  %v7299_v4 = vunpack.i.l.bf16 %v8449_v30  ;;  %v7321_v3 = vpack.i.bf16 %v8445_v27, %v8443_v26 }
 0x305   :  { %v2893_v6 = vsel %vm2884_vm7, %v2873_v40, %v7294_v29  ;;  %v2894_v17 = vsel %vm2884_vm7, %v7294_v29, %v7295_v1 }
 0x306   :  { %v8460_v34 = vmax.f32 %v8384_v7, %v2893_v6  ;;  %v8462_v35 = vmax.f32 %v2837_v38, %v2894_v17  ;;  %v2895_v13 = vsel %vm2884_vm7, %v7295_v1, %v7299_v4  ;;  %v3001_v7 = vmax.f32 %v8397_v37, %v2975_v36  ;;  %v8491_v33 = vpop.permute.xlu0 %2882 }
 0x307   :  { %v8480_v16 = vmax.f32 %v8406_v43, %v2895_v13 }
 0x308   :  { %7322 = vrot.lane.b32.xlu0 %v7321_v3, %s7636_s15  ;;  %v7301_v5 = vpack.i.bf16 %v8462_v35, %v8460_v34  ;;  %v8482_v39 = vmax.f32 %v3001_v7, 0.0 }
 0x30a   :  { %7302 = vrot.lane.b32.xlu1 %v7301_v5, %s7623_s17 }
 0x30c   :  { %7327 = vrot.lane.b32.xlu0 %v7326_v10, %s7633_s0 }
 0x30e   :  { %2960 = vrot.lane.b32.xlu1 %v8480_v16, %s7623_s17 }
 0x310   :  { %3045 = vrot.lane.b32.xlu0 %v8482_v39, %s7636_s15 }
 0x312   :  { %7312 = vrot.lane.b32.xlu1 %v7306_v28, %s7633_s0 }
 0x316   :  { %7317 = vrot.lane.b32.xlu1 %v7326_v10, %s7636_s15 }
 0x31a   :  { %7332 = vrot.lane.b32.xlu1 %v7321_v3, %s7633_s0  ;;  %v7300_v3 = vunpack.i.h.bf16 %v8449_v30 }
 0x31c   :  { %v2896_v36 = vsel %vm2884_vm7, %v7299_v4, %v7300_v3  ;;  %v3797_v4 = vpack.c.bf16 %v8443_v26, %v8443_v26  ;;  %v2897_v10 = vsel %vm2884_vm7, %v7300_v3, %v8491_v33  ;;  %vm6421_vm7 = vcmask 50216  }
 0x31d   :  { %v8633_v13 = vmax.f32 %v8416_v41, %v2896_v36  ;;  %v3795_v41 = vpack.c.bf16 %v8452_v31, %v8452_v31 }
 0x376   :  { %v7308_v37 = vpop.permute.xlu0 %7307 }
 0x377   :  { %v7310_v40 = vunpack.i.h.bf16 %v7308_v37  ;;  %v7309_v42 = vunpack.i.l.bf16 %v7308_v37 }
 0x379   :  { %v3059_v19 = vsel %vm3057_vm8, %v7309_v42, %v7310_v40 }
 0x37a   :  { %v8495_v44 = vpack.c.bf16 %v3059_v19, %v8438_v8  ;;  %v8497_v15 = vpop.permute.xlu0 %7322 }
 0x37b   :  { %v7325_v43 = vunpack.i.h.bf16 %v8497_v15  ;;  %v7324_v61 = vunpack.i.l.bf16 %v8497_v15 }
 0x37c   :  { %4070 = vmatprep.subr.bf16.mxu1 %v8495_v44  ;;  %v8501_v12 = vpop.permute.xlu1 %7302 }
 0x37d   :  { %v3058_v38 = vsel %vm3057_vm8, %v7325_v43, %v7309_v42  ;;  %v7304_v37 = vunpack.i.l.bf16 %v8501_v12  ;;  %v3794_v42 = vpack.c.bf16 %v8440_v11, %v8440_v11 }
 0x37e   :  { %v3080_v24 = vpack.c.bf16 %v3058_v38, %v8445_v27  ;;  %v7328_v63 = vpop.permute.xlu0 %7327  ;;  %v3796_v38 = vpack.c.bf16 %v8457_v23, %v8457_v23 }
 0x37f   :  { %v7329_v14 = vunpack.i.l.bf16 %v7328_v63  ;;  %v7330_v0 = vunpack.i.h.bf16 %v7328_v63  ;;  %v2976_v19 = vsel %vm130_vm0, %v8436_v58, %v7304_v37  ;;  %v8688_v58 = vld [vmem:[%s10532_s3 + $0x4] ss:$8 sps:$4 sm:$0xff]  }
 0x380   :  { %v8505_v45 = vpop.permute.xlu1 %2960  ;;  %4071 = vmatpush1.bf16.msra.mxu1 %v3080_v24  ;;  %3304 = vrot.lane.b32.xlu0 %v3080_v24, %s7637_s18 }
 0x381   :  { %3116 = vrot.lane.b32.xlu1 %v3080_v24, %s7638_s19  ;;  %v3202_v6 = vsel %vm2461_vm6, %v7329_v14, %v7330_v0  ;;  %6593 = vmatprep.mubr.msk.bf16.mxu1 %vm4063_vm9, %v8688_v58 }
 0x382   :  { %v8582_v17 = vpack.c.bf16 %v3202_v6, %v8452_v31  ;;  %v8626_v5 = vpop.permute.xlu0 %3045  ;;  %6595 = vmatprep.mubr.msk.bf16.mxu0 %vm4063_vm9, %v8688_v58 }
 0x383   :  { %v3063_v7 = vsel %vm3057_vm8, %v7324_v61, %v8626_v5 }
 0x384   :  { %v7313_v46 = vpop.permute.xlu1 %7312  ;;  %3362 = vrot.lane.b32.xlu0 %v3080_v24, %s7639_s20  ;;  %v8640_v30 = vpack.c.bf16 %v3063_v7, %v8443_v26 }
 0x385   :  { %v7314_v54 = vunpack.i.l.bf16 %v7313_v46  ;;  %v7315_v59 = vunpack.i.h.bf16 %v7313_v46 }
 0x387   :  { %v3200_v62 = vsel %vm2461_vm6, %v7314_v54, %v7315_v59  ;;  %v3201_v25 = vsel %vm2461_vm6, %v7315_v59, %v7329_v14 }
 0x388   :  { %3420 = vrot.lane.b32.xlu0 %v3080_v24, %s7629_s21  ;;  %v7318_v47 = vpop.permute.xlu1 %7317  ;;  %v8544_v60 = vpack.c.bf16 %v3200_v62, %v8438_v8  ;;  %v8558_v28 = vpack.c.bf16 %v3201_v25, %v8440_v11 }
 0x389   :  { %v7320_v48 = vunpack.i.h.bf16 %v7318_v47  ;;  %v7319_v49 = vunpack.i.l.bf16 %v7318_v47 }
 0x38b   :  { %v3060_v9 = vsel %vm3057_vm8, %v7310_v40, %v7319_v49  ;;  %v3061_v50 = vsel %vm3057_vm8, %v7319_v49, %v7320_v48  ;;  %v3062_v57 = vsel %vm3057_vm8, %v7320_v48, %v7324_v61  ;;  %v8665_v40 = vmax.f32 %v8409_v22, %v2897_v10 }
 0x38c   :  { %v8514_v51 = vpack.c.bf16 %v3060_v9, %v8440_v11  ;;  %v8517_v52 = vpack.c.bf16 %v3061_v50, %v8452_v31  ;;  %3306 = vrot.lane.b32.xlu0 %v8495_v44, %s7637_s18  ;;  %v8521_v53 = vpop.permute.xlu1 %7332  ;;  %v8547_v20 = vpack.c.bf16 %v3062_v57, %v8457_v23  ;;  %v7305_v31 = vunpack.i.h.bf16 %v8501_v12 }
 0x38d   :  { %v7335_v55 = vunpack.i.h.bf16 %v8521_v53  ;;  %v3002_v22 = vmax.f32 %v8411_v18, %v2976_v19 }
 0x38e   :  { %4123 = vmatprep.subr.bf16.mxu0 %v8517_v52 }
 0x38f   :  { %v3199_v56 = vsel %vm2461_vm6, %v7335_v55, %v7314_v54  ;;  %4124 = vmatpush1.bf16.msra.mxu0 %v8514_v51  ;;  %v8697_v18 = vmax.f32 %v3002_v22, 0.0 }
 0x390   :  { %3422 = vrot.lane.b32.xlu0 %v8495_v44, %s7629_s21  ;;  %v3222_v32 = vpack.c.bf16 %v3199_v56, %v8445_v27  ;;  %v7334_v27 = vunpack.i.l.bf16 %v8521_v53 }
 0x391   :  { %v7346_v49 = vpack.i.bf16 %v8697_v18, %v8482_v39 }
 0x392   :  { %3246 = vrot.lane.b32.xlu1 %v3222_v32, %s7624_s1  ;;  %v3203_v1 = vsel %vm2461_vm6, %v7330_v0, %v7334_v27 }
 0x393   :  { %v8568_v29 = vpack.c.bf16 %v3203_v1, %v8457_v23  ;;  %v3793_v23 = vpack.c.bf16 %v8438_v8, %v8438_v8  ;;  %v2925_v8 = vmax.f32 %v8426_v21, %v8491_v33 }
 0x394   :  { %3561 = vrot.lane.b32.xlu0 %v8495_v44, %s7640_s22 }
 0x396   :  { %3477 = vrot.lane.b32.xlu1 %v3080_v24, %s7641_s23 }
 0x398   :  { %3677 = vrot.lane.b32.xlu0 %v8495_v44, %s7642_s24 }
 0x39a   :  { %3118 = vrot.lane.b32.xlu1 %v8495_v44, %s7638_s19 }
 0x39c   :  { %3120 = vrot.lane.b32.xlu0 %v8514_v51, %s7638_s19 }
 0x39e   :  { %3248 = vrot.lane.b32.xlu1 %v8544_v60, %s7624_s1 }
 0x3a0   :  { %3124 = vrot.lane.b32.xlu0 %v8547_v20, %s7638_s19 }
 0x3a2   :  { %3364 = vrot.lane.b32.xlu1 %v8495_v44, %s7639_s20 }
 0x3a4   :  { %3250 = vrot.lane.b32.xlu0 %v8558_v28, %s7624_s1 }
 0x3a6   :  { %3479 = vrot.lane.b32.xlu1 %v8495_v44, %s7641_s23 }
 0x3a8   :  { %3254 = vrot.lane.b32.xlu0 %v8568_v29, %s7624_s1 }
 0x3aa   :  { %3619 = vrot.lane.b32.xlu1 %v8495_v44, %s7643_s25 }
 0x3ac   :  { %3310 = vrot.lane.b32.xlu0 %v8517_v52, %s7637_s18 }
 0x3ae   :  { %3122 = vrot.lane.b32.xlu1 %v8517_v52, %s7638_s19 }
 0x3b0   :  { %3366 = vrot.lane.b32.xlu0 %v8514_v51, %s7639_s20 }
 0x3b2   :  { %3252 = vrot.lane.b32.xlu1 %v8582_v17, %s7624_s1 }
 0x3b4   :  { %3370 = vrot.lane.b32.xlu0 %v8547_v20, %s7639_s20 }
 0x3b6   :  { %3308 = vrot.lane.b32.xlu1 %v8514_v51, %s7637_s18 }
 0x3b8   :  { %3426 = vrot.lane.b32.xlu0 %v8517_v52, %s7629_s21 }
 0x3ba   :  { %3312 = vrot.lane.b32.xlu1 %v8547_v20, %s7637_s18 }
 0x3bc   :  { %3481 = vrot.lane.b32.xlu0 %v8514_v51, %s7641_s23 }
 0x3be   :  { %3368 = vrot.lane.b32.xlu1 %v8517_v52, %s7639_s20 }
 0x3c0   :  { %3485 = vrot.lane.b32.xlu0 %v8547_v20, %s7641_s23 }
 0x3c2   :  { %3424 = vrot.lane.b32.xlu1 %v8514_v51, %s7629_s21 }
 0x3c4   :  { %3563 = vrot.lane.b32.xlu0 %v8514_v51, %s7640_s22 }
 0x3c6   :  { %3428 = vrot.lane.b32.xlu1 %v8547_v20, %s7629_s21 }
 0x3c8   :  { %3567 = vrot.lane.b32.xlu0 %v8547_v20, %s7640_s22 }
 0x3ca   :  { %3483 = vrot.lane.b32.xlu1 %v8517_v52, %s7641_s23 }
 0x3cc   :  { %3623 = vrot.lane.b32.xlu0 %v8517_v52, %s7643_s25 }
 0x3ce   :  { %3565 = vrot.lane.b32.xlu1 %v8517_v52, %s7640_s22 }
 0x3d0   :  { %3679 = vrot.lane.b32.xlu0 %v8514_v51, %s7642_s24 }
 0x3d2   :  { %3621 = vrot.lane.b32.xlu1 %v8514_v51, %s7643_s25 }
 0x3d4   :  { %3683 = vrot.lane.b32.xlu0 %v8547_v20, %s7642_s24 }
 0x3d6   :  { %3625 = vrot.lane.b32.xlu1 %v8547_v20, %s7643_s25 }
 0x3d8   :  { %3739 = vrot.lane.b32.xlu0 %v8517_v52, %s7644_s26 }
 0x3da   :  { %3681 = vrot.lane.b32.xlu1 %v8517_v52, %s7642_s24 }
 0x3dc   :  { %2962 = vrot.lane.b32.xlu0 %v8633_v13, %s7623_s17 }
 0x3de   :  { %3737 = vrot.lane.b32.xlu1 %v8514_v51, %s7644_s26 }
 0x3e0   :  { %3627 = vrot.lane.b32.xlu0 %v8640_v30, %s7643_s25 }
 0x3e2   :  { %3741 = vrot.lane.b32.xlu1 %v8547_v20, %s7644_s26 }
 0x3e4   :  { %3821 = vrot.lane.b32.xlu0 %v3795_v41, %s7629_s21 }
 0x3e6   :  { %3569 = vrot.lane.b32.xlu1 %v8640_v30, %s7640_s22 }
 0x3e8   :  { %3743 = vrot.lane.b32.xlu0 %v8640_v30, %s7644_s26 }
 0x3ea   :  { %3735 = vrot.lane.b32.xlu1 %v8495_v44, %s7644_s26  ;;  %v2977_v44 = vsel %vm130_vm0, %v7304_v37, %v7305_v31 }
 0x3eb   :  { %v3003_v43 = vmax.f32 %v8460_v34, %v2977_v44 }
 0x3ec   :  { %3825 = vrot.lane.b32.xlu0 %v3797_v4, %s7629_s21 }
 0x3ed   :  { %v8699_v34 = vmax.f32 %v3003_v43, 0.0 }
 0x3ee   :  { %3685 = vrot.lane.b32.xlu1 %v8640_v30, %s7642_s24 }
 0x3ef   :  { %v7336_v46 = vpack.i.bf16 %v8699_v34, %v8697_v18 }
 0x3f0   :  { %2964 = vrot.lane.b32.xlu0 %v8665_v40, %s7623_s17 }
 0x3f2   :  { %v8678_v15 = vpop.permute.xlu0 %3304  ;;  %3819 = vrot.lane.b32.xlu1 %v3794_v42, %s7629_s21 }
 0x3f3   :  { %v3117_v48 = vpop.permute.xlu1 %3116 }
 0x3f6   :  { %v8690_v11 = vpop.permute.xlu0 %3362  ;;  %3823 = vrot.lane.b32.xlu1 %v3796_v38, %s7629_s21 }
 0x3fa   :  { %v8703_v24 = vpop.permute.xlu0 %3420  ;;  %3817 = vrot.lane.b32.xlu1 %v3793_v23, %s7629_s21 }
 0x3fe   :  { %v3307_v47 = vpop.permute.xlu0 %3306  ;;  %7337 = vrot.lane.b32.xlu1 %v7336_v46, %s7636_s15 }
 0x3ff   :  { %v3329_v22 = vsel %vm3328_vm12, %v8678_v15, %v3307_v47 }
 0x402   :  { %v8711_v9 = vpop.permute.xlu0 %3422  ;;  %7347 = vrot.lane.b32.xlu1 %v7346_v49, %s7633_s0 }
 0x404   :  { %v3247_v50 = vpop.permute.xlu1 %3246 }
 0x406   :  { %v8716_v51 = vpop.permute.xlu0 %3561  ;;  %2966 = vrot.lane.b32.xlu1 %v2925_v8, %s7623_s17 }
 0x408   :  { %v8719_v52 = vpop.permute.xlu1 %3477 }
 0x40a   :  { %v8721_v54 = vpop.permute.xlu0 %3677 }
 0x40c   :  { %v3119_v55 = vpop.permute.xlu1 %3118 }
 0x40d   :  { %v3141_v61 = vsel %vm3140_vm10, %v3117_v48, %v3119_v55 }
 0x40e   :  { %v3121_v56 = vpop.permute.xlu0 %3120 }
 0x40f   :  { %v3142_v32 = vsel %vm3140_vm10, %v3119_v55, %v3121_v56 }
 0x410   :  { %v3249_v59 = vpop.permute.xlu1 %3248  ;;  %4072 = vmatprep.subr.bf16.mxu1 %v3142_v32  ;;  %v3444_v32 = vsel %vm145_vm2, %v8703_v24, %v8711_v9 }
 0x411   :  { %4073 = vmatpush1.bf16.msra.mxu1 %v3141_v61  ;;  %v3271_v14 = vsel %vm3270_vm11, %v3247_v50, %v3249_v59 }
 0x412   :  { %v8725_v21 = vpop.permute.xlu0 %3124 }
 0x414   :  { %v3365_v33 = vpop.permute.xlu1 %3364 }
 0x415   :  { %v3387_v48 = vsel %vm3386_vm13, %v8690_v11, %v3365_v33 }
 0x416   :  { %v3251_v62 = vpop.permute.xlu0 %3250 }
 0x417   :  { %v3272_v63 = vsel %vm3270_vm11, %v3249_v59, %v3251_v62 }
 0x418   :  { %v3480_v57 = vpop.permute.xlu1 %3479  ;;  %4074 = vmatprep.subr.bf16.mxu1 %v3272_v63 }
 0x419   :  { %4075 = vmatpush1.bf16.msra.mxu1 %v3271_v14  ;;  %v3502_v63 = vsel %vm3501_vm14, %v8719_v52, %v3480_v57 }
 0x41a   :  { %v8729_v25 = vpop.permute.xlu0 %3254 }
 0x41c   :  { %v8731_v0 = vpop.permute.xlu1 %3619 }
 0x41e   :  { %v3311_v1 = vpop.permute.xlu0 %3310 }
 0x420   :  { %v3123_v6 = vpop.permute.xlu1 %3122 }
 0x421   :  { %v3144_v3 = vsel %vm3140_vm10, %v3123_v6, %v8725_v21  ;;  %v3143_v36 = vsel %vm3140_vm10, %v3121_v56, %v3123_v6 }
 0x422   :  { %v3367_v7 = vpop.permute.xlu0 %3366  ;;  %4125 = vmatprep.subr.bf16.mxu0 %v3144_v3 }
 0x423   :  { %4126 = vmatpush1.bf16.msra.mxu0 %v3143_v36  ;;  %v3388_v43 = vsel %vm3386_vm13, %v3365_v33, %v3367_v7 }
 0x424   :  { %v3253_v41 = vpop.permute.xlu1 %3252 }
 0x425   :  { %v3274_v4 = vsel %vm3270_vm11, %v3253_v41, %v8729_v25  ;;  %v3273_v10 = vsel %vm3270_vm11, %v3251_v62, %v3253_v41 }
 0x426   :  { %v8739_v37 = vpop.permute.xlu0 %3370  ;;  %4127 = vmatprep.subr.bf16.mxu0 %v3274_v4 }
 0x427   :  { %4128 = vmatpush1.bf16.msra.mxu0 %v3273_v10 }
 0x428   :  { %v3309_v42 = vpop.permute.xlu1 %3308 }
 0x429   :  { %v3330_v19 = vsel %vm3328_vm12, %v3307_v47, %v3309_v42  ;;  %v3331_v49 = vsel %vm3328_vm12, %v3309_v42, %v3311_v1 }
 0x42a   :  { %4076 = vmatprep.subr.bf16.mxu1 %v3330_v19  ;;  %v3427_v44 = vpop.permute.xlu0 %3426 }
 0x42b   :  { %4077 = vmatpush1.bf16.msra.mxu1 %v3329_v22 }
 0x42c   :  { %v8745_v38 = vpop.permute.xlu1 %3312  ;;  %4078 = vmatprep.subr.bf16.mxu1 %v3388_v43 }
 0x42d   :  { %v3332_v23 = vsel %vm3328_vm12, %v3311_v1, %v8745_v38 }
 0x42e   :  { %v3482_v46 = vpop.permute.xlu0 %3481  ;;  %4129 = vmatprep.subr.bf16.mxu0 %v3332_v23 }
 0x42f   :  { %4079 = vmatpush1.bf16.msra.mxu1 %v3387_v48  ;;  %4130 = vmatpush1.bf16.msra.mxu0 %v3331_v49  ;;  %v3503_v59 = vsel %vm3501_vm14, %v3480_v57, %v3482_v46 }
 0x430   :  { %v3369_v15 = vpop.permute.xlu1 %3368 }
 0x431   :  { %v3390_v47 = vsel %vm3386_vm13, %v3369_v15, %v8739_v37  ;;  %v3389_v8 = vsel %vm3386_vm13, %v3367_v7, %v3369_v15 }
 0x432   :  { %v8755_v50 = vpop.permute.xlu0 %3485  ;;  %4131 = vmatprep.subr.bf16.mxu0 %v3390_v47 }
 0x433   :  { %4132 = vmatpush1.bf16.msra.mxu0 %v3389_v8 }
 0x434   :  { %v3425_v55 = vpop.permute.xlu1 %3424 }
 0x435   :  { %v3445_v56 = vsel %vm145_vm2, %v8711_v9, %v3425_v55  ;;  %v3446_v14 = vsel %vm145_vm2, %v3425_v55, %v3427_v44 }
 0x436   :  { %4080 = vmatprep.subr.bf16.mxu1 %v3445_v56  ;;  %v3564_v11 = vpop.permute.xlu0 %3563 }
 0x437   :  { %4081 = vmatpush1.bf16.msra.mxu1 %v3444_v32 }
 0x438   :  { %v8763_v61 = vpop.permute.xlu1 %3428  ;;  %4082 = vmatprep.subr.bf16.mxu1 %v3503_v59 }
 0x439   :  { %v3447_v33 = vsel %vm145_vm2, %v3427_v44, %v8763_v61 }
 0x43a   :  { %v3568_v62 = vpop.permute.xlu0 %3567  ;;  %4133 = vmatprep.subr.bf16.mxu0 %v3447_v33 }
 0x43b   :  { %4083 = vmatpush1.bf16.msra.mxu1 %v3502_v63  ;;  %4134 = vmatpush1.bf16.msra.mxu0 %v3446_v14 }
 0x43c   :  { %v3484_v24 = vpop.permute.xlu1 %3483  ;;  %4084 = vmatprep.subr.bf16.mxu1 %v8558_v28  ;;  %v3586_v28 = vsel %vm3585_vm15, %v8716_v51, %v3564_v11  ;;  %v2978_v51 = vsel %vm130_vm0, %v7305_v31, %v8505_v45 }
 0x43d   :  { %v3505_v9 = vsel %vm3501_vm14, %v3484_v24, %v8755_v50  ;;  %v3504_v1 = vsel %vm3501_vm14, %v3482_v46, %v3484_v24  ;;  %v3004_v42 = vmax.f32 %v8462_v35, %v2978_v51 }
 0x43e   :  { %v3624_v6 = vpop.permute.xlu0 %3623  ;;  %4135 = vmatprep.subr.bf16.mxu0 %v3505_v9 }
 0x43f   :  { %4085 = vmatpush1.bf16.msra.mxu1 %v8544_v60  ;;  %4136 = vmatpush1.bf16.msra.mxu0 %v3504_v1  ;;  %v8795_v43 = vmax.f32 %v3004_v42, 0.0 }
 0x440   :  { %v3566_v3 = vpop.permute.xlu1 %3565  ;;  %4137 = vmatprep.subr.bf16.mxu0 %v8568_v29 }
 0x441   :  { %v3587_v52 = vsel %vm3585_vm15, %v3564_v11, %v3566_v3  ;;  %v3588_v47 = vsel %vm3585_vm15, %v3566_v3, %v3568_v62  ;;  %v3801_v51 = vpack.c.bf16 %v8795_v43, %v8795_v43 }
 0x442   :  { %4086 = vmatprep.subr.bf16.mxu1 %v3587_v52  ;;  %v3680_v57 = vpop.permute.xlu0 %3679 }
 0x443   :  { %4087 = vmatpush1.bf16.msra.mxu1 %v3586_v28  ;;  %4138 = vmatpush1.bf16.msra.mxu0 %v8582_v17 }
 0x444   :  { %v3622_v36 = vpop.permute.xlu1 %3621 }
 0x445   :  { %v3645_v7 = vsel %vm3643_vm1, %v3622_v36, %v3624_v6  ;;  %v3644_v60 = vsel %vm3643_vm1, %v8731_v0, %v3622_v36  ;;  %v3702_v0 = vsel %vm3701_vm4, %v8721_v54, %v3680_v57 }
 0x446   :  { %4088 = vmatprep.subr.bf16.mxu1 %v3645_v7  ;;  %v3684_v41 = vpop.permute.xlu0 %3683 }
 0x447   :  { %4089 = vmatpush1.bf16.msra.mxu1 %v3644_v60  ;;  %v3799_v60 = vpack.c.bf16 %v8697_v18, %v8697_v18 }
 0x448   :  { %v3626_v29 = vpop.permute.xlu1 %3625 }
 0x449   :  { %v3646_v32 = vsel %vm3643_vm1, %v3624_v6, %v3626_v29 }
 0x44a   :  { %v3740_v4 = vpop.permute.xlu0 %3739 }
 0x44c   :  { %v3682_v10 = vpop.permute.xlu1 %3681 }
 0x44d   :  { %v3703_v17 = vsel %vm3701_vm4, %v3680_v57, %v3682_v10  ;;  %v3704_v63 = vsel %vm3701_vm4, %v3682_v10, %v3684_v41 }
 0x44e   :  { %4090 = vmatprep.subr.bf16.mxu1 %v3703_v17  ;;  %v2963_v19 = vpop.permute.xlu0 %2962 }
 0x44f   :  { %v2979_v44 = vsel %vm130_vm0, %v8505_v45, %v2963_v19  ;;  %4091 = vmatpush1.bf16.msra.mxu1 %v3702_v0 }
 0x450   :  { %v3005_v12 = vmax.f32 %v8480_v16, %v2979_v44  ;;  %v3738_v22 = vpop.permute.xlu1 %3737  ;;  %v7351_v16 = vpack.i.bf16 %v8795_v43, %v8699_v34 }
 0x451   :  { %v3761_v31 = vsel %vm3759_vm5, %v3738_v22, %v3740_v4 }
 0x452   :  { %v8797_v23 = vmax.f32 %v3005_v12, 0.0  ;;  %4092 = vmatprep.subr.bf16.mxu1 %v3761_v31  ;;  %v8799_v35 = vpop.permute.xlu0 %3627 }
 0x453   :  { %v3647_v8 = vsel %vm3643_vm1, %v3626_v29, %v8799_v35  ;;  %v8845_v29 = vld [vmem:[%s10532_s3] ss:$8 sps:$4 sm:$0xff]  }
 0x454   :  { %v3742_v46 = vpop.permute.xlu1 %3741  ;;  %v7341_v54 = vpack.i.bf16 %v8797_v23, %v8795_v43 }
 0x455   :  { %v3762_v52 = vsel %vm3759_vm5, %v3740_v4, %v3742_v46 }
 0x456   :  { %7342 = vrot.lane.b32.xlu0 %v7341_v54, %s7636_s15  ;;  %v3822_v45 = vpop.permute.xlu0 %3821 }
 0x458   :  { %v8804_v48 = vpop.permute.xlu1 %3569 }
 0x459   :  { %v3589_v49 = vsel %vm3585_vm15, %v3568_v62, %v8804_v48 }
 0x45a   :  { %7352 = vrot.lane.b32.xlu0 %v7351_v16, %s7633_s0  ;;  %v8811_v15 = vpop.permute.xlu0 %3743  ;;  %4139 = vmatprep.subr.bf16.mxu0 %v3589_v49  ;;  %v3798_v16 = vpack.c.bf16 %v8482_v39, %v8482_v39 }
 0x45b   :  { %4140 = vmatpush1.bf16.msra.mxu0 %v3588_v47  ;;  %v3763_v24 = vsel %vm3759_vm5, %v3742_v46, %v8811_v15 }
 0x45c   :  { %v3736_v55 = vpop.permute.xlu1 %3735  ;;  %4141 = vmatprep.subr.bf16.mxu0 %v3647_v8 }
 0x45d   :  { %v3760_v56 = vsel %vm3759_vm5, %v3736_v55, %v3738_v22 }
 0x45e   :  { %4093 = vmatpush1.bf16.msra.mxu1 %v3760_v56  ;;  %v8817_v11 = vpop.permute.xlu0 %3825 }
 0x45f   :  { %4142 = vmatpush1.bf16.msra.mxu0 %v3646_v32 }
 0x460   :  { %v8820_v59 = vpop.permute.xlu1 %3685 }
 0x461   :  { %v3705_v33 = vsel %vm3701_vm4, %v3684_v41, %v8820_v59 }
 0x462   :  { %v2965_v62 = vpop.permute.xlu0 %2964  ;;  %4143 = vmatprep.subr.bf16.mxu0 %v3705_v33 }
 0x463   :  { %v2980_v14 = vsel %vm130_vm0, %v2963_v19, %v2965_v62  ;;  %4144 = vmatpush1.bf16.msra.mxu0 %v3704_v63 }
 0x464   :  { %v3006_v9 = vmax.f32 %v8633_v13, %v2980_v14  ;;  %v3820_v1 = vpop.permute.xlu1 %3819  ;;  %4145 = vmatprep.subr.bf16.mxu0 %v3763_v24 }
 0x465   :  { %v3842_v6 = vsel %vm145_vm2, %v3820_v1, %v3822_v45 }
 0x466   :  { %v8830_v3 = vmax.f32 %v3006_v9, 0.0  ;;  %4094 = vmatprep.subr.bf16.mxu1 %v3842_v6 }
 0x467   :  { %4146 = vmatpush1.bf16.msra.mxu0 %v3762_v52 }
 0x468   :  { %v3824_v57 = vpop.permute.xlu1 %3823  ;;  %v7361_v28 = vpack.i.bf16 %v8830_v3, %v8797_v23 }
 0x469   :  { %v3844_v36 = vsel %vm145_vm2, %v3824_v57, %v8817_v11  ;;  %v3843_v7 = vsel %vm145_vm2, %v3822_v45, %v3824_v57 }
 0x46a   :  { %7362 = vrot.lane.b32.xlu1 %v7361_v28, %s7633_s0  ;;  %4147 = vmatprep.subr.bf16.mxu0 %v3844_v36 }
 0x46b   :  { %4148 = vmatpush1.bf16.msra.mxu0 %v3843_v7 }
 0x46c   :  { %v3818_v13 = vpop.permute.xlu1 %3817 }
 0x46d   :  { %v3841_v41 = vsel %vm145_vm2, %v3818_v13, %v3820_v1 }
 0x46e   :  { %3829 = vrot.lane.b32.xlu1 %v3799_v60, %s7629_s21  ;;  %4095 = vmatpush1.bf16.msra.mxu1 %v3841_v41 }
 0x46f   :  { %4176 = vmatprep.subr.bf16.mxu1 %v8640_v30  ;;  %4156 = vmatmul.mubr.bf16.vlgmr.msra.gmra.mrb[100].mxu0 %v8845_v29 }
 0x470   :  { %v7338_v4 = vpop.permute.xlu1 %7337 }
 0x471   :  { %v7340_v10 = vunpack.i.h.bf16 %v7338_v4  ;;  %v7339_v17 = vunpack.i.l.bf16 %v7338_v4  ;;  %4103 = vmatmul.mubr.bf16.vlgmr.msra.gmra.mrb[96].mxu1 %v8845_v29 }
 0x472   :  { %3833 = vrot.lane.b32.xlu1 %v3801_v51, %s7629_s21  ;;  %4177 = vmatpush1.bf16.msra.mxu1 %v8547_v20  ;;  %v8870_v20 = vld [vmem:[%s10532_s3 + $0x14] ss:$8 sps:$4 sm:$0xff]  }
 0x473   :  { %v3064_v42 = vsel %vm3057_vm8, %v8626_v5, %v7339_v17  ;;  %v3065_v19 = vsel %vm3057_vm8, %v7339_v17, %v7340_v10  ;;  %v8875_v5 = vld [vmem:[%s10532_s3 + $0x10] ss:$8 sps:$4 sm:$0xff]   ;;  %6594 = vmatprep.mubr.msk.bf16.mxu1 %vm4063_vm9, %v8870_v20  ;;  %6596 = vmatprep.mubr.msk.bf16.mxu0 %vm4063_vm9, %v8870_v20 }
 0x474   :  { %v8859_v0 = vpack.c.bf16 %v3064_v42, %v8482_v39  ;;  %v8862_v44 = vpack.c.bf16 %v3065_v19, %v8697_v18  ;;  %v7348_v12 = vpop.permute.xlu1 %7347 }
 0x475   :  { %v7349_v49 = vunpack.i.l.bf16 %v7348_v12  ;;  %v7350_v53 = vunpack.i.h.bf16 %v7348_v12 }
 0x476   :  { %4229 = vmatprep.subr.bf16.mxu0 %v8862_v44  ;;  %3128 = vrot.lane.b32.xlu1 %v8859_v0, %s7638_s19 }
 0x477   :  { %4230 = vmatpush1.bf16.msra.mxu0 %v8859_v0  ;;  %v3204_v47 = vsel %vm2461_vm6, %v7334_v27, %v7349_v49  ;;  %v3205_v33 = vsel %vm2461_vm6, %v7349_v49, %v7350_v53 }
 0x478   :  { %v2967_v22 = vpop.permute.xlu1 %2966  ;;  %4166 = vmatmul.mubr.bf16.gmra.mrb[104].mxu0 %v8875_v5  ;;  %v8907_v8 = vpack.c.bf16 %v3204_v47, %v8443_v26  ;;  %v8940_v24 = vpack.c.bf16 %v3205_v33, %v8482_v39 }
 0x479   :  { %v2981_v31 = vsel %vm130_vm0, %v2965_v62, %v2967_v22  ;;  %4113 = vmatmul.mubr.bf16.gmra.mrb[100].mxu1 %v8875_v5  ;;  %6599 = vmatprep.mubr.msk.bf16.mxu0 %vm4063_vm9, %v8688_v58 }
 0x47a   :  { %v3007_v46 = vmax.f32 %v8665_v40, %v2981_v31  ;;  %6597 = vmatprep.mubr.msk.bf16.mxu1 %vm4063_vm9, %v8688_v58  ;;  %v3800_v40 = vpack.c.bf16 %v8699_v34, %v8699_v34 }
 0x47c   :  { %v8890_v54 = vmax.f32 %v3007_v46, 0.0 }
 0x47e   :  { %v7356_v45 = vpack.i.bf16 %v8890_v54, %v8830_v3 }
 0x480   :  { %7357 = vrot.lane.b32.xlu0 %v7356_v45, %s7636_s15 }
 0x484   :  { %3827 = vrot.lane.b32.xlu0 %v3798_v16, %s7629_s21 }
 0x488   :  { %3831 = vrot.lane.b32.xlu0 %v3800_v40, %s7629_s21 }
 0x48c   :  { %3126 = vrot.lane.b32.xlu0 %v8640_v30, %s7638_s19 }
 0x490   :  { %3256 = vrot.lane.b32.xlu0 %v8907_v8, %s7624_s1 }
 0x494   :  { %3314 = vrot.lane.b32.xlu0 %v8640_v30, %s7637_s18 }
 0x498   :  { %3372 = vrot.lane.b32.xlu0 %v8640_v30, %s7639_s20 }
 0x49c   :  { %3430 = vrot.lane.b32.xlu0 %v8640_v30, %s7629_s21 }
 0x4a0   :  { %3487 = vrot.lane.b32.xlu0 %v8640_v30, %s7641_s23 }
 0x4a4   :  { %3130 = vrot.lane.b32.xlu0 %v8862_v44, %s7638_s19 }
 0x4c8   :  { %v8921_v26 = vpop.permute.xlu0 %7342 }
 0x4c9   :  { %v7344_v27 = vunpack.i.l.bf16 %v8921_v26  ;;  %v7345_v28 = vunpack.i.h.bf16 %v8921_v26 }
 0x4cb   :  { %v3066_v55 = vsel %vm3057_vm8, %v7340_v10, %v7344_v27  ;;  %v3067_v41 = vsel %vm3057_vm8, %v7344_v27, %v7345_v28 }
 0x4cc   :  { %v8926_v56 = vpack.c.bf16 %v3066_v55, %v8699_v34  ;;  %v8928_v32 = vpop.permute.xlu0 %7352  ;;  %v9017_v4 = vpack.c.bf16 %v3067_v41, %v8795_v43 }
 0x4cd   :  { %v7355_v62 = vunpack.i.h.bf16 %v8928_v32  ;;  %v7354_v30 = vunpack.i.l.bf16 %v8928_v32 }
 0x4ce   :  { %3132 = vrot.lane.b32.xlu1 %v8926_v56, %s7638_s19 }
 0x4cf   :  { %v3206_v63 = vsel %vm2461_vm6, %v7350_v53, %v7354_v30  ;;  %v3207_v9 = vsel %vm2461_vm6, %v7354_v30, %v7355_v62 }
 0x4d0   :  { %v8937_v14 = vpack.c.bf16 %v3206_v63, %v8697_v18  ;;  %v8948_v1 = vpack.c.bf16 %v3207_v9, %v8699_v34  ;;  %v3803_v63 = vpack.c.bf16 %v8830_v3, %v8830_v3 }
 0x4d2   :  { %3260 = vrot.lane.b32.xlu0 %v8937_v14, %s7624_s1  ;;  %3258 = vrot.lane.b32.xlu1 %v8940_v24, %s7624_s1 }
 0x4d6   :  { %3318 = vrot.lane.b32.xlu0 %v8862_v44, %s7637_s18  ;;  %3262 = vrot.lane.b32.xlu1 %v8948_v1, %s7624_s1 }
 0x4da   :  { %3376 = vrot.lane.b32.xlu0 %v8862_v44, %s7639_s20  ;;  %3316 = vrot.lane.b32.xlu1 %v8859_v0, %s7637_s18 }
 0x4dc   :  { %v7363_v39 = vpop.permute.xlu1 %7362 }
 0x4dd   :  { %v7364_v10 = vunpack.i.l.bf16 %v7363_v39  ;;  %v9035_v17 = vunpack.i.h.bf16 %v7363_v39 }
 0x4de   :  { %3434 = vrot.lane.b32.xlu0 %v8862_v44, %s7629_s21  ;;  %3320 = vrot.lane.b32.xlu1 %v8926_v56, %s7637_s18 }
 0x4df   :  { %v3208_v42 = vsel %vm2461_vm6, %v7355_v62, %v7364_v10  ;;  %v3233_v12 = vpack.c.bf16 %v9035_v17, %v8830_v3 }
 0x4e0   :  { %v8978_v18 = vpop.permute.xlu1 %3829  ;;  %v9043_v19 = vpack.c.bf16 %v3208_v42, %v8795_v43  ;;  %v4023_v42 = vld [vmem:[%s10533_s4 + $0x10] sm:$0xff] }
 0x4e2   :  { %3491 = vrot.lane.b32.xlu0 %v8862_v44, %s7641_s23  ;;  %3374 = vrot.lane.b32.xlu1 %v8859_v0, %s7639_s20 }
 0x4e4   :  { %v8992_v52 = vpop.permute.xlu1 %3833 }
 0x4e6   :  { %3571 = vrot.lane.b32.xlu0 %v8859_v0, %s7640_s22  ;;  %3378 = vrot.lane.b32.xlu1 %v8926_v56, %s7639_s20 }
 0x4e8   :  { %v9001_v36 = vpop.permute.xlu1 %3128 }
 0x4ea   :  { %3575 = vrot.lane.b32.xlu0 %v8926_v56, %s7640_s22  ;;  %3432 = vrot.lane.b32.xlu1 %v8859_v0, %s7629_s21 }
 0x4ee   :  { %3629 = vrot.lane.b32.xlu0 %v8859_v0, %s7643_s25  ;;  %3436 = vrot.lane.b32.xlu1 %v8926_v56, %s7629_s21 }
 0x4f2   :  { %v8980_v34 = vpop.permute.xlu0 %7357  ;;  %3633 = vrot.lane.b32.xlu0 %v8926_v56, %s7643_s25  ;;  %3489 = vrot.lane.b32.xlu1 %v8859_v0, %s7641_s23 }
 0x4f3   :  { %v7359_v51 = vunpack.i.l.bf16 %v8980_v34  ;;  %v7360_v31 = vunpack.i.h.bf16 %v8980_v34  ;;  %v4021_v34 = vld [vmem:[%s10533_s4] sm:$0xff] }
 0x4f5   :  { %v3068_v43 = vsel %vm3057_vm8, %v7345_v28, %v7359_v51  ;;  %v3558_v45 = vpack.c.bf16 %v7360_v31, %v8890_v54  ;;  %v3554_v49 = vsel %vm3057_vm8, %v7359_v51, %v7360_v31 }
 0x4f6   :  { %v8986_v6 = vpop.permute.xlu0 %3827  ;;  %3687 = vrot.lane.b32.xlu0 %v8859_v0, %s7642_s24  ;;  %3493 = vrot.lane.b32.xlu1 %v8926_v56, %s7641_s23  ;;  %v9065_v46 = vpack.c.bf16 %v3068_v43, %v8797_v23  ;;  %v3557_v26 = vpack.c.bf16 %v3554_v49, %v8830_v3 }
 0x4fa   :  { %v8994_v57 = vpop.permute.xlu0 %3831  ;;  %3691 = vrot.lane.b32.xlu0 %v8926_v56, %s7642_s24  ;;  %3573 = vrot.lane.b32.xlu1 %v8862_v44, %s7640_s22 }
 0x4fe   :  { %v3127_v7 = vpop.permute.xlu0 %3126  ;;  %3745 = vrot.lane.b32.xlu0 %v8859_v0, %s7644_s26  ;;  %3631 = vrot.lane.b32.xlu1 %v8862_v44, %s7643_s25  ;;  %v3209_v0 = vsel %vm2461_vm6, %v7364_v10, %v9035_v17 }
 0x4ff   :  { %v3146_v13 = vsel %vm3140_vm10, %v3127_v7, %v9001_v36  ;;  %v3145_v60 = vsel %vm3140_vm10, %v8725_v21, %v3127_v7  ;;  %v3103_v21 = vpack.c.bf16 %v7359_v51, %v8830_v3 }
 0x500   :  { %4178 = vmatprep.subr.bf16.mxu1 %v3146_v13 }
 0x501   :  { %4179 = vmatpush1.bf16.msra.mxu1 %v3145_v60 }
 0x502   :  { %3749 = vrot.lane.b32.xlu0 %v8926_v56, %s7644_s26  ;;  %3689 = vrot.lane.b32.xlu1 %v8862_v44, %s7642_s24  ;;  %v3257_v22 = vpop.permute.xlu0 %3256 }
 0x503   :  { %v3275_v39 = vsel %vm3270_vm11, %v8729_v25, %v3257_v22 }
 0x506   :  { %3134 = vrot.lane.b32.xlu0 %v9017_v4, %s7638_s19  ;;  %3747 = vrot.lane.b32.xlu1 %v8862_v44, %s7644_s26  ;;  %v9051_v44 = vpack.c.bf16 %v3209_v0, %v8797_v23  ;;  %v9071_v16 = vpop.permute.xlu0 %3314 }
 0x50a   :  { %3138 = vrot.lane.b32.xlu0 %v3103_v21, %s7638_s19  ;;  %3577 = vrot.lane.b32.xlu1 %v9017_v4, %s7640_s22  ;;  %v9076_v40 = vpop.permute.xlu0 %3372 }
 0x50e   :  { %3322 = vrot.lane.b32.xlu0 %v9017_v4, %s7637_s18  ;;  %3635 = vrot.lane.b32.xlu1 %v9017_v4, %s7643_s25  ;;  %v9086_v47 = vpop.permute.xlu0 %3430 }
 0x512   :  { %3326 = vrot.lane.b32.xlu0 %v3103_v21, %s7637_s18  ;;  %3693 = vrot.lane.b32.xlu1 %v9017_v4, %s7642_s24  ;;  %v9091_v53 = vpop.permute.xlu0 %3487 }
 0x516   :  { %3438 = vrot.lane.b32.xlu0 %v9017_v4, %s7629_s21  ;;  %3751 = vrot.lane.b32.xlu1 %v9017_v4, %s7644_s26  ;;  %v3131_v27 = vpop.permute.xlu0 %3130 }
 0x517   :  { %v3147_v33 = vsel %vm3140_vm10, %v9001_v36, %v3131_v27 }
 0x51a   :  { %3442 = vrot.lane.b32.xlu0 %v3103_v21, %s7629_s21  ;;  %3264 = vrot.lane.b32.xlu1 %v9043_v19, %s7624_s1 }
 0x51e   :  { %3266 = vrot.lane.b32.xlu0 %v9051_v44, %s7624_s1  ;;  %3268 = vrot.lane.b32.xlu1 %v3233_v12, %s7624_s1 }
 0x522   :  { %3536 = vrot.lane.b32.xlu0 %v8890_v54, %s7633_s0  ;;  %3380 = vrot.lane.b32.xlu1 %v9017_v4, %s7639_s20 }
 0x526   :  { %3382 = vrot.lane.b32.xlu0 %v9065_v46, %s7639_s20  ;;  %3384 = vrot.lane.b32.xlu1 %v3103_v21, %s7639_s20 }
 0x52a   :  { %3641 = vrot.lane.b32.xlu0 %v3558_v45, %s7643_s25  ;;  %3136 = vrot.lane.b32.xlu1 %v9065_v46, %s7638_s19 }
 0x52e   :  { %3497 = vrot.lane.b32.xlu0 %v9065_v46, %s7641_s23  ;;  %3495 = vrot.lane.b32.xlu1 %v9017_v4, %s7641_s23 }
 0x532   :  { %3757 = vrot.lane.b32.xlu0 %v3558_v45, %s7644_s26  ;;  %3324 = vrot.lane.b32.xlu1 %v9065_v46, %s7637_s18 }
 0x536   :  { %3581 = vrot.lane.b32.xlu0 %v3557_v26, %s7640_s22  ;;  %3499 = vrot.lane.b32.xlu1 %v3103_v21, %s7641_s23 }
 0x53a   :  { %3637 = vrot.lane.b32.xlu0 %v9065_v46, %s7643_s25  ;;  %3440 = vrot.lane.b32.xlu1 %v9065_v46, %s7629_s21 }
 0x53e   :  { %3697 = vrot.lane.b32.xlu0 %v3557_v26, %s7642_s24  ;;  %3583 = vrot.lane.b32.xlu1 %v3558_v45, %s7640_s22 }
 0x540   :  { %v9099_v55 = vpop.permute.xlu1 %3132 }
 0x541   :  { %v3148_v32 = vsel %vm3140_vm10, %v3131_v27, %v9099_v55 }
 0x542   :  { %3753 = vrot.lane.b32.xlu0 %v9065_v46, %s7644_s26  ;;  %3699 = vrot.lane.b32.xlu1 %v3558_v45, %s7642_s24  ;;  %v9121_v36 = vpop.f32.mrb[100].mxu0 }
 0x543   :  { %4231 = vmatprep.subr.bf16.mxu0 %v3148_v32  ;;  %v9129_v51 = vpop.f32.mrb[101].mxu0 }
 0x544   :  { %4232 = vmatpush1.bf16.msra.mxu0 %v3147_v33  ;;  %v3261_v62 = vpop.permute.xlu0 %3260  ;;  %v3259_v30 = vpop.permute.xlu1 %3258  ;;  %v3333_v33 = vsel %vm3328_vm12, %v8745_v38, %v9071_v16 }
 0x545   :  { %v3276_v9 = vsel %vm3270_vm11, %v3257_v22, %v3259_v30  ;;  %v9119_v28 = vpop.f32.mrb[96].mxu1  ;;  %v9134_v21 = vpop.f32.mrb[102].mxu0  ;;  %v3277_v10 = vsel %vm3270_vm11, %v3259_v30, %v3261_v62 }
 0x546   :  { %3837 = vrot.lane.b32.xlu0 %v3803_v63, %s7629_s21  ;;  %3579 = vrot.lane.b32.xlu1 %v9065_v46, %s7640_s22  ;;  %v9127_v41 = vpop.f32.mrb[97].mxu1  ;;  %v9142_v12 = vpop.f32.mrb[103].mxu0 }
 0x547   :  { %4180 = vmatprep.subr.bf16.mxu1 %v3276_v9  ;;  %v9132_v25 = vpop.f32.mrb[98].mxu1 }
 0x548   :  { %4181 = vmatpush1.bf16.msra.mxu1 %v3275_v39  ;;  %v3319_v7 = vpop.permute.xlu0 %3318  ;;  %v9123_v13 = vpop.permute.xlu1 %3262 }
 0x549   :  { %v3278_v60 = vsel %vm3270_vm11, %v3261_v62, %v9123_v13  ;;  %v9140_v0 = vpop.f32.mrb[99].mxu1 }
 0x54a   :  { %4027 = vperm.xlu0 %7255, %v4021_v34   ;;  %3639 = vrot.lane.b32.xlu1 %v3557_v26, %s7643_s25 }
 0x54b   :  { %4233 = vmatprep.subr.bf16.mxu0 %v3278_v60  ;;  %v9148_v49 = vpop.f32.mrb[104].mxu0  ;;  %v3802_v60 = vpack.c.bf16 %v8797_v23, %v8797_v23 }
 0x54c   :  { %4234 = vmatpush1.bf16.msra.mxu0 %v3277_v10  ;;  %v3377_v43 = vpop.permute.xlu0 %3376  ;;  %v3317_v22 = vpop.permute.xlu1 %3316 }
 0x54d   :  { %v3334_v31 = vsel %vm3328_vm12, %v9071_v16, %v3317_v22  ;;  %v9146_v45 = vpop.f32.mrb[100].mxu1  ;;  %v9154_v32 = vpop.f32.mrb[105].mxu0  ;;  %v3335_v9 = vsel %vm3328_vm12, %v3317_v22, %v3319_v7  ;;  %v3391_v16 = vsel %vm3386_vm13, %v8739_v37, %v9076_v40  ;;  %v4022_v37 = vld [vmem:[%s10533_s4 + $0x8] sm:$0xff] }
 0x54e   :  { %4037 = vperm.xlu0 %7255, %v4023_v42   ;;  %3695 = vrot.lane.b32.xlu1 %v9065_v46, %s7642_s24  ;;  %v9152_v27 = vpop.f32.mrb[101].mxu1 }
 0x54f   :  { %4182 = vmatprep.subr.bf16.mxu1 %v3334_v31 }
 0x550   :  { %4183 = vmatpush1.bf16.msra.mxu1 %v3333_v33  ;;  %v3435_v62 = vpop.permute.xlu0 %3434  ;;  %v9159_v30 = vpop.permute.xlu1 %3320 }
 0x551   :  { %v3336_v63 = vsel %vm3328_vm12, %v3319_v7, %v9159_v30  ;;  %v3804_v7 = vpack.c.bf16 %v8890_v54, %v8890_v54  ;;  %v3448_v54 = vsel %vm145_vm2, %v8763_v61, %v9086_v47 }
 0x552   :  { %3755 = vrot.lane.b32.xlu1 %v3557_v26, %s7644_s26  ;;  %4235 = vmatprep.subr.bf16.mxu0 %v3336_v63 }
 0x553   :  { %4236 = vmatpush1.bf16.msra.mxu0 %v3335_v9 }
 0x554   :  { %v3492_v39 = vpop.permute.xlu0 %3491  ;;  %v3375_v34 = vpop.permute.xlu1 %3374 }
 0x555   :  { %v3392_v38 = vsel %vm3386_vm13, %v9076_v40, %v3375_v34  ;;  %v3393_v42 = vsel %vm3386_vm13, %v3375_v34, %v3377_v43 }
 0x556   :  { %3835 = vrot.lane.b32.xlu1 %v3802_v60, %s7629_s21  ;;  %4184 = vmatprep.subr.bf16.mxu1 %v3392_v38  ;;  %v9199_v60 = vpop.f32.mrb[102].mxu1  ;;  %v9201_v38 = vpop.f32.mrb[106].mxu0 }
 0x557   :  { %4185 = vmatpush1.bf16.msra.mxu1 %v3391_v16  ;;  %v9203_v61 = vpop.f32.mrb[103].mxu1 }
 0x558   :  { %v3572_v26 = vpop.permute.xlu0 %3571  ;;  %v9173_v10 = vpop.permute.xlu1 %3378 }
 0x559   :  { %v3394_v23 = vsel %vm3386_vm13, %v3377_v43, %v9173_v10  ;;  %v4024_v43 = vld [vmem:[%s10533_s4 + $0x18] sm:$0xff] }
 0x55a   :  { %3839 = vrot.lane.b32.xlu1 %v3804_v7, %s7629_s21  ;;  %4237 = vmatprep.subr.bf16.mxu0 %v3394_v23  ;;  %s7653_s21 = smov 14  }
 0x55b   :  { %4238 = vmatpush1.bf16.msra.mxu0 %v3393_v42 }
 0x55c   :  { %v9184_v40 = vpop.permute.xlu0 %3575  ;;  %v3433_v22 = vpop.permute.xlu1 %3432 }
 0x55d   :  { %v3449_v31 = vsel %vm145_vm2, %v9086_v47, %v3433_v22  ;;  %v3450_v34 = vsel %vm145_vm2, %v3433_v22, %v3435_v62  ;;  %v9205_v47 = vpop.f32.mrb[107].mxu0 }
 0x55e   :  { %4032 = vperm.xlu1 %7366, %v4022_v37   ;;  %4186 = vmatprep.subr.bf16.mxu1 %v3449_v31 }
 0x55f   :  { %4187 = vmatpush1.bf16.msra.mxu1 %v3448_v54 }
 0x560   :  { %v3630_v33 = vpop.permute.xlu0 %3629  ;;  %v9194_v63 = vpop.permute.xlu1 %3436 }
 0x561   :  { %v3451_v9 = vsel %vm145_vm2, %v3435_v62, %v9194_v63  ;;  %v3506_v62 = vsel %vm3501_vm14, %v8755_v50, %v9091_v53 }
 0x562   :  { %4239 = vmatprep.subr.bf16.mxu0 %v3451_v9  ;;  %4042 = vperm.xlu1 %7366, %v4024_v43  }
 0x563   :  { %4240 = vmatpush1.bf16.msra.mxu0 %v3450_v34 }
 0x564   :  { %v3634_v16 = vpop.permute.xlu0 %3633  ;;  %v3490_v7 = vpop.permute.xlu1 %3489 }
 0x565   :  { %v3507_v23 = vsel %vm3501_vm14, %v9091_v53, %v3490_v7  ;;  %v3508_v31 = vsel %vm3501_vm14, %v3490_v7, %v3492_v39 }
 0x566   :  { %4188 = vmatprep.subr.bf16.mxu1 %v3507_v23 }
 0x567   :  { %4189 = vmatpush1.bf16.msra.mxu1 %v3506_v62 }
 0x568   :  { %v3688_v42 = vpop.permute.xlu0 %3687  ;;  %4190 = vmatprep.subr.bf16.mxu1 %v8940_v24  ;;  %v9213_v37 = vpop.permute.xlu1 %3493  ;;  %v3590_v24 = vsel %vm3585_vm15, %v8804_v48, %v3572_v26 }
 0x569   :  { %v3509_v22 = vsel %vm3501_vm14, %v3492_v39, %v9213_v37  ;;  %v3706_v48 = vsel %vm3701_vm4, %v8820_v59, %v3688_v42 }
 0x56a   :  { %4241 = vmatprep.subr.bf16.mxu0 %v3509_v22 }
 0x56b   :  { %4191 = vmatpush1.bf16.msra.mxu1 %v8907_v8  ;;  %4242 = vmatpush1.bf16.msra.mxu0 %v3508_v31  ;;  %v3648_v8 = vsel %vm3643_vm1, %v8799_v35, %v3630_v33  ;;  %v3846_v35 = vsel %vm145_vm2, %v8986_v6, %v8978_v18 }
 0x56c   :  { %v3692_v54 = vpop.permute.xlu0 %3691  ;;  %v3574_v43 = vpop.permute.xlu1 %3573  ;;  %4243 = vmatprep.subr.bf16.mxu0 %v8948_v1 }
 0x56d   :  { %v3591_v50 = vsel %vm3585_vm15, %v3572_v26, %v3574_v43 }
 0x56e   :  { %4192 = vmatprep.subr.bf16.mxu1 %v3591_v50 }
 0x56f   :  { %4193 = vmatpush1.bf16.msra.mxu1 %v3590_v24  ;;  %4244 = vmatpush1.bf16.msra.mxu0 %v8937_v14 }
 0x570   :  { %v3746_v53 = vpop.permute.xlu0 %3745  ;;  %v3632_v9 = vpop.permute.xlu1 %3631 }
 0x571   :  { %v3649_v39 = vsel %vm3643_vm1, %v3630_v33, %v3632_v9  ;;  %v3764_v62 = vsel %vm3759_vm5, %v8811_v15, %v3746_v53  ;;  %v3592_v15 = vsel %vm3585_vm15, %v3574_v43, %v9184_v40 }
 0x572   :  { %4194 = vmatprep.subr.bf16.mxu1 %v3649_v39 }
 0x573   :  { %4195 = vmatpush1.bf16.msra.mxu1 %v3648_v8 }
 0x574   :  { %v3750_v34 = vpop.permute.xlu0 %3749  ;;  %v3690_v1 = vpop.permute.xlu1 %3689 }
 0x575   :  { %v3707_v7 = vsel %vm3701_vm4, %v3688_v42, %v3690_v1  ;;  %v3845_v42 = vsel %vm145_vm2, %v8817_v11, %v8986_v6 }
 0x576   :  { %4196 = vmatprep.subr.bf16.mxu1 %v3707_v7 }
 0x577   :  { %4197 = vmatpush1.bf16.msra.mxu1 %v3706_v48 }
 0x578   :  { %v9230_v26 = vpop.permute.xlu0 %3134  ;;  %v3748_v14 = vpop.permute.xlu1 %3747 }
 0x579   :  { %v3765_v23 = vsel %vm3759_vm5, %v3746_v53, %v3748_v14  ;;  %v3650_v53 = vsel %vm3643_vm1, %v3632_v9, %v3634_v16  ;;  %v3848_v9 = vsel %vm145_vm2, %v8994_v57, %v8992_v52 }
 0x57a   :  { %4198 = vmatprep.subr.bf16.mxu1 %v3765_v23 }
 0x57b   :  { %4199 = vmatpush1.bf16.msra.mxu1 %v3764_v62 }
 0x57c   :  { %v3139_v33 = vpop.permute.xlu0 %3138  ;;  %4200 = vmatprep.subr.bf16.mxu1 %v3846_v35  ;;  %v9238_v22 = vpop.permute.xlu1 %3577 }
 0x57d   :  { %v3593_v59 = vsel %vm3585_vm15, %v9184_v40, %v9238_v22  ;;  %v3708_v40 = vsel %vm3701_vm4, %v3690_v1, %v3692_v54  ;;  %v3847_v1 = vsel %vm145_vm2, %v8978_v18, %v8994_v57  ;;  %v7621_v18 = vld [vmem:[%s10532_s3 + $0x4] ss:$8 sps:$4 sm:$0xff]  }
 0x57e   :  { %4245 = vmatprep.subr.bf16.mxu0 %v3593_v59  ;;  %v3149_v59 = vsel %vm3140_vm10, %v9099_v55, %v9230_v26 }
 0x57f   :  { %4201 = vmatpush1.bf16.msra.mxu1 %v3845_v42  ;;  %4246 = vmatpush1.bf16.msra.mxu0 %v3592_v15 }
 0x580   :  { %v9248_v31 = vpop.permute.xlu0 %3322  ;;  %4282 = vmatprep.subr.bf16.mxu1 %v9017_v4  ;;  %v9251_v50 = vpop.permute.xlu1 %3635 }
 0x581   :  { %v3651_v24 = vsel %vm3643_vm1, %v3634_v16, %v9251_v50  ;;  %v3766_v16 = vsel %vm3759_vm5, %v3748_v14, %v3750_v34 }
 0x582   :  { %4247 = vmatprep.subr.bf16.mxu0 %v3651_v24  ;;  %4209 = vmatmul.mubr.bf16.vlgmr.msra.gmra.mrb[104].mxu1 %v8845_v29 }
 0x583   :  { %4248 = vmatpush1.bf16.msra.mxu0 %v3650_v53  ;;  %4283 = vmatpush1.bf16.msra.mxu1 %v8926_v56 }
 0x584   :  { %v3327_v11 = vpop.permute.xlu0 %3326  ;;  %v9258_v6 = vpop.permute.xlu1 %3693  ;;  %6598 = vmatprep.mubr.msk.bf16.mxu1 %vm4063_vm9, %v8870_v20 }
 0x585   :  { %v3709_v4 = vsel %vm3701_vm4, %v3692_v54, %v9258_v6 }
 0x586   :  { %4249 = vmatprep.subr.bf16.mxu0 %v3709_v4 }
 0x587   :  { %4250 = vmatpush1.bf16.msra.mxu0 %v3708_v40  ;;  %v3337_v40 = vsel %vm3328_vm12, %v9159_v30, %v9248_v31 }
 0x588   :  { %v9265_v43 = vpop.permute.xlu0 %3438  ;;  %v9267_v39 = vpop.permute.xlu1 %3751 }
 0x589   :  { %v3767_v56 = vsel %vm3759_vm5, %v3750_v34, %v9267_v39 }
 0x58a   :  { %4251 = vmatprep.subr.bf16.mxu0 %v3767_v56  ;;  %4219 = vmatmul.mubr.bf16.gmra.mrb[108].mxu1 %v8875_v5 }
 0x58b   :  { %4252 = vmatpush1.bf16.msra.mxu0 %v3766_v16  ;;  %6601 = vmatprep.mubr.msk.bf16.mxu1 %vm4063_vm9, %v8688_v58 }
 0x58c   :  { %v3443_v54 = vpop.permute.xlu0 %3442  ;;  %v3265_v8 = vpop.permute.xlu1 %3264  ;;  %4253 = vmatprep.subr.bf16.mxu0 %v3848_v9 }
 0x58f   :  { %4254 = vmatpush1.bf16.msra.mxu0 %v3847_v1 }
 0x590   :  { %v3267_v7 = vpop.permute.xlu0 %3266  ;;  %v3269_v34 = vpop.permute.xlu1 %3268  ;;  %4335 = vmatprep.subr.bf16.mxu0 %v7622_v2 }
 0x591   :  { %v3280_v42 = vsel %vm3270_vm11, %v3265_v8, %v3267_v7  ;;  %v3281_v24 = vsel %vm3270_vm11, %v3267_v7, %v3269_v34  ;;  %v3452_v7 = vsel %vm145_vm2, %v9194_v63, %v9265_v43 }
 0x592   :  { %4262 = vmatmul.mubr.bf16.vlgmr.msra.gmra.mrb[108].mxu0 %v8845_v29 }
 0x593   :  { %4336 = vmatpush1.bf16.msra.mxu0 %v9065_v46  ;;  %6600 = vmatprep.mubr.msk.bf16.mxu0 %vm4063_vm9, %v8870_v20 }
 0x594   :  { %v3537_v58 = vpop.permute.xlu0 %3536  ;;  %v3381_v48 = vpop.permute.xlu1 %3380  ;;  %4337 = vmatprep.subr.bf16.mxu0 %v7622_v2 }
 0x595   :  { %v3395_v9 = vsel %vm3386_vm13, %v9173_v10, %v3381_v48 }
 0x598   :  { %v3383_v14 = vpop.permute.xlu0 %3382  ;;  %v3385_v23 = vpop.permute.xlu1 %3384 }
 0x59a   :  { %4272 = vmatmul.mubr.bf16.gmra.mrb[112].mxu0 %v8875_v5 }
 0x59b   :  { %6603 = vmatprep.mubr.msk.bf16.mxu0 %vm4063_vm9, %v7621_v18 }
 0x59c   :  { %v9292_v57 = vpop.permute.xlu0 %3641  ;;  %v3137_v46 = vpop.permute.xlu1 %3136 }
 0x59d   :  { %v3151_v62 = vsel %vm3140_vm10, %v3137_v46, %v3139_v33  ;;  %v3150_v35 = vsel %vm3140_vm10, %v9230_v26, %v3137_v46  ;;  %v3279_v33 = vsel %vm3270_vm11, %v9123_v13, %v3265_v8  ;;  %v3396_v13 = vsel %vm3386_vm13, %v3381_v48, %v3383_v14 }
 0x59e   :  { %4284 = vmatprep.subr.bf16.mxu1 %v3150_v35  ;;  %4338 = vmatpush1.bf16.msra.mxu0 %v3151_v62  ;;  %v3538_v48 = vsel %vm2461_vm6, %v9035_v17, %v3537_v58  ;;  %vm6303_vm6 = vcmask 523264   ;;  %vm6432_vm11 = vcmask 9216  }
 0x59f   :  { %4285 = vmatpush1.bf16.msra.mxu1 %v3149_v59  ;;  %4339 = vmatprep.subr.bf16.mxu0 %v7622_v2  ;;  %v3540_v63 = vpack.c.bf16 %v3538_v48, %v8830_v3  ;;  %v4651_v48 = vld [vmem:[%s10534_s5 + $0x90] sm:$0xff] }
 0x5a0   :  { %4286 = vmatprep.subr.bf16.mxu1 %v3280_v42  ;;  %v3496_v15 = vpop.permute.xlu1 %3495  ;;  %v3498_v53 = vpop.permute.xlu0 %3497 }
 0x5a1   :  { %v3511_v10 = vsel %vm3501_vm14, %v3496_v15, %v3498_v53 }
 0x5a2   :  { %4340 = vmatpush1.bf16.msra.mxu0 %v3281_v24 }
 0x5a3   :  { %4287 = vmatpush1.bf16.msra.mxu1 %v3279_v33  ;;  %4341 = vmatprep.subr.bf16.mxu0 %v7622_v2 }
 0x5a4   :  { %v3325_v55 = vpop.permute.xlu1 %3324  ;;  %v9312_v56 = vpop.permute.xlu0 %3757 }
 0x5a5   :  { %v3339_v26 = vsel %vm3328_vm12, %v3325_v55, %v3327_v11  ;;  %v3338_v4 = vsel %vm3328_vm12, %v9248_v31, %v3325_v55  ;;  %v3397_v11 = vsel %vm3386_vm13, %v3383_v14, %v3385_v23  ;;  %v3510_v14 = vsel %vm3501_vm14, %v9213_v37, %v3496_v15 }
 0x5a6   :  { %4288 = vmatprep.subr.bf16.mxu1 %v3338_v4  ;;  %4342 = vmatpush1.bf16.msra.mxu0 %v3339_v26  ;;  %vm6447_vm12 = vcmask 80896   ;;  %vm6449_vm13 = vcmask 113664  }
 0x5a7   :  { %4289 = vmatpush1.bf16.msra.mxu1 %v3337_v40  ;;  %4343 = vmatprep.subr.bf16.mxu0 %v7622_v2 }
 0x5a8   :  { %4290 = vmatprep.subr.bf16.mxu1 %v3396_v13  ;;  %v3500_v16 = vpop.permute.xlu1 %3499  ;;  %v3582_v31 = vpop.permute.xlu0 %3581 }
 0x5aa   :  { %4344 = vmatpush1.bf16.msra.mxu0 %v3397_v11 }
 0x5ab   :  { %4291 = vmatpush1.bf16.msra.mxu1 %v3395_v9  ;;  %4345 = vmatprep.subr.bf16.mxu0 %v7622_v2 }
 0x5ac   :  { %v3441_v30 = vpop.permute.xlu1 %3440  ;;  %v3638_v23 = vpop.permute.xlu0 %3637 }
 0x5ad   :  { %v3454_v8 = vsel %vm145_vm2, %v3441_v30, %v3443_v54  ;;  %v3453_v1 = vsel %vm145_vm2, %v9265_v43, %v3441_v30  ;;  %v3512_v54 = vsel %vm3501_vm14, %v3498_v53, %v3500_v16  ;;  %v3652_v62 = vsel %vm3643_vm1, %v9251_v50, %v3638_v23 }
 0x5ae   :  { %4292 = vmatprep.subr.bf16.mxu1 %v3453_v1  ;;  %4346 = vmatpush1.bf16.msra.mxu0 %v3454_v8  ;;  %vm6451_vm14 = vcmask 154624  }
 0x5af   :  { %4293 = vmatpush1.bf16.msra.mxu1 %v3452_v7  ;;  %4347 = vmatprep.subr.bf16.mxu0 %v7622_v2  ;;  %v4633_v7 = vld [vmem:[%s10534_s5] sm:$0xff] }
 0x5b0   :  { %4294 = vmatprep.subr.bf16.mxu1 %v3511_v10  ;;  %v3584_v34 = vpop.permute.xlu1 %3583  ;;  %v3698_v58 = vpop.permute.xlu0 %3697  ;;  %v4634_v10 = vld [vmem:[%s10534_s5 + $0x8] sm:$0xff] }
 0x5b1   :  { %v3596_v18 = vsel %vm3585_vm15, %v3582_v31, %v3584_v34  ;;  %v9482_v34 = vpack.c.bf16 %v4634_v10, %v4633_v7  ;;  %v4646_v7 = vld [vmem:[%s10534_s5 + $0x68] sm:$0xff] }
 0x5b2   :  { %4348 = vmatpush1.bf16.msra.mxu0 %v3512_v54  ;;  %v4652_v54 = vld [vmem:[%s10534_s5 + $0x98] sm:$0xff] }
 0x5b3   :  { %4295 = vmatpush1.bf16.msra.mxu1 %v3510_v14  ;;  %4349 = vmatprep.subr.bf16.mxu0 %v7622_v2  ;;  %v4635_v14 = vld [vmem:[%s10534_s5 + $0x10] sm:$0xff] }
 0x5b4   :  { %4296 = vmatprep.subr.bf16.mxu1 %v9051_v44  ;;  %v3700_v43 = vpop.permute.xlu1 %3699  ;;  %v3754_v35 = vpop.permute.xlu0 %3753 }
 0x5b5   :  { %v3712_v59 = vsel %vm3701_vm4, %v3698_v58, %v3700_v43  ;;  %v3768_v33 = vsel %vm3759_vm5, %v9267_v39, %v3754_v35 }
 0x5b6   :  { %4350 = vmatpush1.bf16.msra.mxu0 %v3540_v63  ;;  %v4636_v63 = vld [vmem:[%s10534_s5 + $0x18] sm:$0xff] }
 0x5b7   :  { %4297 = vmatpush1.bf16.msra.mxu1 %v9043_v19  ;;  %4351 = vmatprep.subr.bf16.mxu0 %v7622_v2  ;;  %v9500_v43 = vpack.c.bf16 %v4636_v63, %v4635_v14  ;;  %v4669_v14 = vld [vmem:[%s10534_s5 + $0x120] sm:$0xff]  ;;  %v4670_v63 = vld [vmem:[%s10534_s5 + $0x128] sm:$0xff] }
 0x5b8   :  { %v3580_v17 = vpop.permute.xlu1 %3579 }
 0x5b9   :  { %v3594_v37 = vsel %vm3585_vm15, %v9238_v22, %v3580_v17  ;;  %v3595_v46 = vsel %vm3585_vm15, %v3580_v17, %v3582_v31  ;;  %v4653_v17 = vld [vmem:[%s10534_s5 + $0xa0] sm:$0xff]  ;;  %vm6453_vm15 = vcmask 171008  }
 0x5ba   :  { %4298 = vmatprep.subr.bf16.mxu1 %v3595_v46  ;;  %4352 = vmatpush1.bf16.msra.mxu0 %v3596_v18  ;;  %v4638_v46 = vld [vmem:[%s10534_s5 + $0x28] sm:$0xff] }
 0x5bb   :  { %4299 = vmatpush1.bf16.msra.mxu1 %v3594_v37  ;;  %4353 = vmatprep.subr.bf16.mxu0 %v7622_v2  ;;  %v4637_v37 = vld [vmem:[%s10534_s5 + $0x20] sm:$0xff] }
 0x5bc   :  { %v3640_v3 = vpop.permute.xlu1 %3639 }
 0x5bd   :  { %v3654_v19 = vsel %vm3643_vm1, %v3640_v3, %v9292_v57  ;;  %v3653_v44 = vsel %vm3643_vm1, %v3638_v23, %v3640_v3  ;;  %v3838_v57 = vpop.permute.xlu0 %3837  ;;  %v9495_v23 = vpack.c.bf16 %v4652_v54, %v4651_v48  ;;  %v9518_v3 = vpack.c.bf16 %v4638_v46, %v4637_v37 }
 0x5be   :  { %4300 = vmatprep.subr.bf16.mxu1 %v3653_v44  ;;  %4354 = vmatpush1.bf16.msra.mxu0 %v3654_v19  ;;  %v4655_v19 = vld [vmem:[%s10534_s5 + $0xb0] sm:$0xff]  ;;  %v4656_v44 = vld [vmem:[%s10534_s5 + $0xb8] sm:$0xff] }
 0x5bf   :  { %4301 = vmatpush1.bf16.msra.mxu1 %v3652_v62  ;;  %4355 = vmatprep.subr.bf16.mxu0 %v7622_v2  ;;  %v4639_v62 = vld [vmem:[%s10534_s5 + $0x30] sm:$0xff] }
 0x5c0   :  { %v3696_v22 = vpop.permute.xlu1 %3695 }
 0x5c1   :  { %v3710_v42 = vsel %vm3701_vm4, %v9258_v6, %v3696_v22  ;;  %v3711_v15 = vsel %vm3701_vm4, %v3696_v22, %v3698_v58  ;;  %v4654_v58 = vld [vmem:[%s10534_s5 + $0xa8] sm:$0xff]  ;;  %v4640_v22 = vld [vmem:[%s10534_s5 + $0x38] sm:$0xff] }
 0x5c2   :  { %4302 = vmatprep.subr.bf16.mxu1 %v3711_v15  ;;  %4356 = vmatpush1.bf16.msra.mxu0 %v3712_v59  ;;  %v9510_v18 = vpack.c.bf16 %v4654_v58, %v4653_v17  ;;  %v4657_v59 = vld [vmem:[%s10534_s5 + $0xc0] sm:$0xff]  ;;  %v9542_v15 = vpack.c.bf16 %v4640_v22, %v4639_v62  ;;  %v4663_v17 = vld [vmem:[%s10534_s5 + $0xf0] sm:$0xff]  ;;  %v4648_v22 = vld [vmem:[%s10534_s5 + $0x78] sm:$0xff] }
 0x5c3   :  { %4303 = vmatpush1.bf16.msra.mxu1 %v3710_v42  ;;  %4357 = vmatprep.subr.bf16.mxu0 %v7622_v2  ;;  %v4658_v42 = vld [vmem:[%s10534_s5 + $0xc8] sm:$0xff]  ;;  %v4647_v62 = vld [vmem:[%s10534_s5 + $0x70] sm:$0xff] }
 0x5c4   :  { %v3756_v50 = vpop.permute.xlu1 %3755 }
 0x5c5   :  { %v3770_v24 = vsel %vm3759_vm5, %v3756_v50, %v9312_v56  ;;  %v3769_v53 = vsel %vm3759_vm5, %v3754_v35, %v3756_v50  ;;  %v9531_v35 = vpack.c.bf16 %v4656_v44, %v4655_v19  ;;  %v9544_v50 = vpack.c.bf16 %v4658_v42, %v4657_v59  ;;  %v4664_v44 = vld [vmem:[%s10534_s5 + $0xf8] sm:$0xff] }
 0x5c6   :  { %4304 = vmatprep.subr.bf16.mxu1 %v3769_v53  ;;  %4358 = vmatpush1.bf16.msra.mxu0 %v3770_v24  ;;  %v4642_v24 = vld [vmem:[%s10534_s5 + $0x48] sm:$0xff]  ;;  %v9632_v59 = vpack.c.bf16 %v4670_v63, %v4669_v14  ;;  %v9634_v42 = vpack.c.bf16 %v4664_v44, %v4663_v17 }
 0x5c7   :  { %4305 = vmatpush1.bf16.msra.mxu1 %v3768_v33  ;;  %4359 = vmatprep.subr.bf16.mxu0 %v7622_v2  ;;  %v4665_v33 = vld [vmem:[%s10534_s5 + $0x100] sm:$0xff]  ;;  %v4678_v14 = vld [vmem:[%s10534_s5 + $0x168] sm:$0xff] }
 0x5c8   :  { %v3836_v6 = vpop.permute.xlu1 %3835  ;;  %10552 = vst [vmem:[#allocation6_spill] sm:$0xff] %v9634_v42 }
 0x5c9   :  { %v3849_v55 = vsel %vm145_vm2, %v8992_v52, %v3836_v6  ;;  %v9362_v26 = vpop.permute.xlu0 %4027  ;;  %v3850_v4 = vsel %vm145_vm2, %v3836_v6, %v3838_v57  ;;  %v4666_v6 = vld [vmem:[%s10534_s5 + $0x108] sm:$0xff] }
 0x5ca   :  { %4306 = vmatprep.subr.bf16.mxu1 %v3850_v4  ;;  %v9367_v40 = vadd.f32 %v9127_v41, %v9362_v26  ;;  %v9371_v39 = vadd.f32 %v9121_v36, %v9362_v26  ;;  %v9375_v2 = vadd.f32 %v9119_v28, %v9362_v26  ;;  %v9379_v52 = vadd.f32 %v9129_v51, %v9362_v26 }
 0x5cb   :  { %4307 = vmatpush1.bf16.msra.mxu1 %v3849_v55  ;;  %v4659_v55 = vld [vmem:[%s10534_s5 + $0xd0] sm:$0xff]  ;;  %v9566_v4 = vpack.c.bf16 %v4666_v6, %v4665_v33  ;;  %v4672_v33 = vld [vmem:[%s10534_s5 + $0x138] sm:$0xff] }
 0x5cc   :  { %v3840_v56 = vpop.permute.xlu1 %3839  ;;  %v7367_v13 = vpack.i.bf16 %v9371_v39, %v9367_v40  ;;  %v7372_v41 = vpack.i.bf16 %v9375_v2, %v9379_v52 }
 0x5cd   :  { %v3851_v16 = vsel %vm145_vm2, %v3838_v57, %v3840_v56  ;;  %v9396_v28 = vpop.permute.xlu0 %4037  ;;  %v4641_v57 = vld [vmem:[%s10534_s5 + $0x40] sm:$0xff]  ;;  %v4660_v56 = vld [vmem:[%s10534_s5 + $0xd8] sm:$0xff]  ;;  %vm7649_vm2 = vmmov 0  }
 0x5ce   :  { %7368 = vrot.lane.b32.xlu0 %v7367_v13, %s7636_s15  ;;  %7373 = vrot.lane.b32.xlu1 %v7372_v41, %s7636_s15  ;;  %v9554_v53 = vpack.c.bf16 %v4642_v24, %v4641_v57  ;;  %v4643_v13 = vld [vmem:[%s10534_s5 + $0x50] sm:$0xff]  ;;  %v4644_v41 = vld [vmem:[%s10534_s5 + $0x58] sm:$0xff]  ;;  %v9636_v57 = vpack.c.bf16 %v4648_v22, %v4647_v62 }
 0x5cf   :  { %4315 = vmatmul.mubr.bf16.vlgmr.msra.gmra.mrb[112].mxu1 %v8845_v29  ;;  %4360 = vmatpush1.bf16.msra.mxu0 %v3851_v16  ;;  %v9577_v16 = vpack.c.bf16 %v4660_v56, %v4659_v55  ;;  %v4671_v24 = vld [vmem:[%s10534_s5 + $0x130] sm:$0xff] }
 0x5d0   :  { %6602 = vmatprep.mubr.msk.bf16.mxu1 %vm4063_vm9, %v8870_v20  ;;  %7012 = vmatprep.subr.bf16.mxu0 %v9566_v4  ;;  %10553 = vst [vmem:[#allocation7_spill] sm:$0xff] %v9636_v57 }
 0x5d2   :  { %4368 = vmatmul.mubr.bf16.vlgmr.msra.gmra.mrb[116].mxu0 %v8845_v29 }
 0x5d3   :  { %6604 = vmatprep.mubr.msk.bf16.mxu0 %vm4063_vm9, %v8870_v20  ;;  %7014 = vmatpush3.bf16.msra.mxu0 %v9566_v4  ;;  %vm6377_vm9 = vcmask 74752  }
 0x5d7   :  { %4325 = vmatmul.mubr.bf16.gmra.mrb[116].mxu1 %v8875_v5 }
 0x5da   :  { %4376 = vmatmul.mubr.bf16.gmra.mrb[120].mxu0 %v8875_v5  ;;  %v9418_v5 = vadd.f32 %v9152_v27, %v9396_v28 }
 0x5dd   :  { %v9398_v36 = vpop.permute.xlu1 %4032 }
 0x5de   :  { %v9402_v51 = vadd.f32 %v9134_v21, %v9398_v36  ;;  %v9406_v11 = vadd.f32 %v9142_v12, %v9398_v36  ;;  %v9410_v29 = vadd.f32 %v9132_v25, %v9398_v36  ;;  %v9414_v20 = vadd.f32 %v9140_v0, %v9398_v36 }
 0x5df   :  { %v9422_v21 = vadd.f32 %v9148_v49, %v9396_v28  ;;  %v9430_v25 = vadd.f32 %v9146_v45, %v9396_v28  ;;  %v9434_v0 = vadd.f32 %v9154_v32, %v9396_v28 }
 0x5e0   :  { %v7377_v12 = vpack.i.bf16 %v9406_v11, %v9402_v51  ;;  %v7382_v9 = vpack.i.bf16 %v9410_v29, %v9414_v20 }
 0x5e1   :  { %v9436_v27 = vpop.permute.xlu1 %4042  ;;  %v7387_v31 = vpack.i.bf16 %v9422_v21, %v9418_v5  ;;  %v7392_v8 = vpack.i.bf16 %v9430_v25, %v9434_v0 }
 0x5e2   :  { %7378 = vrot.lane.b32.xlu0 %v7377_v12, %s7636_s15  ;;  %7383 = vrot.lane.b32.xlu1 %v7382_v9, %s7636_s15  ;;  %v9442_v49 = vadd.f32 %v9201_v38, %v9436_v27  ;;  %v9446_v30 = vadd.f32 %v9205_v47, %v9436_v27  ;;  %v9450_v45 = vadd.f32 %v9199_v60, %v9436_v27  ;;  %v4650_v47 = vld [vmem:[%s10534_s5 + $0x88] sm:$0xff]  ;;  %v4667_v9 = vld [vmem:[%s10534_s5 + $0x110] sm:$0xff] }
 0x5e3   :  { %v9454_v32 = vadd.f32 %v9203_v61, %v9436_v27  ;;  %v4649_v61 = vld [vmem:[%s10534_s5 + $0x80] sm:$0xff]  ;;  %v9582_v12 = vpack.c.bf16 %v4644_v41, %v4643_v13 }
 0x5e4   :  { %v7397_v38 = vpack.i.bf16 %v9446_v30, %v9442_v49  ;;  %v9474_v1 = vpack.c.bf16 %v4650_v47, %v4649_v61  ;;  %v4645_v47 = vld [vmem:[%s10534_s5 + $0x60] sm:$0xff] }
 0x5e5   :  { %v7402_v60 = vpack.i.bf16 %v9450_v45, %v9454_v32  ;;  %v9609_v54 = vpack.c.bf16 %v4646_v7, %v4645_v47  ;;  %v4673_v41 = vld [vmem:[%s10534_s5 + $0x140] sm:$0xff]  ;;  %v4676_v7 = vld [vmem:[%s10534_s5 + $0x158] sm:$0xff] }
 0x5e6   :  { %7388 = vrot.lane.b32.xlu0 %v7387_v31, %s7636_s15  ;;  %7393 = vrot.lane.b32.xlu1 %v7392_v8, %s7636_s15  ;;  %v4668_v31 = vld [vmem:[%s10534_s5 + $0x118] sm:$0xff] }
 0x5e7   :  { %6980 = vmatprep.subr.bf16.mxu1 %v9474_v1  ;;  %v9592_v8 = vpack.c.bf16 %v4668_v31, %v4667_v9  ;;  %10551 = vst [vmem:[#allocation5_spill] sm:$0xff] %v9609_v54  ;;  %v4674_v9 = vld [vmem:[%s10534_s5 + $0x148] sm:$0xff] }
 0x5e8   :  { %6982 = vmatpush3.bf16.msra.mxu1 %v9482_v34 }
 0x5e9   :  { %6984 = vmatprep.subr.bf16.mxu1 %v9495_v23  ;;  %7016 = vmatprep.subr.bf16.mxu0 %v9592_v8 }
 0x5ea   :  { %7398 = vrot.lane.b32.xlu0 %v7397_v38, %s7636_s15  ;;  %7403 = vrot.lane.b32.xlu1 %v7402_v60, %s7636_s15  ;;  %v4661_v38 = vld [vmem:[%s10534_s5 + $0xe0] sm:$0xff]  ;;  %v4662_v60 = vld [vmem:[%s10534_s5 + $0xe8] sm:$0xff] }
 0x5eb   :  { %v9600_v61 = vpack.c.bf16 %v4662_v60, %v4661_v38  ;;  %7018 = vmatpush3.bf16.msra.mxu0 %v9592_v8 }
 0x5ec   :  { %6986 = vmatpush3.bf16.msra.mxu1 %v9500_v43  ;;  %7020 = vmatprep.subr.bf16.mxu0 %v9632_v59 }
 0x5ed   :  { %6988 = vmatprep.subr.bf16.mxu1 %v9510_v18 }
 0x5ef   :  { %7022 = vmatpush3.bf16.msra.mxu0 %v9632_v59 }
 0x5f0   :  { %6990 = vmatpush3.bf16.msra.mxu1 %v9518_v3 }
 0x5f1   :  { %6992 = vmatprep.subr.bf16.mxu1 %v9531_v35 }
 0x5f4   :  { %6994 = vmatpush3.bf16.msra.mxu1 %v9542_v15 }
 0x5f5   :  { %6996 = vmatprep.subr.bf16.mxu1 %v9544_v50 }
 0x5f8   :  { %6998 = vmatpush3.bf16.msra.mxu1 %v9554_v53 }
 0x5f9   :  { %7000 = vmatprep.subr.bf16.mxu1 %v9577_v16 }
 0x5fc   :  { %7002 = vmatpush3.bf16.msra.mxu1 %v9582_v12 }
 0x5fd   :  { %7004 = vmatprep.subr.bf16.mxu1 %v9600_v61 }
 0x600   :  { %7006 = vmatpush3.bf16.msra.mxu1 %v9609_v54 }
 0x601   :  { %7008 = vmatprep.subr.bf16.mxu1 %v9634_v42 }
 0x604   :  { %7010 = vmatpush3.bf16.msra.mxu1 %v9636_v57 }
 0x640   :  { %v7369_v10 = vpop.permute.xlu0 %7368  ;;  %v7374_v48 = vpop.permute.xlu1 %7373 }
 0x641   :  { %v7371_v58 = vunpack.i.h.bf16 %v7369_v10  ;;  %v7370_v37 = vunpack.i.l.bf16 %v7369_v10  ;;  %v7376_v46 = vunpack.i.h.bf16 %v7374_v48  ;;  %v7375_v19 = vunpack.i.l.bf16 %v7374_v48  ;;  %v4677_v48 = vld [vmem:[%s10534_s5 + $0x160] sm:$0xff] }
 0x642   :  { %v9696_v63 = vpack.c.bf16 %v4678_v14, %v4677_v48 }
 0x643   :  { %v4493_v6 = vsel %vm3057_vm8, %v7370_v37, %v7371_v58  ;;  %v4492_v55 = vsel %vm3057_vm8, %v7376_v46, %v7370_v37  ;;  %v4532_v56 = vmax.f32 %v9379_v52, %v7375_v19  ;;  %v4494_v13 = vsel %vm3057_vm8, %v7371_v58, %v7375_v19  ;;  %v4679_v37 = vld [vmem:[%s10534_s5 + $0x170] sm:$0xff]  ;;  %v4680_v46 = vld [vmem:[%s10534_s5 + $0x178] sm:$0xff] }
 0x644   :  { %v9655_v31 = vmax.f32 %v9367_v40, %v4493_v6  ;;  %v9658_v38 = vmax.f32 %v9375_v2, %v4492_v55  ;;  %v9661_v60 = vmax.f32 %v9371_v39, %v4494_v13  ;;  %v9666_v52 = vpack.c.bf16 %v4672_v33, %v4671_v24  ;;  %v4675_v39 = vld [vmem:[%s10534_s5 + $0x150] sm:$0xff]  ;;  %10554 = vst [vmem:[#allocation8_spill] sm:$0xff] %v9696_v63 }
 0x645   :  { %v9672_v2 = vpack.c.bf16 %v4674_v9, %v4673_v41  ;;  %v9685_v10 = vpack.c.bf16 %v4676_v7, %v4675_v39  ;;  %v9706_v6 = vpack.c.bf16 %v4680_v46, %v4679_v37 }
 0x646   :  { %v7412_v47 = vpack.i.bf16 %v4532_v56, %v9658_v38  ;;  %v7407_v40 = vpack.i.bf16 %v9661_v60, %v9655_v31  ;;  %7024 = vmatprep.subr.bf16.mxu0 %v9666_v52 }
 0x647   :  { %7026 = vmatpush3.bf16.msra.mxu0 %v9666_v52  ;;  %10555 = vst [vmem:[#allocation9_spill] sm:$0xff] %v9706_v6 }
 0x648   :  { %7413 = vrot.lane.b32.xlu1 %v7412_v47, %s7625_s16  ;;  %7408 = vrot.lane.b32.xlu0 %v7407_v40, %s7625_s16 }
 0x649   :  { %7028 = vmatprep.subr.bf16.mxu0 %v9672_v2 }
 0x64b   :  { %7030 = vmatpush3.bf16.msra.mxu0 %v9672_v2 }
 0x64c   :  { %7032 = vmatprep.subr.bf16.mxu0 %v9685_v10 }
 0x64f   :  { %7034 = vmatpush3.bf16.msra.mxu0 %v9685_v10 }
 0x650   :  { %7036 = vmatprep.subr.bf16.mxu0 %v9696_v63 }
 0x653   :  { %7038 = vmatpush3.bf16.msra.mxu0 %v9696_v63 }
 0x654   :  { %v7379_v17 = vpop.permute.xlu0 %7378  ;;  %v7384_v58 = vpop.permute.xlu1 %7383  ;;  %7040 = vmatprep.subr.bf16.mxu0 %v9706_v6 }
 0x655   :  { %v7381_v19 = vunpack.i.h.bf16 %v7379_v17  ;;  %v7380_v44 = vunpack.i.l.bf16 %v7379_v17  ;;  %v7386_v62 = vunpack.i.h.bf16 %v7384_v58  ;;  %v7385_v22 = vunpack.i.l.bf16 %v7384_v58  ;;  %v4210_v24 = vpop.f32.mrb[104].mxu1 }
 0x656   :  { %v4212_v33 = vpop.f32.mrb[105].mxu1 }
 0x657   :  { %v4533_v55 = vmax.f32 %v9406_v11, %v7381_v19  ;;  %v4497_v56 = vsel %vm3057_vm8, %v7380_v44, %v7381_v19  ;;  %v4495_v13 = vsel %vm3057_vm8, %v7386_v62, %v7385_v22  ;;  %v4496_v41 = vsel %vm3057_vm8, %v7385_v22, %v7380_v44  ;;  %v4214_v9 = vpop.f32.mrb[106].mxu1  ;;  %7042 = vmatpush3.bf16.msra.mxu0 %v9706_v6 }
 0x658   :  { %v9713_v47 = vmax.f32 %v9402_v51, %v4497_v56  ;;  %v9716_v40 = vmax.f32 %v9410_v29, %v4495_v13  ;;  %v9719_v39 = vmax.f32 %v9414_v20, %v4496_v41  ;;  %v7389_v7 = vpop.permute.xlu0 %7388  ;;  %v7394_v48 = vpop.permute.xlu1 %7393 }
 0x659   :  { %v7391_v11 = vunpack.i.h.bf16 %v7389_v7  ;;  %v7390_v14 = vunpack.i.l.bf16 %v7389_v7  ;;  %v7396_v17 = vunpack.i.h.bf16 %v7394_v48  ;;  %v7395_v58 = vunpack.i.l.bf16 %v7394_v48  ;;  %v4216_v37 = vpop.f32.mrb[107].mxu1 }
 0x65a   :  { %v7417_v51 = vpack.i.bf16 %v4533_v55, %v9713_v47  ;;  %v7422_v29 = vpack.i.bf16 %v9716_v40, %v9719_v39 }
 0x65b   :  { %v4499_v46 = vsel %vm3057_vm8, %v7390_v14, %v7391_v11  ;;  %v4498_v20 = vsel %vm3057_vm8, %v7396_v17, %v7390_v14  ;;  %v4534_v19 = vmax.f32 %v9434_v0, %v7395_v58  ;;  %v4500_v44 = vsel %vm3057_vm8, %v7391_v11, %v7395_v58 }
 0x65c   :  { %v9731_v62 = vmax.f32 %v9418_v5, %v4499_v46  ;;  %v9734_v22 = vmax.f32 %v9430_v25, %v4498_v20  ;;  %v9737_v24 = vmax.f32 %v9422_v21, %v4500_v44  ;;  %v7399_v33 = vpop.permute.xlu0 %7398  ;;  %v7404_v55 = vpop.permute.xlu1 %7403  ;;  %7423 = vrot.lane.b32.xlu1 %v7422_v29, %s7625_s16  ;;  %7418 = vrot.lane.b32.xlu0 %v7417_v51, %s7625_s16 }
 0x65d   :  { %v7401_v56 = vunpack.i.h.bf16 %v7399_v33  ;;  %v7400_v13 = vunpack.i.l.bf16 %v7399_v33  ;;  %v7406_v0 = vunpack.i.h.bf16 %v7404_v55  ;;  %v7405_v41 = vunpack.i.l.bf16 %v7404_v55  ;;  %v4220_v9 = vpop.f32.mrb[108].mxu1 }
 0x65e   :  { %v7432_v5 = vpack.i.bf16 %v4534_v19, %v9734_v22  ;;  %v7427_v25 = vpack.i.bf16 %v9737_v24, %v9731_v62  ;;  %v4222_v7 = vpop.f32.mrb[109].mxu1 }
 0x65f   :  { %v4535_v21 = vmax.f32 %v9446_v30, %v7401_v56  ;;  %v4503_v48 = vsel %vm3057_vm8, %v7400_v13, %v7401_v56  ;;  %v4501_v11 = vsel %vm3057_vm8, %v7406_v0, %v7405_v41  ;;  %v4502_v14 = vsel %vm3057_vm8, %v7405_v41, %v7400_v13  ;;  %v4224_v17 = vpop.f32.mrb[110].mxu1 }
 0x660   :  { %v9749_v58 = vmax.f32 %v9442_v49, %v4503_v48  ;;  %v9752_v37 = vmax.f32 %v9450_v45, %v4501_v11  ;;  %v9755_v51 = vmax.f32 %v9454_v32, %v4502_v14  ;;  %7433 = vrot.lane.b32.xlu1 %v7432_v5, %s7625_s16  ;;  %7428 = vrot.lane.b32.xlu0 %v7427_v25, %s7625_s16  ;;  %v4226_v30 = vpop.f32.mrb[111].mxu1 }
 0x662   :  { %v7437_v29 = vpack.i.bf16 %v4535_v21, %v9749_v58  ;;  %v7442_v46 = vpack.i.bf16 %v9752_v37, %v9755_v51 }
 0x664   :  { %7443 = vrot.lane.b32.xlu1 %v7442_v46, %s7625_s16  ;;  %7438 = vrot.lane.b32.xlu0 %v7437_v29, %s7625_s16 }
 0x665   :  { %v4263_v49 = vpop.f32.mrb[108].mxu0 }
 0x666   :  { %v4265_v45 = vpop.f32.mrb[109].mxu0 }
 0x667   :  { %v4267_v20 = vpop.f32.mrb[110].mxu0  ;;  %v9771_v7 = vadd.f32 %v4265_v45, %v9362_v26 }
 0x668   :  { %v4269_v19 = vpop.f32.mrb[111].mxu0 }
 0x66d   :  { %v4273_v32 = vpop.f32.mrb[112].mxu0 }
 0x66e   :  { %v4275_v44 = vpop.f32.mrb[113].mxu0 }
 0x66f   :  { %v4277_v33 = vpop.f32.mrb[114].mxu0 }
 0x670   :  { %v4279_v55 = vpop.f32.mrb[115].mxu0 }
 0x6a2   :  { %v4316_v56 = vpop.f32.mrb[112].mxu1 }
 0x6a3   :  { %v9765_v13 = vadd.f32 %v4316_v56, %v9362_v26  ;;  %v4318_v0 = vpop.f32.mrb[113].mxu1 }
 0x6a4   :  { %v9768_v41 = vadd.f32 %v4318_v0, %v9362_v26  ;;  %v4320_v9 = vpop.f32.mrb[114].mxu1 }
 0x6a5   :  { %v4322_v5 = vpop.f32.mrb[115].mxu1  ;;  %v4369_v25 = vpop.f32.mrb[116].mxu0  ;;  %v9779_v17 = vadd.f32 %v4320_v9, %v9398_v36 }
 0x6a6   :  { %v7447_v21 = vpack.i.bf16 %v9768_v41, %v9765_v13  ;;  %v9776_v48 = vadd.f32 %v4369_v25, %v9362_v26  ;;  %v4371_v11 = vpop.f32.mrb[117].mxu0  ;;  %v9782_v30 = vadd.f32 %v4322_v5, %v9398_v36  ;;  %v9791_v26 = vadd.f32 %v4269_v19, %v9398_v36 }
 0x6a7   :  { %v4372_v14 = vpop.f32.mrb[118].mxu0  ;;  %v9806_v5 = vadd.f32 %v4275_v44, %v9396_v28 }
 0x6a8   :  { %v7452_v29 = vpack.i.bf16 %v9771_v7, %v9776_v48  ;;  %v9787_v46 = vadd.f32 %v4372_v14, %v9398_v36  ;;  %7448 = vrot.lane.b32.xlu0 %v7447_v21, %s7636_s15  ;;  %v4374_v49 = vpop.f32.mrb[119].mxu0  ;;  %v7462_v56 = vpack.i.bf16 %v9791_v26, %v9779_v17 }
 0x6aa   :  { %v7457_v45 = vpack.i.bf16 %v9787_v46, %v9782_v30  ;;  %v4326_v20 = vpop.f32.mrb[116].mxu1  ;;  %7453 = vrot.lane.b32.xlu1 %v7452_v29, %s7636_s15 }
 0x6ab   :  { %v9797_v32 = vadd.f32 %v4326_v20, %v9396_v28  ;;  %v4328_v33 = vpop.f32.mrb[117].mxu1  ;;  %v9827_v20 = vadd.f32 %v4279_v55, %v9436_v27 }
 0x6ac   :  { %v9802_v0 = vadd.f32 %v4328_v33, %v9396_v28  ;;  %v4330_v9 = vpop.f32.mrb[118].mxu1  ;;  %7458 = vrot.lane.b32.xlu0 %v7457_v45, %s7636_s15 }
 0x6ad   :  { %v4332_v36 = vpop.f32.mrb[119].mxu1  ;;  %v4377_v19 = vpop.f32.mrb[120].mxu0  ;;  %v9815_v29 = vadd.f32 %v4330_v9, %v9436_v27 }
 0x6ae   :  { %v7467_v25 = vpack.i.bf16 %v9802_v0, %v9797_v32  ;;  %v9811_v21 = vadd.f32 %v4377_v19, %v9396_v28  ;;  %v4379_v11 = vpop.f32.mrb[121].mxu0  ;;  %7463 = vrot.lane.b32.xlu1 %v7462_v56, %s7636_s15  ;;  %v9818_v49 = vadd.f32 %v4332_v36, %v9436_v27 }
 0x6af   :  { %v4380_v14 = vpop.f32.mrb[122].mxu0  ;;  %v7482_v56 = vpack.i.bf16 %v9827_v20, %v9815_v29 }
 0x6b0   :  { %v7472_v44 = vpack.i.bf16 %v9806_v5, %v9811_v21  ;;  %v9823_v45 = vadd.f32 %v4380_v14, %v9436_v27  ;;  %7468 = vrot.lane.b32.xlu0 %v7467_v25, %s7636_s15  ;;  %v4382_v28 = vpop.f32.mrb[123].mxu0 }
 0x6b2   :  { %v7477_v33 = vpack.i.bf16 %v9823_v45, %v9818_v49  ;;  %7473 = vrot.lane.b32.xlu1 %v7472_v44, %s7636_s15 }
 0x6b4   :  { %7478 = vrot.lane.b32.xlu0 %v7477_v33, %s7636_s15 }
 0x6b6   :  { %7483 = vrot.lane.b32.xlu1 %v7482_v56, %s7636_s15 }
 0x6ba   :  { %v7414_v9 = vpop.permute.xlu1 %7413  ;;  %v7409_v36 = vpop.permute.xlu0 %7408 }
 0x6bb   :  { %v7416_v19 = vunpack.i.h.bf16 %v7414_v9  ;;  %v7415_v25 = vunpack.i.l.bf16 %v7414_v9  ;;  %v7411_v11 = vunpack.i.h.bf16 %v7409_v36  ;;  %v7410_v14 = vunpack.i.l.bf16 %v7409_v36 }
 0x6bd   :  { %v4585_v27 = vsel %vm843_vm3, %v7415_v25, %v7410_v14  ;;  %v4586_v55 = vsel %vm843_vm3, %v7410_v14, %v7411_v11  ;;  %v4587_v28 = vsel %vm843_vm3, %v7411_v11, %v7416_v19 }
 0x6be   :  { %v4609_v44 = vmax.f32 %v9658_v38, %v4585_v27  ;;  %v4610_v6 = vmax.f32 %v9655_v31, %v4586_v55  ;;  %v4611_v33 = vmax.f32 %v9661_v60, %v4587_v28 }
 0x6c0   :  { %v4621_v57 = vmax.f32 %v4609_v44, 0.0  ;;  %v4622_v56 = vmax.f32 %v4610_v6, 0.0  ;;  %v4623_v42 = vmax.f32 %v4611_v33, 0.0 }
 0x6c2   :  { %4745 = vmatprep.mubr.f32.mxu1 %v4622_v56  ;;  %6881 = vmatprep.mubr.f32.mxu0 %v4623_v42 }
 0x6c3   :  { %4746 = vmatmul.mubr.f32.vlgmr.msra.gmra.mrb[120].mxu1 %v4621_v57 }
 0x6ce   :  { %v7424_v9 = vpop.permute.xlu1 %7423  ;;  %v7419_v36 = vpop.permute.xlu0 %7418 }
 0x6cf   :  { %v7426_v63 = vunpack.i.h.bf16 %v7424_v9  ;;  %v7425_v25 = vunpack.i.l.bf16 %v7424_v9  ;;  %v7421_v54 = vunpack.i.h.bf16 %v7419_v36  ;;  %v7420_v14 = vunpack.i.l.bf16 %v7419_v36 }
 0x6d1   :  { %v4590_v19 = vsel %vm843_vm3, %v7420_v14, %v7421_v54  ;;  %v4589_v38 = vsel %vm843_vm3, %v7425_v25, %v7420_v14  ;;  %v4588_v31 = vsel %vm843_vm3, %v7426_v63, %v7425_v25 }
 0x6d2   :  { %v4614_v60 = vmax.f32 %v9713_v47, %v4590_v19  ;;  %v7434_v11 = vpop.permute.xlu1 %7433  ;;  %v7429_v6 = vpop.permute.xlu0 %7428  ;;  %v4613_v27 = vmax.f32 %v9719_v39, %v4589_v38  ;;  %v4612_v42 = vmax.f32 %v9716_v40, %v4588_v31 }
 0x6d3   :  { %v7436_v57 = vunpack.i.h.bf16 %v7434_v11  ;;  %v7435_v55 = vunpack.i.l.bf16 %v7434_v11  ;;  %v7431_v28 = vunpack.i.h.bf16 %v7429_v6  ;;  %v7430_v44 = vunpack.i.l.bf16 %v7429_v6 }
 0x6d4   :  { %v4626_v33 = vmax.f32 %v4614_v60, 0.0  ;;  %v4625_v56 = vmax.f32 %v4613_v27, 0.0  ;;  %v4624_v9 = vmax.f32 %v4612_v42, 0.0 }
 0x6d5   :  { %v4592_v54 = vsel %vm843_vm3, %v7430_v44, %v7431_v28  ;;  %v4593_v36 = vsel %vm843_vm3, %v7431_v28, %v7436_v57  ;;  %v4591_v63 = vsel %vm843_vm3, %v7435_v55, %v7430_v44 }
 0x6d6   :  { %v7444_v47 = vpop.permute.xlu1 %7443  ;;  %v7439_v25 = vpop.permute.xlu0 %7438  ;;  %4750 = vmatprep.mubr.f32.mxu1 %v4625_v56  ;;  %6882 = vmatmul.mubr.f32.vlgmr.msra.gmra.mrb[124].mxu0 %v4626_v33  ;;  %v4616_v39 = vmax.f32 %v9731_v62, %v4592_v54  ;;  %v4617_v40 = vmax.f32 %v9737_v24, %v4593_v36  ;;  %v4615_v14 = vmax.f32 %v9734_v22, %v4591_v63 }
 0x6d7   :  { %v7446_v19 = vunpack.i.h.bf16 %v7444_v47  ;;  %v7445_v38 = vunpack.i.l.bf16 %v7444_v47  ;;  %v7441_v31 = vunpack.i.h.bf16 %v7439_v25  ;;  %v7440_v60 = vunpack.i.l.bf16 %v7439_v25  ;;  %4751 = vmatmul.mubr.f32.gmra.mrb[122].mxu1 %v4624_v9 }
 0x6d8   :  { %v4628_v11 = vmax.f32 %v4616_v39, 0.0  ;;  %v4629_v6 = vmax.f32 %v4617_v40, 0.0  ;;  %v4627_v27 = vmax.f32 %v4615_v14, 0.0 }
 0x6d9   :  { %v4595_v42 = vsel %vm843_vm3, %v7445_v38, %v7440_v60  ;;  %v4596_v57 = vsel %vm843_vm3, %v7440_v60, %v7441_v31  ;;  %v4594_v55 = vsel %vm843_vm3, %v7446_v19, %v7445_v38 }
 0x6da   :  { %4755 = vmatprep.mubr.f32.mxu1 %v4628_v11  ;;  %6884 = vmatprep.mubr.f32.mxu0 %v4629_v6  ;;  %v4619_v62 = vmax.f32 %v9755_v51, %v4595_v42  ;;  %v4620_v22 = vmax.f32 %v9749_v58, %v4596_v57  ;;  %v4618_v24 = vmax.f32 %v9752_v37, %v4594_v55 }
 0x6db   :  { %4756 = vmatmul.mubr.f32.gmra.mrb[124].mxu1 %v4627_v27 }
 0x6dc   :  { %v4631_v28 = vmax.f32 %v4619_v62, 0.0  ;;  %v4632_v44 = vmax.f32 %v4620_v22, 0.0  ;;  %v4630_v33 = vmax.f32 %v4618_v24, 0.0 }
 0x6de   :  { %4760 = vmatprep.mubr.f32.mxu1 %v4631_v28  ;;  %6885 = vmatmul.mubr.f32.gmra.mrb[126].mxu0 %v4632_v44 }
 0x6df   :  { %4761 = vmatmul.mubr.f32.gmra.mrb[126].mxu1 %v4630_v33 }
 0x71a   :  { %v7449_v56 = vpop.permute.xlu0 %7448 }
 0x71b   :  { %v7451_v9 = vunpack.i.h.bf16 %v7449_v56  ;;  %v7450_v54 = vunpack.i.l.bf16 %v7449_v56 }
 0x71c   :  { %v7454_v36 = vpop.permute.xlu1 %7453 }
 0x71d   :  { %v5217_v63 = vsel %vm3057_vm8, %v7450_v54, %v7451_v9  ;;  %v7456_v47 = vunpack.i.h.bf16 %v7454_v36  ;;  %v7455_v25 = vunpack.i.l.bf16 %v7454_v36 }
 0x71e   :  { %v7459_v51 = vpop.permute.xlu0 %7458  ;;  %v9867_v14 = vmax.f32 %v9765_v13, %v5217_v63 }
 0x71f   :  { %v5216_v58 = vsel %vm3057_vm8, %v7456_v47, %v7450_v54  ;;  %v9863_v37 = vmax.f32 %v9776_v48, %v7455_v25  ;;  %v5218_v39 = vsel %vm3057_vm8, %v7451_v9, %v7455_v25  ;;  %v7461_v40 = vunpack.i.h.bf16 %v7459_v51 }
 0x720   :  { %v9870_v19 = vmax.f32 %v9771_v7, %v5216_v58  ;;  %v9873_v38 = vmax.f32 %v9768_v41, %v5218_v39  ;;  %v7460_v31 = vunpack.i.l.bf16 %v7459_v51  ;;  %v7464_v60 = vpop.permute.xlu1 %7463 }
 0x721   :  { %v7466_v11 = vunpack.i.h.bf16 %v7464_v60  ;;  %v7465_v6 = vunpack.i.l.bf16 %v7464_v60  ;;  %v9878_v27 = vmax.f32 %v9787_v46, %v7461_v40 }
 0x722   :  { %v7487_v48 = vpack.i.bf16 %v9870_v19, %v9863_v37  ;;  %v5221_v42 = vsel %vm3057_vm8, %v7460_v31, %v7461_v40  ;;  %v7469_v13 = vpop.permute.xlu0 %7468  ;;  %v7492_v7 = vpack.i.bf16 %v9873_v38, %v9867_v14 }
 0x723   :  { %v9884_v57 = vmax.f32 %v9782_v30, %v5221_v42  ;;  %v5219_v41 = vsel %vm3057_vm8, %v7466_v11, %v7465_v6  ;;  %v5220_v55 = vsel %vm3057_vm8, %v7465_v6, %v7460_v31  ;;  %v7471_v62 = vunpack.i.h.bf16 %v7469_v13 }
 0x724   :  { %v9889_v22 = vmax.f32 %v9791_v26, %v5219_v41  ;;  %v9892_v46 = vmax.f32 %v9779_v17, %v5220_v55  ;;  %v7470_v24 = vunpack.i.l.bf16 %v7469_v13  ;;  %v7474_v28 = vpop.permute.xlu1 %7473  ;;  %7488 = vrot.lane.b32.xlu1 %v7487_v48, %s7625_s16  ;;  %7493 = vrot.lane.b32.xlu0 %v7492_v7, %s7625_s16  ;;  %v4851_v7 = vld [vmem:[%s10535_s6] sm:$0xff] }
 0x725   :  { %v7476_v44 = vunpack.i.h.bf16 %v7474_v28  ;;  %v7475_v30 = vunpack.i.l.bf16 %v7474_v28  ;;  %v7497_v33 = vpack.i.bf16 %v9878_v27, %v9884_v57  ;;  %v4853_v28 = vld [vmem:[%s10535_s6 + $0x10] sm:$0xff] }
 0x726   :  { %v5223_v56 = vsel %vm3057_vm8, %v7470_v24, %v7471_v62  ;;  %v7479_v9 = vpop.permute.xlu0 %7478  ;;  %v7502_v26 = vpack.i.bf16 %v9889_v22, %v9892_v46 }
 0x727   :  { %v9902_v17 = vmax.f32 %v9797_v32, %v5223_v56  ;;  %v5222_v54 = vsel %vm3057_vm8, %v7476_v44, %v7470_v24  ;;  %v9906_v36 = vmax.f32 %v9811_v21, %v7475_v30  ;;  %v5224_v63 = vsel %vm3057_vm8, %v7471_v62, %v7475_v30  ;;  %v4855_v24 = vld [vmem:[%s10535_s6 + $0x20] sm:$0xff]  ;;  %v4857_v44 = vld [vmem:[%s10535_s6 + $0x30] sm:$0xff] }
 0x728   :  { %v9910_v47 = vmax.f32 %v9806_v5, %v5222_v54  ;;  %v9913_v25 = vmax.f32 %v9802_v0, %v5224_v63  ;;  %v7481_v51 = vunpack.i.h.bf16 %v7479_v9  ;;  %v7480_v58 = vunpack.i.l.bf16 %v7479_v9  ;;  %v7484_v39 = vpop.permute.xlu1 %7483  ;;  %7503 = vrot.lane.b32.xlu1 %v7502_v26, %s7625_s16  ;;  %7498 = vrot.lane.b32.xlu0 %v7497_v33, %s7625_s16 }
 0x729   :  { %v7486_v32 = vunpack.i.h.bf16 %v7484_v39  ;;  %v7485_v40 = vunpack.i.l.bf16 %v7484_v39  ;;  %v9971_v30 = vpack.c.bf16 %v4855_v24, %v4851_v7  ;;  %v9973_v33 = vpack.c.bf16 %v4857_v44, %v4853_v28 }
 0x72a   :  { %v7507_v21 = vpack.i.bf16 %v9910_v47, %v9906_v36  ;;  %v9920_v31 = vmax.f32 %v9823_v45, %v7481_v51  ;;  %v5227_v5 = vsel %vm3057_vm8, %v7480_v58, %v7481_v51  ;;  %v7512_v0 = vpack.i.bf16 %v9913_v25, %v9902_v17  ;;  %v4852_v45 = vld [vmem:[%s10535_s6 + $0x8] sm:$0xff] }
 0x72b   :  { %v9926_v60 = vmax.f32 %v9818_v49, %v5227_v5  ;;  %v5225_v11 = vsel %vm3057_vm8, %v7486_v32, %v7485_v40  ;;  %v5226_v6 = vsel %vm3057_vm8, %v7485_v40, %v7480_v58  ;;  %v4856_v49 = vld [vmem:[%s10535_s6 + $0x28] sm:$0xff]  ;;  %v7645_v56 = vmov 0.0  }
 0x72c   :  { %v9931_v48 = vmax.f32 %v9827_v20, %v5225_v11  ;;  %v9934_v42 = vmax.f32 %v9815_v29, %v5226_v6  ;;  %7508 = vrot.lane.b32.xlu1 %v7507_v21, %s7625_s16  ;;  %7513 = vrot.lane.b32.xlu0 %v7512_v0, %s7625_s16  ;;  %v9944_v13 = vpack.c.bf16 %v4856_v49, %v4852_v45  ;;  %v4854_v20 = vld [vmem:[%s10535_s6 + $0x18] sm:$0xff]  ;;  %vm6408_vm8 = vcmask 33792  }
 0x72d   :  { %v4858_v29 = vld [vmem:[%s10535_s6 + $0x38] sm:$0xff]  ;;  %v7517_v41 = vpack.i.bf16 %v9920_v31, %v9926_v60  ;;  %4936 = vmatprep.mubr.f32.mxu0 %v7645_v56  ;;  %5025 = vmatprep.mubr.f32.mxu1 %v7645_v56 }
 0x72e   :  { %v7522_v55 = vpack.i.bf16 %v9931_v48, %v9934_v42  ;;  %v9959_v62 = vpack.c.bf16 %v4858_v29, %v4854_v20  ;;  %7044 = vmatprep.subr.bf16.mxu0 %v9944_v13 }
 0x72f   :  { %7046 = vmatpush1.bf16.msra.mxu0 %v9971_v30 }
 0x730   :  { %7523 = vrot.lane.b32.xlu1 %v7522_v55, %s7625_s16  ;;  %7518 = vrot.lane.b32.xlu0 %v7517_v41, %s7625_s16 }
 0x731   :  { %7048 = vmatprep.subr.bf16.mxu1 %v9959_v62  ;;  %7052 = vmatprep.subr.bf16.mxu0 %v9474_v1 }
 0x732   :  { %7050 = vmatpush1.bf16.msra.mxu1 %v9973_v33 }
 0x733   :  { %7084 = vmatprep.subr.bf16.mxu1 %v9566_v4 }
 0x796   :  { %v7489_v9 = vpop.permute.xlu1 %7488  ;;  %v7494_v26 = vpop.permute.xlu0 %7493 }
 0x797   :  { %v7491_v54 = vunpack.i.h.bf16 %v7489_v9  ;;  %v7490_v63 = vunpack.i.l.bf16 %v7489_v9  ;;  %v7496_v51 = vunpack.i.h.bf16 %v7494_v26  ;;  %v7495_v58 = vunpack.i.l.bf16 %v7494_v26  ;;  %v6657_v39 = vpop.f32.mrb[120].mxu1 }
 0x798   :  { %v6658_v32 = vpop.f32.mrb[121].mxu1 }
 0x799   :  { %v5339_v40 = vmax.f32 %v9863_v37, %v7490_v63  ;;  %v5310_v21 = vsel %vm843_vm3, %v7496_v51, %v7490_v63  ;;  %v5308_v5 = vsel %vm843_vm3, %v7491_v54, %v7495_v58  ;;  %v5309_v0 = vsel %vm843_vm3, %v7495_v58, %v7496_v51 }
 0x79a   :  { %v5338_v1 = vmax.f32 %v9873_v38, %v5310_v21  ;;  %v5336_v11 = vmax.f32 %v9870_v19, %v5308_v5  ;;  %v5337_v6 = vmax.f32 %v9867_v14, %v5309_v0  ;;  %v9991_v45 = vadd.f32 %v6658_v32, %v6657_v39  ;;  %v7504_v49 = vpop.permute.xlu1 %7503  ;;  %v7499_v20 = vpop.permute.xlu0 %7498 }
 0x79b   :  { %v7506_v29 = vunpack.i.h.bf16 %v7504_v49  ;;  %v7505_v7 = vunpack.i.l.bf16 %v7504_v49  ;;  %v7501_v41 = vunpack.i.h.bf16 %v7499_v20  ;;  %v7500_v24 = vunpack.i.l.bf16 %v7499_v20 }
 0x79c   :  { %v5354_v37 = vmax.f32 %v5338_v1, 0.0  ;;  %v5353_v55 = vmax.f32 %v5337_v6, 0.0  ;;  %v5355_v28 = vmax.f32 %v5339_v40, 0.0  ;;  %v5352_v44 = vmax.f32 %v5336_v11, 0.0 }
 0x79d   :  { %v5311_v9 = vsel %vm843_vm3, %v7506_v29, %v7505_v7  ;;  %v5343_v38 = vmax.f32 %v9878_v27, %v7501_v41  ;;  %v5313_v14 = vsel %vm843_vm3, %v7500_v24, %v7501_v41  ;;  %v5312_v26 = vsel %vm843_vm3, %v7505_v7, %v7500_v24 }
 0x79e   :  { %v5340_v19 = vmax.f32 %v9889_v22, %v5311_v9  ;;  %v7509_v54 = vpop.permute.xlu1 %7508  ;;  %v7514_v63 = vpop.permute.xlu0 %7513  ;;  %v7527_v51 = vpack.i.bf16 %v5354_v37, %v5353_v55  ;;  %v5342_v39 = vmax.f32 %v9884_v57, %v5313_v14  ;;  %v5341_v32 = vmax.f32 %v9892_v46, %v5312_v26 }
 0x79f   :  { %v5359_v58 = vmax.f32 %v5343_v38, 0.0  ;;  %v7511_v40 = vunpack.i.h.bf16 %v7509_v54  ;;  %v7510_v21 = vunpack.i.l.bf16 %v7509_v54  ;;  %v7516_v5 = vunpack.i.h.bf16 %v7514_v63 }
 0x7a0   :  { %v7515_v0 = vunpack.i.l.bf16 %v7514_v63  ;;  %7528 = vrot.lane.b32.xlu0 %v7527_v51, %s7638_s19  ;;  %v5356_v27 = vmax.f32 %v5340_v19, 0.0  ;;  %v5358_v22 = vmax.f32 %v5342_v39, 0.0  ;;  %v5357_v1 = vmax.f32 %v5341_v32, 0.0 }
 0x7a1   :  { %v7532_v11 = vpack.i.bf16 %v5355_v28, %v5352_v44  ;;  %v5347_v6 = vmax.f32 %v9906_v36, %v7510_v21  ;;  %v5316_v49 = vsel %vm843_vm3, %v7516_v5, %v7510_v21 }
 0x7a2   :  { %v5314_v20 = vsel %vm843_vm3, %v7511_v40, %v7515_v0  ;;  %v5315_v57 = vsel %vm843_vm3, %v7515_v0, %v7516_v5  ;;  %v7524_v29 = vpop.permute.xlu1 %7523  ;;  %v7519_v46 = vpop.permute.xlu0 %7518  ;;  %v7537_v7 = vpack.i.bf16 %v5359_v58, %v5358_v22  ;;  %v5346_v41 = vmax.f32 %v9913_v25, %v5316_v49 }
 0x7a3   :  { %v5344_v37 = vmax.f32 %v9910_v47, %v5314_v20  ;;  %v5345_v55 = vmax.f32 %v9902_v17, %v5315_v57  ;;  %7533 = vrot.lane.b32.xlu1 %v7532_v11, %s7638_s19  ;;  %v5363_v24 = vmax.f32 %v5347_v6, 0.0  ;;  %v7526_v28 = vunpack.i.h.bf16 %v7524_v29 }
 0x7a4   :  { %v7525_v36 = vunpack.i.l.bf16 %v7524_v29  ;;  %v7521_v44 = vunpack.i.h.bf16 %v7519_v46  ;;  %v5362_v9 = vmax.f32 %v5346_v41, 0.0  ;;  %v7520_v14 = vunpack.i.l.bf16 %v7519_v46  ;;  %7538 = vrot.lane.b32.xlu0 %v7537_v7, %s7638_s19 }
 0x7a5   :  { %v5360_v38 = vmax.f32 %v5344_v37, 0.0  ;;  %v5361_v19 = vmax.f32 %v5345_v55, 0.0  ;;  %v7542_v54 = vpack.i.bf16 %v5356_v27, %v5357_v1 }
 0x7a6   :  { %v5317_v26 = vsel %vm843_vm3, %v7526_v28, %v7525_v36  ;;  %v5351_v25 = vmax.f32 %v9920_v31, %v7521_v44  ;;  %v5319_v17 = vsel %vm843_vm3, %v7520_v14, %v7521_v44  ;;  %v5318_v63 = vsel %vm843_vm3, %v7525_v36, %v7520_v14 }
 0x7a7   :  { %v5348_v47 = vmax.f32 %v9931_v48, %v5317_v26  ;;  %v7547_v51 = vpack.i.bf16 %v5362_v9, %v5361_v19  ;;  %v5350_v39 = vmax.f32 %v9926_v60, %v5319_v17  ;;  %v5349_v32 = vmax.f32 %v9934_v42, %v5318_v63  ;;  %7543 = vrot.lane.b32.xlu1 %v7542_v54, %s7638_s19 }
 0x7a8   :  { %v5367_v58 = vmax.f32 %v5351_v25, 0.0  ;;  %v7552_v40 = vpack.i.bf16 %v5363_v24, %v5360_v38  ;;  %vm6390_vm3 = vcmask 107600  }
 0x7a9   :  { %v5364_v21 = vmax.f32 %v5348_v47, 0.0  ;;  %7548 = vrot.lane.b32.xlu0 %v7547_v51, %s7638_s19  ;;  %v6883_v31 = vpop.f32.mrb[124].mxu0  ;;  %v5366_v5 = vmax.f32 %v5350_v39, 0.0  ;;  %v5365_v0 = vmax.f32 %v5349_v32, 0.0 }
 0x7aa   :  { %v6660_v48 = vpop.f32.mrb[122].mxu1  ;;  %v4832_v27 = vpop.f32.mrb[125].mxu0 }
 0x7ab   :  { %v4833_v22 = vadd.f32 %v9991_v45, %v4832_v27  ;;  %v6661_v1 = vpop.f32.mrb[123].mxu1  ;;  %v7557_v11 = vpack.i.bf16 %v5367_v58, %v5366_v5  ;;  %7553 = vrot.lane.b32.xlu1 %v7552_v40, %s7638_s19  ;;  %v7562_v6 = vpack.i.bf16 %v5364_v21, %v5365_v0  ;;  %v10088_v5 = vld [vmem:[%s10536_s7] sm:$0xff]  ;;  %v10093_v0 = vld [vmem:[%s10536_s7 + $0x10] sm:$0xff] }
 0x7ac   :  { %v6662_v60 = vadd.f32 %v6661_v1, %v6660_v48  ;;  %v10103_v1 = vld [vmem:[%s10536_s7 + $0x20] sm:$0xff] }
 0x7ad   :  { %6605 = vmatmul.mubr.msk.f32.vlgmr.msra.gmra.mrb[128].mxu0 %vm3701_vm4, %v4833_v22  ;;  %6609 = vmatmul.mubr.msk.f32.vlgmr.msra.gmra.mrb[128].mxu1 %vm3701_vm4, %v4833_v22  ;;  %v10098_v22 = vld [vmem:[%s10536_s7 + $0x8] sm:$0xff] }
 0x7ae   :  { %v4838_v42 = vadd.f32 %v6883_v31, %v6662_v60  ;;  %7558 = vrot.lane.b32.xlu0 %v7557_v11, %s7638_s19  ;;  %v6663_v49 = vpop.f32.mrb[124].mxu1  ;;  %4942 = vmatprep.mubr.f32.mxu0 %v7645_v56  ;;  %v10108_v11 = vld [vmem:[%s10536_s7 + $0x30] sm:$0xff]  ;;  %v10113_v60 = vld [vmem:[%s10536_s7 + $0x18] sm:$0xff] }
 0x7af   :  { %v6664_v20 = vpop.f32.mrb[125].mxu1  ;;  %5031 = vmatprep.mubr.f32.mxu1 %v7645_v56  ;;  %7054 = vmatpush3.bf16.msra.mxu0 %v9482_v34 }
 0x7b0   :  { %7563 = vrot.lane.b32.xlu1 %v7562_v6, %s7638_s19  ;;  %v6665_v45 = vadd.f32 %v6664_v20, %v6663_v49  ;;  %7056 = vmatprep.subr.bf16.mxu0 %v9495_v23  ;;  %v10118_v6 = vld [vmem:[%s10536_s7 + $0x28] sm:$0xff] }
 0x7b1   :  { %v6886_v57 = vpop.f32.mrb[126].mxu0  ;;  %6606 = vmatmul.mubr.msk.f32.gmra.mrb[130].mxu0 %vm3701_vm4, %v4838_v42  ;;  %6610 = vmatmul.mubr.msk.f32.gmra.mrb[130].mxu1 %vm3701_vm4, %v4838_v42  ;;  %v10123_v42 = vld [vmem:[%s10536_s7 + $0x38] sm:$0xff] }
 0x7b2   :  { %v6666_v29 = vpop.f32.mrb[126].mxu1  ;;  %v4842_v46 = vpop.f32.mrb[127].mxu0  ;;  %4948 = vmatprep.mubr.f32.mxu0 %v7645_v56  ;;  %5037 = vmatprep.mubr.f32.mxu1 %v7645_v56 }
 0x7b3   :  { %v4843_v7 = vadd.f32 %v6665_v45, %v4842_v46  ;;  %v6667_v41 = vpop.f32.mrb[127].mxu1  ;;  %7086 = vmatpush3.bf16.msra.mxu1 %v9566_v4  ;;  %7058 = vmatpush3.bf16.msra.mxu0 %v9500_v43  ;;  %v10556_v43 = vld [vmem:[#allocation5_spill] sm:$0xff] }
 0x7b4   :  { %v6668_v34 = vadd.f32 %v6667_v41, %v6666_v29  ;;  %7088 = vmatprep.subr.bf16.mxu1 %v9592_v8  ;;  %7060 = vmatprep.subr.bf16.mxu0 %v9510_v18  ;;  %v10557_v18 = vld [vmem:[#allocation8_spill] sm:$0xff] }
 0x7b5   :  { %6607 = vmatmul.mubr.msk.f32.gmra.mrb[132].mxu0 %vm3701_vm4, %v4843_v7  ;;  %6611 = vmatmul.mubr.msk.f32.gmra.mrb[132].mxu1 %vm3701_vm4, %v4843_v7 }
 0x7b6   :  { %v4848_v23 = vadd.f32 %v6886_v57, %v6668_v34  ;;  %4954 = vmatprep.mubr.f32.mxu0 %v7645_v56  ;;  %5043 = vmatprep.mubr.f32.mxu1 %v7645_v56 }
 0x7b7   :  { %7090 = vmatpush3.bf16.msra.mxu1 %v9592_v8  ;;  %7062 = vmatpush3.bf16.msra.mxu0 %v9518_v3  ;;  %v10558_v3 = vld [vmem:[#allocation6_spill] sm:$0xff] }
 0x7b8   :  { %7092 = vmatprep.subr.bf16.mxu1 %v9632_v59  ;;  %7064 = vmatprep.subr.bf16.mxu0 %v9531_v35  ;;  %v10559_v35 = vld [vmem:[#allocation7_spill] sm:$0xff] }
 0x7b9   :  { %6608 = vmatmul.mubr.msk.f32.gmra.mrb[134].mxu0 %vm3701_vm4, %v4848_v23  ;;  %6612 = vmatmul.mubr.msk.f32.gmra.mrb[134].mxu1 %vm3701_vm4, %v4848_v23 }
 0x7bb   :  { %7094 = vmatpush3.bf16.msra.mxu1 %v9632_v59  ;;  %7066 = vmatpush3.bf16.msra.mxu0 %v9542_v15  ;;  %v10560_v15 = vld [vmem:[#allocation9_spill] sm:$0xff] }
 0x7bc   :  { %7096 = vmatprep.subr.bf16.mxu1 %v9666_v52  ;;  %7068 = vmatprep.subr.bf16.mxu0 %v9544_v50 }
 0x7bf   :  { %7098 = vmatpush3.bf16.msra.mxu1 %v9666_v52  ;;  %7070 = vmatpush3.bf16.msra.mxu0 %v9554_v53 }
 0x7c0   :  { %7100 = vmatprep.subr.bf16.mxu1 %v9672_v2  ;;  %7072 = vmatprep.subr.bf16.mxu0 %v9577_v16 }
 0x7c3   :  { %7102 = vmatpush3.bf16.msra.mxu1 %v9672_v2  ;;  %7074 = vmatpush3.bf16.msra.mxu0 %v9582_v12 }
 0x7c4   :  { %7104 = vmatprep.subr.bf16.mxu1 %v9685_v10  ;;  %7076 = vmatprep.subr.bf16.mxu0 %v9600_v61 }
 0x7c7   :  { %7106 = vmatpush3.bf16.msra.mxu1 %v9685_v10  ;;  %7078 = vmatpush3.bf16.msra.mxu0 %v10556_v43 }
 0x7c8   :  { %7108 = vmatprep.subr.bf16.mxu1 %v10557_v18  ;;  %7080 = vmatprep.subr.bf16.mxu0 %v10558_v3  ;;  %v10136_v3 = vld [vmem:[%s10536_s7 + $0x40] sm:$0xff] }
 0x7cb   :  { %7110 = vmatpush3.bf16.msra.mxu1 %v10557_v18  ;;  %7082 = vmatpush3.bf16.msra.mxu0 %v10559_v35  ;;  %v10141_v35 = vld [vmem:[%s10536_s7 + $0x50] sm:$0xff] }
 0x7cc   :  { %7112 = vmatprep.subr.bf16.mxu1 %v10560_v15  ;;  %7120 = vmatprep.subr.bf16.mxu0 %v9959_v62 }
 0x7cf   :  { %7114 = vmatpush3.bf16.msra.mxu1 %v10560_v15 }
 0x7d0   :  { %7116 = vmatprep.subr.bf16.mxu1 %v9944_v13 }
 0x812   :  { %v7529_v50 = vpop.permute.xlu0 %7528 }
 0x813   :  { %v7531_v53 = vunpack.i.h.bf16 %v7529_v50  ;;  %v7530_v4 = vunpack.i.l.bf16 %v7529_v50 }
 0x815   :  { %v7534_v16 = vpop.permute.xlu1 %7533  ;;  %v5466_v12 = vsel %vm3140_vm10, %v7530_v4, %v7531_v53 }
 0x816   :  { %v7536_v8 = vunpack.i.h.bf16 %v7534_v16  ;;  %v7535_v61 = vunpack.i.l.bf16 %v7534_v16  ;;  %5553 = vmatprep.mubr.f32.mxu0 %v5466_v12  ;;  %v7539_v59 = vpop.permute.xlu0 %7538 }
 0x817   :  { %v7541_v52 = vunpack.i.h.bf16 %v7539_v59  ;;  %v7540_v2 = vunpack.i.l.bf16 %v7539_v59 }
 0x818   :  { %v5467_v10 = vsel %vm3140_vm10, %v7531_v53, %v7536_v8  ;;  %v5465_v62 = vsel %vm3140_vm10, %v7535_v61, %v7530_v4  ;;  %v10146_v53 = vld [vmem:[%s10536_s7 + $0x48] sm:$0xff]  ;;  %v10151_v4 = vld [vmem:[%s10536_s7 + $0x58] sm:$0xff] }
 0x819   :  { %6919 = vmatprep.mubr.f32.mxu1 %v5467_v10  ;;  %5554 = vmatmul.mubr.f32.vlgmr.msra.gmra.mrb[136].mxu0 %v5465_v62  ;;  %v7544_v37 = vpop.permute.xlu1 %7543  ;;  %v5470_v13 = vsel %vm3140_vm10, %v7540_v2, %v7541_v52 }
 0x81a   :  { %7122 = vmatpush1.bf16.msra.mxu0 %v9973_v33  ;;  %v7546_v55 = vunpack.i.h.bf16 %v7544_v37  ;;  %v7545_v24 = vunpack.i.l.bf16 %v7544_v37  ;;  %6920 = vmatmul.mubr.f32.vlgmr.msra.gmra.mrb[136].mxu1 %v5470_v13  ;;  %v10160_v13 = vld [vmem:[%s10536_s7 + $0x60] sm:$0xff] }
 0x81b   :  { %v7549_v28 = vpop.permute.xlu0 %7548  ;;  %7118 = vmatpush1.bf16.msra.mxu1 %v9971_v30 }
 0x81c   :  { %v7551_v36 = vunpack.i.h.bf16 %v7549_v28  ;;  %v7550_v44 = vunpack.i.l.bf16 %v7549_v28  ;;  %v5469_v9 = vsel %vm3140_vm10, %v7545_v24, %v7540_v2  ;;  %v5468_v38 = vsel %vm3140_vm10, %v7546_v55, %v7545_v24  ;;  %v10165_v55 = vld [vmem:[%s10536_s7 + $0x70] sm:$0xff] }
 0x81d   :  { %v7554_v19 = vpop.permute.xlu1 %7553  ;;  %5558 = vmatprep.mubr.f32.mxu0 %v5469_v9 }
 0x81e   :  { %v5472_v14 = vsel %vm3140_vm10, %v7550_v44, %v7551_v36  ;;  %v7556_v26 = vunpack.i.h.bf16 %v7554_v19  ;;  %v7555_v25 = vunpack.i.l.bf16 %v7554_v19  ;;  %5559 = vmatmul.mubr.f32.gmra.mrb[138].mxu0 %v5468_v38 }
 0x81f   :  { %5563 = vmatprep.mubr.f32.mxu0 %v5472_v14 }
 0x820   :  { %v7559_v33 = vpop.permute.xlu0 %7558  ;;  %v5473_v17 = vsel %vm3140_vm10, %v7551_v36, %v7556_v26  ;;  %v5471_v63 = vsel %vm3140_vm10, %v7555_v25, %v7550_v44  ;;  %v10170_v36 = vld [vmem:[%s10536_s7 + $0x68] sm:$0xff]  ;;  %v10175_v44 = vld [vmem:[%s10536_s7 + $0x78] sm:$0xff] }
 0x821   :  { %v7561_v54 = vunpack.i.h.bf16 %v7559_v33  ;;  %v7560_v47 = vunpack.i.l.bf16 %v7559_v33  ;;  %6922 = vmatprep.mubr.f32.mxu1 %v5473_v17 }
 0x822   :  { %v7564_v30 = vpop.permute.xlu1 %7563  ;;  %5564 = vmatmul.mubr.f32.gmra.mrb[140].mxu0 %v5471_v63 }
 0x823   :  { %v7566_v51 = vunpack.i.h.bf16 %v7564_v30  ;;  %v7565_v58 = vunpack.i.l.bf16 %v7564_v30  ;;  %v5476_v39 = vsel %vm3140_vm10, %v7560_v47, %v7561_v54 }
 0x824   :  { %6923 = vmatmul.mubr.f32.gmra.mrb[138].mxu1 %v5476_v39 }
 0x825   :  { %v5475_v32 = vsel %vm3140_vm10, %v7565_v58, %v7560_v47  ;;  %v5474_v40 = vsel %vm3140_vm10, %v7566_v51, %v7565_v58  ;;  %5743 = vmatprep.mubr.f32.mxu1 %v7645_v56  ;;  %vm6401_vm10 = vcmask 25600  }
 0x826   :  { %5568 = vmatprep.mubr.f32.mxu0 %v5475_v32 }
 0x827   :  { %5569 = vmatmul.mubr.f32.gmra.mrb[142].mxu0 %v5474_v40 }
 0x828   :  { %5832 = vmatprep.mubr.f32.mxu0 %v7645_v56 }
 0x880   :  { %v4938_v21 = vpop.f32.mrb[128].mxu0  ;;  %v5027_v31 = vpop.f32.mrb[128].mxu1 }
 0x881   :  { %v4940_v48 = vpop.f32.mrb[129].mxu0  ;;  %v5029_v27 = vpop.f32.mrb[129].mxu1  ;;  %v5066_v45 = vmul.f32 %v10088_v5, %v4938_v21  ;;  %v5068_v57 = vmul.f32 %v10093_v0, %v5027_v31 }
 0x882   :  { %v5067_v34 = vmul.f32 %v10098_v22, %v4940_v48  ;;  %v5069_v23 = vmul.f32 %v10113_v60, %v5029_v27 }
 0x884   :  { %v4944_v49 = vpop.f32.mrb[130].mxu0  ;;  %v5033_v20 = vpop.f32.mrb[130].mxu1 }
 0x885   :  { %v5070_v29 = vmul.f32 %v10103_v1, %v4944_v49  ;;  %v5072_v46 = vmul.f32 %v10108_v11, %v5033_v20  ;;  %v4946_v7 = vpop.f32.mrb[131].mxu0  ;;  %v5035_v41 = vpop.f32.mrb[131].mxu1  ;;  %v7646_v20 = vmov 1966171168  }
 0x886   :  { %v5071_v43 = vmul.f32 %v10118_v6, %v4946_v7  ;;  %v5073_v18 = vmul.f32 %v10123_v42, %v5035_v41 }
 0x887   :  { %v5082_v15 = vadd.f32 %v5070_v29, %v5066_v45  ;;  %v5100_v50 = vadd.f32 %v5072_v46, %v5068_v57  ;;  %v5125_v45 = vunpack.c.l.s4 %v7646_v20  ;;  %v5127_v57 = vlaneseq }
 0x888   :  { %v5091_v16 = vadd.f32 %v5071_v43, %v5067_v34  ;;  %v5109_v12 = vadd.f32 %v5073_v18, %v5069_v23  ;;  %v4950_v8 = vpop.f32.mrb[132].mxu0  ;;  %v5039_v61 = vpop.f32.mrb[132].mxu1 }
 0x889   :  { %v5074_v59 = vmul.f32 %v10136_v3, %v4950_v8  ;;  %v5076_v52 = vmul.f32 %v10141_v35, %v5039_v61  ;;  %v4952_v2 = vpop.f32.mrb[133].mxu0  ;;  %v5041_v10 = vpop.f32.mrb[133].mxu1  ;;  %vm10188_vm0 = vcmp.lt.s32.totalorder %v5127_v57, 512 }
 0x88a   :  { %v5075_v62 = vmul.f32 %v10146_v53, %v4952_v2  ;;  %v5077_v37 = vmul.f32 %v10151_v4, %v5041_v10 }
 0x88b   :  { %v5083_v24 = vadd.f32 %v5082_v15, %v5074_v59  ;;  %v5101_v28 = vadd.f32 %v5100_v50, %v5076_v52  ;;  %v5126_v15 = vunpack.c.0.s8 %v5125_v45  ;;  %v10181_v50 = vshrl.u32 %v5127_v57, 7  ;;  %v5973_v57 = vld [vmem:[%s10537_s8 + $0x80] sm:$0xff] }
 0x88c   :  { %v5092_v9 = vadd.f32 %v5091_v16, %v5075_v62  ;;  %v5110_v38 = vadd.f32 %v5109_v12, %v5077_v37  ;;  %v4956_v19 = vpop.f32.mrb[134].mxu0  ;;  %v5045_v14 = vpop.f32.mrb[134].mxu1 }
 0x88d   :  { %v5078_v26 = vmul.f32 %v10160_v13, %v4956_v19  ;;  %v5080_v25 = vmul.f32 %v10165_v55, %v5045_v14  ;;  %v4958_v33 = vpop.f32.mrb[135].mxu0  ;;  %v5047_v54 = vpop.f32.mrb[135].mxu1  ;;  %v10184_v62 = vsub.s32 %v5126_v15, %v10181_v50  ;;  %v5989_v15 = vld [vmem:[%s10537_s8 + $0x100] sm:$0xff]  ;;  %v6193_v19 = vld [vmem:[%s10538_s10 + $0x10] sm:$0xff] }
 0x88e   :  { %v5079_v47 = vmul.f32 %v10170_v36, %v4958_v33  ;;  %v5081_v17 = vmul.f32 %v10175_v44, %v5047_v54 }
 0x88f   :  { %v5084_v63 = vadd.f32 %v5083_v24, %v5078_v26  ;;  %v5102_v30 = vadd.f32 %v5101_v28, %v5080_v25 }
 0x890   :  { %v5093_v51 = vadd.f32 %v5092_v9, %v5079_v47  ;;  %v5111_v58 = vadd.f32 %v5110_v38, %v5081_v17 }
 0x891   :  { %v5085_v39 = vrot.slane %v5084_v63, 4  ;;  %v5103_v32 = vrot.slane %v5102_v30, 4 }
 0x892   :  { %v5094_v40 = vrot.slane %v5093_v51, 4  ;;  %v5112_v21 = vrot.slane %v5111_v58, 4 }
 0x893   :  { %v5086_v31 = vadd.f32 %v5085_v39, %v5084_v63  ;;  %v5104_v48 = vadd.f32 %v5103_v32, %v5102_v30 }
 0x894   :  { %v5095_v27 = vadd.f32 %v5094_v40, %v5093_v51  ;;  %v5113_v49 = vadd.f32 %v5112_v21, %v5111_v58 }
 0x895   :  { %v5087_v29 = vrot.slane %v5086_v31, 2  ;;  %v5105_v46 = vrot.slane %v5104_v48, 2 }
 0x896   :  { %v5096_v7 = vrot.slane %v5095_v27, 2  ;;  %v5114_v41 = vrot.slane %v5113_v49, 2 }
 0x897   :  { %v5088_v34 = vadd.f32 %v5087_v29, %v5086_v31  ;;  %v5106_v23 = vadd.f32 %v5105_v46, %v5104_v48  ;;  %v5974_v29 = vld [vmem:[%s10537_s8 + $0x88] sm:$0xff] }
 0x898   :  { %v5097_v43 = vadd.f32 %v5096_v7, %v5095_v27  ;;  %v5115_v18 = vadd.f32 %v5114_v41, %v5113_v49  ;;  %v7123_v46 = vpack.c.bf16 %v5974_v29, %v5973_v57  ;;  %v5957_v7 = vld [vmem:[%s10537_s8] sm:$0xff]  ;;  %v5958_v41 = vld [vmem:[%s10537_s8 + $0x8] sm:$0xff]  ;;  %v5995_v29 = vld [vmem:[%s10537_s8 + $0x130] sm:$0xff] }
 0x899   :  { %v5089_v16 = vrot.slane %v5088_v34, 1  ;;  %v5107_v12 = vrot.slane %v5106_v23, 1 }
 0x89a   :  { %v5098_v8 = vrot.slane %v5097_v43, 1  ;;  %v5116_v61 = vrot.slane %v5115_v18, 1  ;;  %7124 = vmatprep.subr.bf16.mxu1 %v7123_v46  ;;  %v5996_v46 = vld [vmem:[%s10537_s8 + $0x138] sm:$0xff] }
 0x89b   :  { %v5090_v59 = vadd.f32 %v5089_v16, %v5088_v34  ;;  %v5108_v52 = vadd.f32 %v5107_v12, %v5106_v23  ;;  %v7125_v34 = vpack.c.bf16 %v5958_v41, %v5957_v7  ;;  %v6005_v23 = vld [vmem:[%s10537_s8 + $0x180] sm:$0xff]  ;;  %v5990_v16 = vld [vmem:[%s10537_s8 + $0x108] sm:$0xff]  ;;  %v7169_v41 = vpack.c.bf16 %v5996_v46, %v5995_v29  ;;  %v5972_v29 = vld [vmem:[%s10537_s8 + $0x78] sm:$0xff] }
 0x89c   :  { %v5099_v2 = vadd.f32 %v5098_v8, %v5097_v43  ;;  %v5117_v10 = vadd.f32 %v5116_v61, %v5115_v18  ;;  %v6006_v43 = vld [vmem:[%s10537_s8 + $0x188] sm:$0xff]  ;;  %v7157_v12 = vpack.c.bf16 %v5990_v16, %v5989_v15  ;;  %v5975_v8 = vld [vmem:[%s10537_s8 + $0x90] sm:$0xff]  ;;  %v5976_v61 = vld [vmem:[%s10537_s8 + $0x98] sm:$0xff] }
 0x89d   :  { %v7155_v18 = vpack.c.bf16 %v6006_v43, %v6005_v23  ;;  %v5981_v7 = vld [vmem:[%s10537_s8 + $0xc0] sm:$0xff]  ;;  %v5966_v43 = vld [vmem:[%s10537_s8 + $0x48] sm:$0xff] }
 0x89e   :  { %v5122_v37 = vcombine.low %v5090_v59, %v5099_v2  ;;  %v5123_v24 = vcombine.low %v5108_v52, %v5117_v10  ;;  %v7127_v59 = vpack.c.bf16 %v5976_v61, %v5975_v8  ;;  %v5959_v52 = vld [vmem:[%s10537_s8 + $0x10] sm:$0xff]  ;;  %v5960_v2 = vld [vmem:[%s10537_s8 + $0x18] sm:$0xff]  ;;  %v5965_v23 = vld [vmem:[%s10537_s8 + $0x40] sm:$0xff] }
 0x89f   :  { %7156 = vmatprep.subr.bf16.mxu0 %v7155_v18  ;;  %v7129_v10 = vpack.c.bf16 %v5960_v2, %v5959_v52  ;;  %v7141_v15 = vpack.c.bf16 %v5966_v43, %v5965_v23  ;;  %v6013_v16 = vld [vmem:[%s10537_s8 + $0x1c0] sm:$0xff]  ;;  %v5983_v52 = vld [vmem:[%s10537_s8 + $0xd0] sm:$0xff]  ;;  %v5984_v2 = vld [vmem:[%s10537_s8 + $0xd8] sm:$0xff] }
 0x8a0   :  { %v5130_v28 = vrot.slane %v5122_v37, %v10184_v62  ;;  %v5137_v9 = vrot.slane %v5123_v24, %v10184_v62  ;;  %v6007_v37 = vld [vmem:[%s10537_s8 + $0x190] sm:$0xff]  ;;  %v6008_v24 = vld [vmem:[%s10537_s8 + $0x198] sm:$0xff]  ;;  %v5997_v8 = vld [vmem:[%s10537_s8 + $0x140] sm:$0xff] }
 0x8a1   :  { %v6004_v23 = vld [vmem:[%s10537_s8 + $0x178] sm:$0xff] }
 0x8a2   :  { %v5138_v38 = vcombine.low %v5130_v28, %v5137_v9  ;;  %v7159_v28 = vpack.c.bf16 %v6008_v24, %v6007_v37  ;;  %v5991_v9 = vld [vmem:[%s10537_s8 + $0x110] sm:$0xff]  ;;  %v7143_v37 = vpack.c.bf16 %v5984_v2, %v5983_v52 }
 0x8a3   :  { %v5967_v24 = vld [vmem:[%s10537_s8 + $0x50] sm:$0xff] }
 0x8a4   :  { %v5145_v14 = vrot.slane %v5138_v38, %v10184_v62  ;;  %v5992_v38 = vld [vmem:[%s10537_s8 + $0x118] sm:$0xff] }
 0x8a6   :  { %5151 = vst.msk [vmem:[#allocation4] ss:$2 sm:$0xf] %vm10188_vm0, %v5145_v14  ;;  %v7161_v14 = vpack.c.bf16 %v5992_v38, %v5991_v9  ;;  %v6015_v9 = vld [vmem:[%s10537_s8 + $0x1d0] sm:$0xff]  ;;  %v6016_v38 = vld [vmem:[%s10537_s8 + $0x1d8] sm:$0xff] }
 0x8ec   :  { %v6721_v26 = vpop.f32.mrb[136].mxu0 }
 0x8ed   :  { %v6722_v25 = vpop.f32.mrb[137].mxu0  ;;  %v6921_v54 = vpop.f32.mrb[136].mxu1 }
 0x8ee   :  { %v6723_v33 = vadd.f32 %v6722_v25, %v6721_v26  ;;  %v5640_v47 = vpop.f32.mrb[137].mxu1  ;;  %v5977_v26 = vld [vmem:[%s10537_s8 + $0xa0] sm:$0xff]  ;;  %v5978_v25 = vld [vmem:[%s10537_s8 + $0xa8] sm:$0xff] }
 0x8f0   :  { %v5641_v17 = vadd.f32 %v6723_v33, %v5640_v47  ;;  %v7131_v33 = vpack.c.bf16 %v5978_v25, %v5977_v26  ;;  %v5962_v47 = vld [vmem:[%s10537_s8 + $0x28] sm:$0xff]  ;;  %v6000_v26 = vld [vmem:[%s10537_s8 + $0x158] sm:$0xff] }
 0x8f1   :  { %v6724_v63 = vpop.f32.mrb[138].mxu0 }
 0x8f2   :  { %6613 = vmatmul.mubr.msk.f32.vlgmr.msra.gmra.mrb[140].mxu1 %vm3701_vm4, %v5641_v17  ;;  %6617 = vmatmul.mubr.msk.f32.vlgmr.msra.gmra.mrb[144].mxu0 %vm3701_vm4, %v5641_v17  ;;  %v6725_v30 = vpop.f32.mrb[139].mxu0 }
 0x8f3   :  { %5749 = vmatprep.mubr.f32.mxu1 %v7645_v56  ;;  %5838 = vmatprep.mubr.f32.mxu0 %v7645_v56  ;;  %v6726_v51 = vadd.f32 %v6725_v30, %v6724_v63  ;;  %v6009_v63 = vld [vmem:[%s10537_s8 + $0x1a0] sm:$0xff]  ;;  %v6010_v30 = vld [vmem:[%s10537_s8 + $0x1a8] sm:$0xff] }
 0x8f4   :  { %7126 = vmatpush3.bf16.msra.mxu1 %v7125_v34  ;;  %7158 = vmatpush3.bf16.msra.mxu0 %v7157_v12  ;;  %v5982_v34 = vld [vmem:[%s10537_s8 + $0xc8] sm:$0xff] }
 0x8f5   :  { %v5646_v58 = vadd.f32 %v6921_v54, %v6726_v51  ;;  %v6727_v39 = vpop.f32.mrb[140].mxu0  ;;  %7128 = vmatprep.subr.bf16.mxu1 %v7127_v59  ;;  %7160 = vmatprep.subr.bf16.mxu0 %v7159_v28  ;;  %v5961_v54 = vld [vmem:[%s10537_s8 + $0x20] sm:$0xff]  ;;  %v7163_v51 = vpack.c.bf16 %v6010_v30, %v6009_v63  ;;  %v7139_v18 = vpack.c.bf16 %v5982_v34, %v5981_v7  ;;  %v6014_v12 = vld [vmem:[%s10537_s8 + $0x1c8] sm:$0xff]  ;;  %v5968_v28 = vld [vmem:[%s10537_s8 + $0x58] sm:$0xff] }
 0x8f6   :  { %v6728_v32 = vpop.f32.mrb[141].mxu0  ;;  %v7133_v17 = vpack.c.bf16 %v5962_v47, %v5961_v54  ;;  %v7171_v61 = vpack.c.bf16 %v6014_v12, %v6013_v16  ;;  %v5998_v59 = vld [vmem:[%s10537_s8 + $0x148] sm:$0xff]  ;;  %v7145_v25 = vpack.c.bf16 %v5968_v28, %v5967_v24  ;;  %v5985_v54 = vld [vmem:[%s10537_s8 + $0xe0] sm:$0xff]  ;;  %v6003_v34 = vld [vmem:[%s10537_s8 + $0x170] sm:$0xff] }
 0x8f7   :  { %v6924_v40 = vpop.f32.mrb[138].mxu1  ;;  %v6729_v21 = vadd.f32 %v6728_v32, %v6727_v39  ;;  %6614 = vmatmul.mubr.msk.f32.gmra.mrb[142].mxu1 %vm3701_vm4, %v5646_v58  ;;  %6618 = vmatmul.mubr.msk.f32.gmra.mrb[146].mxu0 %vm3701_vm4, %v5646_v58  ;;  %v5993_v58 = vld [vmem:[%s10537_s8 + $0x120] sm:$0xff]  ;;  %v5994_v39 = vld [vmem:[%s10537_s8 + $0x128] sm:$0xff]  ;;  %v7185_v43 = vpack.c.bf16 %v6004_v23, %v6003_v34 }
 0x8f8   :  { %v5650_v31 = vpop.f32.mrb[139].mxu1  ;;  %5755 = vmatprep.mubr.f32.mxu1 %v7645_v56  ;;  %5844 = vmatprep.mubr.f32.mxu0 %v7645_v56  ;;  %v7165_v32 = vpack.c.bf16 %v5994_v39, %v5993_v58  ;;  %v5986_v47 = vld [vmem:[%s10537_s8 + $0xe8] sm:$0xff] }
 0x8f9   :  { %v5651_v27 = vadd.f32 %v6729_v21, %v5650_v31  ;;  %7130 = vmatpush3.bf16.msra.mxu1 %v7129_v10  ;;  %7162 = vmatpush3.bf16.msra.mxu0 %v7161_v14  ;;  %v5980_v21 = vld [vmem:[%s10537_s8 + $0xb8] sm:$0xff]  ;;  %v5963_v31 = vld [vmem:[%s10537_s8 + $0x30] sm:$0xff]  ;;  %v7173_v10 = vpack.c.bf16 %v5998_v59, %v5997_v8  ;;  %v7147_v63 = vpack.c.bf16 %v5986_v47, %v5985_v54  ;;  %v5970_v30 = vld [vmem:[%s10537_s8 + $0x68] sm:$0xff] }
 0x8fa   :  { %v6730_v48 = vpop.f32.mrb[142].mxu0  ;;  %7132 = vmatprep.subr.bf16.mxu1 %v7131_v33  ;;  %7164 = vmatprep.subr.bf16.mxu0 %v7163_v51  ;;  %v5999_v14 = vld [vmem:[%s10537_s8 + $0x150] sm:$0xff]  ;;  %v7175_v33 = vpack.c.bf16 %v6016_v38, %v6015_v9  ;;  %v6017_v51 = vld [vmem:[%s10537_s8 + $0x1e0] sm:$0xff]  ;;  %v6018_v58 = vld [vmem:[%s10537_s8 + $0x1e8] sm:$0xff] }
 0x8fb   :  { %v6731_v49 = vpop.f32.mrb[143].mxu0  ;;  %6615 = vmatmul.mubr.msk.f32.gmra.mrb[144].mxu1 %vm3701_vm4, %v5651_v27  ;;  %6619 = vmatmul.mubr.msk.f32.gmra.mrb[148].mxu0 %vm3701_vm4, %v5651_v27  ;;  %v5964_v27 = vld [vmem:[%s10537_s8 + $0x38] sm:$0xff]  ;;  %v7177_v39 = vpack.c.bf16 %v6000_v26, %v5999_v14 }
 0x8fc   :  { %v6732_v20 = vadd.f32 %v6731_v49, %v6730_v48  ;;  %5761 = vmatprep.mubr.f32.mxu1 %v7645_v56  ;;  %5850 = vmatprep.mubr.f32.mxu0 %v7645_v56  ;;  %v6011_v49 = vld [vmem:[%s10537_s8 + $0x1b0] sm:$0xff] }
 0x8fd   :  { %7134 = vmatpush3.bf16.msra.mxu1 %v7133_v17  ;;  %7166 = vmatpush3.bf16.msra.mxu0 %v7165_v32  ;;  %v5969_v17 = vld [vmem:[%s10537_s8 + $0x60] sm:$0xff]  ;;  %v5987_v32 = vld [vmem:[%s10537_s8 + $0xf0] sm:$0xff] }
 0x8fe   :  { %v5656_v45 = vadd.f32 %v6924_v40, %v6732_v20  ;;  %v5979_v40 = vld [vmem:[%s10537_s8 + $0xb0] sm:$0xff]  ;;  %v6012_v20 = vld [vmem:[%s10537_s8 + $0x1b8] sm:$0xff] }
 0x8ff   :  { %v7135_v48 = vpack.c.bf16 %v5980_v21, %v5979_v40  ;;  %v7167_v57 = vpack.c.bf16 %v6012_v20, %v6011_v49  ;;  %v7179_v40 = vpack.c.bf16 %v6018_v58, %v6017_v51  ;;  %v6001_v21 = vld [vmem:[%s10537_s8 + $0x160] sm:$0xff]  ;;  %v6019_v49 = vld [vmem:[%s10537_s8 + $0x1f0] sm:$0xff]  ;;  %v6020_v20 = vld [vmem:[%s10537_s8 + $0x1f8] sm:$0xff] }
 0x900   :  { %6616 = vmatmul.mubr.msk.f32.gmra.mrb[146].mxu1 %vm3701_vm4, %v5656_v45  ;;  %6620 = vmatmul.mubr.msk.f32.gmra.mrb[150].mxu0 %vm3701_vm4, %v5656_v45  ;;  %v7137_v45 = vpack.c.bf16 %v5964_v27, %v5963_v31  ;;  %v6002_v31 = vld [vmem:[%s10537_s8 + $0x168] sm:$0xff]  ;;  %v7149_v27 = vpack.c.bf16 %v5970_v30, %v5969_v17  ;;  %v7183_v7 = vpack.c.bf16 %v6020_v20, %v6019_v49 }
 0x901   :  { %7136 = vmatprep.subr.bf16.mxu1 %v7135_v48  ;;  %7168 = vmatprep.subr.bf16.mxu0 %v7167_v57  ;;  %v5988_v48 = vld [vmem:[%s10537_s8 + $0xf8] sm:$0xff]  ;;  %v5971_v57 = vld [vmem:[%s10537_s8 + $0x70] sm:$0xff]  ;;  %v7181_v46 = vpack.c.bf16 %v6002_v31, %v6001_v21  ;;  %s7650_s8 = smov 114  }
 0x902   :  { %7138 = vmatpush3.bf16.msra.mxu1 %v7137_v45  ;;  %7170 = vmatpush3.bf16.msra.mxu0 %v7169_v41  ;;  %v7151_v45 = vpack.c.bf16 %v5988_v48, %v5987_v32  ;;  %v7153_v41 = vpack.c.bf16 %v5972_v29, %v5971_v57 }
 0x903   :  { %7140 = vmatprep.subr.bf16.mxu1 %v7139_v18  ;;  %7172 = vmatprep.subr.bf16.mxu0 %v7171_v61  ;;  %v7647_v18 = vmov 0.0|0.0  }
 0x906   :  { %7142 = vmatpush3.bf16.msra.mxu1 %v7141_v15  ;;  %7174 = vmatpush3.bf16.msra.mxu0 %v7173_v10 }
 0x907   :  { %7144 = vmatprep.subr.bf16.mxu1 %v7143_v37  ;;  %7176 = vmatprep.subr.bf16.mxu0 %v7175_v33 }
 0x90a   :  { %7146 = vmatpush3.bf16.msra.mxu1 %v7145_v25  ;;  %7178 = vmatpush3.bf16.msra.mxu0 %v7177_v39 }
 0x90b   :  { %7148 = vmatprep.subr.bf16.mxu1 %v7147_v63  ;;  %7180 = vmatprep.subr.bf16.mxu0 %v7179_v40 }
 0x90e   :  { %7150 = vmatpush3.bf16.msra.mxu1 %v7149_v27  ;;  %7182 = vmatpush3.bf16.msra.mxu0 %v7181_v46 }
 0x90f   :  { %7152 = vmatprep.subr.bf16.mxu1 %v7151_v45  ;;  %7184 = vmatprep.subr.bf16.mxu0 %v7183_v7 }
 0x912   :  { %7154 = vmatpush3.bf16.msra.mxu1 %v7153_v41  ;;  %7186 = vmatpush3.bf16.msra.mxu0 %v7185_v43 }
 0x913   :  { %7187 = vmatprep.subr.bf16.mxu1 %v7647_v18  ;;  %7211 = vmatprep.subr.bf16.mxu0 %v7647_v18 }
 0x9c5   :  { %v5745_v15 = vpop.f32.mrb[140].mxu1  ;;  %v5834_v16 = vpop.f32.mrb[144].mxu0 }
 0x9c6   :  { %v5747_v12 = vpop.f32.mrb[141].mxu1  ;;  %v5836_v8 = vpop.f32.mrb[145].mxu0  ;;  %v5873_v52 = vmul.f32 %v5745_v15, %v10088_v5  ;;  %v5875_v2 = vmul.f32 %v5834_v16, %v10093_v0 }
 0x9c7   :  { %v5874_v9 = vmul.f32 %v5747_v12, %v10098_v22  ;;  %v5876_v38 = vmul.f32 %v5836_v8, %v10113_v60 }
 0x9ca   :  { %v5751_v61 = vpop.f32.mrb[142].mxu1  ;;  %v5840_v59 = vpop.f32.mrb[146].mxu0 }
 0x9cb   :  { %v5877_v10 = vmul.f32 %v5751_v61, %v10103_v1  ;;  %v5879_v37 = vmul.f32 %v5840_v59, %v10108_v11  ;;  %v5753_v24 = vpop.f32.mrb[143].mxu1  ;;  %v5842_v28 = vpop.f32.mrb[147].mxu0 }
 0x9cc   :  { %v5878_v14 = vmul.f32 %v5753_v24, %v10118_v6  ;;  %v5880_v26 = vmul.f32 %v5842_v28, %v10123_v42 }
 0x9cd   :  { %v5889_v25 = vadd.f32 %v5877_v10, %v5873_v52  ;;  %v5907_v33 = vadd.f32 %v5879_v37, %v5875_v2 }
 0x9ce   :  { %v5898_v54 = vadd.f32 %v5878_v14, %v5874_v9  ;;  %v5916_v5 = vadd.f32 %v5880_v26, %v5876_v38  ;;  %v5757_v47 = vpop.f32.mrb[144].mxu1  ;;  %v5846_v0 = vpop.f32.mrb[148].mxu0  ;;  %v7648_v14 = vmov 1983009808  }
 0x9cf   :  { %v5881_v1 = vmul.f32 %v5757_v47, %v10136_v3  ;;  %v5883_v11 = vmul.f32 %v5846_v0, %v10141_v35  ;;  %v5759_v17 = vpop.f32.mrb[145].mxu1  ;;  %v5848_v63 = vpop.f32.mrb[149].mxu0  ;;  %v6031_v26 = vunpack.c.l.s4 %v7648_v14  ;;  %v6191_v47 = vld [vmem:[%s10538_s10] sm:$0xff]  ;;  %v6192_v0 = vld [vmem:[%s10538_s10 + $0x8] sm:$0xff] }
 0x9d0   :  { %v5882_v22 = vmul.f32 %v5759_v17, %v10146_v53  ;;  %v5884_v60 = vmul.f32 %v5848_v63, %v10151_v4 }
 0x9d1   :  { %v5890_v30 = vadd.f32 %v5889_v25, %v5881_v1  ;;  %v5908_v6 = vadd.f32 %v5907_v33, %v5883_v11  ;;  %v6032_v33 = vunpack.c.0.s8 %v6031_v26 }
 0x9d2   :  { %v5899_v51 = vadd.f32 %v5898_v54, %v5882_v22  ;;  %v5917_v42 = vadd.f32 %v5916_v5, %v5884_v60 }
 0x9d3   :  { %v5763_v58 = vpop.f32.mrb[146].mxu1  ;;  %v5852_v39 = vpop.f32.mrb[150].mxu0  ;;  %v6035_v54 = vsub.s32 %v6032_v33, %v10181_v50  ;;  %v6194_v50 = vld [vmem:[%s10538_s10 + $0x18] sm:$0xff] }
 0x9d4   :  { %v5885_v32 = vmul.f32 %v5763_v58, %v10160_v13  ;;  %v5887_v40 = vmul.f32 %v5852_v39, %v10165_v55  ;;  %v5765_v21 = vpop.f32.mrb[147].mxu1  ;;  %v5854_v3 = vpop.f32.mrb[151].mxu0  ;;  %v7191_v60 = vpack.c.bf16 %v6194_v50, %v6193_v19  ;;  %v6198_v58 = vld [vmem:[%s10538_s10 + $0x38] sm:$0xff] }
 0x9d5   :  { %v5886_v35 = vmul.f32 %v5765_v21, %v10170_v36  ;;  %v5888_v31 = vmul.f32 %v5854_v3, %v10175_v44  ;;  %v6201_v3 = vld [vmem:[%s10538_s10 + $0x50] sm:$0xff] }
 0x9d6   :  { %v5891_v48 = vadd.f32 %v5890_v30, %v5885_v32  ;;  %v5909_v53 = vadd.f32 %v5908_v6, %v5887_v40  ;;  %v6195_v30 = vld [vmem:[%s10538_s10 + $0x20] sm:$0xff]  ;;  %v6196_v6 = vld [vmem:[%s10538_s10 + $0x28] sm:$0xff] }
 0x9d7   :  { %v5900_v27 = vadd.f32 %v5899_v51, %v5886_v35  ;;  %v5918_v4 = vadd.f32 %v5917_v42, %v5888_v31  ;;  %v7194_v51 = vpack.c.bf16 %v6196_v6, %v6195_v30  ;;  %v6197_v42 = vld [vmem:[%s10538_s10 + $0x30] sm:$0xff]  ;;  %v6199_v32 = vld [vmem:[%s10538_s10 + $0x40] sm:$0xff]  ;;  %v6200_v40 = vld [vmem:[%s10538_s10 + $0x48] sm:$0xff] }
 0x9d8   :  { %v5892_v49 = vrot.slane %v5891_v48, 4  ;;  %v5910_v20 = vrot.slane %v5909_v53, 4  ;;  %v7197_v39 = vpack.c.bf16 %v6198_v58, %v6197_v42  ;;  %v7200_v21 = vpack.c.bf16 %v6200_v40, %v6199_v32  ;;  %v6202_v35 = vld [vmem:[%s10538_s10 + $0x58] sm:$0xff] }
 0x9d9   :  { %v5901_v45 = vrot.slane %v5900_v27, 4  ;;  %v5919_v57 = vrot.slane %v5918_v4, 4  ;;  %v7203_v31 = vpack.c.bf16 %v6202_v35, %v6201_v3 }
 0x9da   :  { %v5893_v29 = vadd.f32 %v5892_v49, %v5891_v48  ;;  %v5911_v46 = vadd.f32 %v5910_v20, %v5909_v53  ;;  %v6203_v48 = vld [vmem:[%s10538_s10 + $0x60] sm:$0xff]  ;;  %v6204_v53 = vld [vmem:[%s10538_s10 + $0x68] sm:$0xff]  ;;  %v6206_v49 = vld [vmem:[%s10538_s10 + $0x78] sm:$0xff] }
 0x9db   :  { %v5902_v7 = vadd.f32 %v5901_v45, %v5900_v27  ;;  %v5920_v13 = vadd.f32 %v5919_v57, %v5918_v4  ;;  %v7206_v27 = vpack.c.bf16 %v6204_v53, %v6203_v48  ;;  %v6205_v4 = vld [vmem:[%s10538_s10 + $0x70] sm:$0xff]  ;;  %v6621_v57 = vld [vmem:[%s10539_s9] ss:$0 sm:$0xff] }
 0x9dc   :  { %v5894_v41 = vrot.slane %v5893_v29, 2  ;;  %v5912_v55 = vrot.slane %v5911_v46, 2  ;;  %v7209_v20 = vpack.c.bf16 %v6206_v49, %v6205_v4 }
 0x9dd   :  { %v5903_v34 = vrot.slane %v5902_v7, 2  ;;  %v5921_v23 = vrot.slane %v5920_v13, 2 }
 0x9de   :  { %v5895_v43 = vadd.f32 %v5894_v41, %v5893_v29  ;;  %v5913_v36 = vadd.f32 %v5912_v55, %v5911_v46 }
 0x9df   :  { %v5904_v15 = vadd.f32 %v5903_v34, %v5902_v7  ;;  %v5922_v44 = vadd.f32 %v5921_v23, %v5920_v13 }
 0x9e0   :  { %v5896_v16 = vrot.slane %v5895_v43, 1  ;;  %v5914_v12 = vrot.slane %v5913_v36, 1 }
 0x9e1   :  { %v5905_v8 = vrot.slane %v5904_v15, 1  ;;  %v5923_v61 = vrot.slane %v5922_v44, 1 }
 0x9e2   :  { %v5897_v59 = vadd.f32 %v5896_v16, %v5895_v43  ;;  %v5915_v52 = vadd.f32 %v5914_v12, %v5913_v36  ;;  %v6285_v43 = vld [vmem:[%s10540_s12] sm:$0xff]  ;;  %v6287_v36 = vld [vmem:[%s10540_s12 + $0x10] sm:$0xff] }
 0x9e3   :  { %v5906_v2 = vadd.f32 %v5905_v8, %v5904_v15  ;;  %v5924_v10 = vadd.f32 %v5923_v61, %v5922_v44  ;;  %v6288_v44 = vld [vmem:[%s10540_s12 + $0x18] sm:$0xff]  ;;  %v6289_v12 = vld [vmem:[%s10540_s12 + $0x20] sm:$0xff]  ;;  %v6290_v8 = vld [vmem:[%s10540_s12 + $0x28] sm:$0xff] }
 0x9e4   :  { %v7215_v16 = vpack.c.bf16 %v6288_v44, %v6287_v36  ;;  %v7218_v61 = vpack.c.bf16 %v6290_v8, %v6289_v12 }
 0x9e5   :  { %v5929_v37 = vcombine.low %v5897_v59, %v5906_v2  ;;  %v5930_v24 = vcombine.low %v5915_v52, %v5924_v10  ;;  %v6291_v59 = vld [vmem:[%s10540_s12 + $0x30] sm:$0xff]  ;;  %v6292_v52 = vld [vmem:[%s10540_s12 + $0x38] sm:$0xff]  ;;  %v6622_v10 = vld [vmem:[%s10541_s11] ss:$0 sm:$0xff]  ;;  %s7651_s11 = smov 118  }
 0x9e6   :  { %v7221_v2 = vpack.c.bf16 %v6292_v52, %v6291_v59 }
 0x9e7   :  { %v5937_v28 = vrot.slane %v5929_v37, %v10184_v62  ;;  %v5944_v9 = vrot.slane %v5930_v24, %v10184_v62 }
 0x9e9   :  { %v5945_v38 = vcombine.low %v5937_v28, %v5944_v9 }
 0x9eb   :  { %v5952_v25 = vrot.slane %v5945_v38, %v10184_v62  ;;  %v7188_v62 = vpack.c.bf16 %v6192_v0, %v6191_v47 }
 0x9ed   :  { %5955 = vst.msk [vmem:[#allocation4 + $0x1] ss:$2 sm:$0xf] %vm10188_vm0, %v5952_v25 }
 0x9f4   :  { %v5956_v5 = vld [vmem:[#allocation4] sm:$0xff] }
 0x9f5   :  { %v6036_v1 = vrot.slane %v5956_v5, %v6035_v54  ;;  %v6029_v11 = vcombine.high %v5956_v5, %v5956_v5 }
 0x9f7   :  { %v6044_v17 = vcombine.high %v6036_v1, %v6036_v1  ;;  %v6043_v63 = vrot.slane %v6029_v11, %v6035_v54 }
 0x9f9   :  { %6114 = vmatprep.mubr.f32.mxu1 %v6044_v17  ;;  %v6045_v22 = vcombine.high %v6043_v63, %v6043_v63 }
 0x9fa   :  { %6115 = vmatmul.mubr.f32.vlgmr.msra.gmra.mrb[148].mxu1 %v6036_v1 }
 0x9fb   :  { %6184 = vmatprep.mubr.f32.mxu0 %v6045_v22  ;;  %7189 = vmatpush3.bf16.msra.mxu1 %v7188_v62 }
 0x9fc   :  { %6185 = vmatmul.mubr.f32.vlgmr.msra.gmra.mrb[152].mxu0 %v6043_v63  ;;  %7190 = vmatprep.subr.bf16.mxu1 %v7647_v18 }
 0x9fd   :  { %6957 = vmatprep.mubr.msk.f32.mxu1 %vm7649_vm2, %v7645_v56  ;;  %6976 = vmatprep.mubr.msk.f32.mxu0 %vm7649_vm2, %v7645_v56  ;;  %v6286_v56 = vld [vmem:[%s10540_s12 + $0x8] sm:$0xff] }
 0x9fe   :  { %v7212_v15 = vpack.c.bf16 %v6286_v56, %v6285_v43 }
 0x9ff   :  { %7192 = vmatpush3.bf16.msra.mxu1 %v7191_v60 }
 0xa00   :  { %7193 = vmatprep.subr.bf16.mxu1 %v7647_v18  ;;  %7213 = vmatpush3.bf16.msra.mxu0 %v7212_v15 }
 0xa01   :  { %7214 = vmatprep.subr.bf16.mxu0 %v7647_v18 }
 0xa03   :  { %7195 = vmatpush3.bf16.msra.mxu1 %v7194_v51 }
 0xa04   :  { %7196 = vmatprep.subr.bf16.mxu1 %v7647_v18  ;;  %7216 = vmatpush3.bf16.msra.mxu0 %v7215_v16 }
 0xa05   :  { %7217 = vmatprep.subr.bf16.mxu0 %v7647_v18 }
 0xa07   :  { %7198 = vmatpush3.bf16.msra.mxu1 %v7197_v39 }
 0xa08   :  { %7199 = vmatprep.subr.bf16.mxu1 %v7647_v18  ;;  %7219 = vmatpush3.bf16.msra.mxu0 %v7218_v61 }
 0xa09   :  { %7220 = vmatprep.subr.bf16.mxu0 %v7647_v18 }
 0xa0b   :  { %7201 = vmatpush3.bf16.msra.mxu1 %v7200_v21 }
 0xa0c   :  { %7202 = vmatprep.subr.bf16.mxu1 %v7647_v18  ;;  %7222 = vmatpush3.bf16.msra.mxu0 %v7221_v2 }
 0xa0f   :  { %7204 = vmatpush3.bf16.msra.mxu1 %v7203_v31 }
 0xa10   :  { %7205 = vmatprep.subr.bf16.mxu1 %v7647_v18 }
 0xa13   :  { %7207 = vmatpush3.bf16.msra.mxu1 %v7206_v27 }
 0xa14   :  { %7208 = vmatprep.subr.bf16.mxu1 %v7647_v18  ;;  %v6623_v18 = vld [vmem:[%s10542_s13] ss:$0 sm:$0xff]  ;;  %s7652_s13 = smov 123  }
 0xa17   :  { %7210 = vmatpush3.bf16.msra.mxu1 %v7209_v20 }
 0xacd   :  { %v6785_v45 = vpop.f32.mrb[148].mxu1 }
 0xace   :  { %v6786_v29 = vpop.f32.mrb[149].mxu1 }
 0xacf   :  { %v6787_v46 = vadd.f32 %v6786_v29, %v6785_v45  ;;  %v6820_v7 = vpop.f32.mrb[152].mxu0 }
 0xad0   :  { %v6821_v13 = vpop.f32.mrb[153].mxu0 }
 0xad1   :  { %v6117_v41 = vadd.f32 %v6787_v46, %v6621_v57  ;;  %v6822_v55 = vadd.f32 %v6821_v13, %v6820_v7 }
 0xad3   :  { %v6187_v34 = vadd.f32 %v6822_v55, %v6117_v41 }
 0xad5   :  { %v6190_v23 = vmax.f32 %v6187_v34, 0.0 }
 0xad7   :  { %6958 = vmatmul.mubr.f32.vlgmr.msra.gmra.mrb[150].mxu1 %v6190_v23 }
 0xbaa   :  { %v6280_v37 = vpop.f32.mrb[150].mxu1 }
 0xbab   :  { %v6281_v24 = vadd.f32 %v6622_v10, %v6280_v37  ;;  %v6959_v28 = vpop.f32.mrb[151].mxu1 }
 0xbad   :  { %v6284_v9 = vmax.f32 %v6281_v24, 0.0 }
 0xbaf   :  { %6301 = vrot.lane.b32.xlu0 %v6284_v9, %s7650_s8  ;;  %v6391_v38 = vsel %vm6390_vm3, %v6284_v9, -inf  ;;  %v6378_v0 = vsel %vm6377_vm9, %v6284_v9, -inf }
 0xbce   :  { %6392 = vmax.xlane.f32.xlu0 %v6391_v38 }
 0xc21   :  { %v6302_v14 = vpop.permute.xlu0 %6301 }
 0xc22   :  { %6977 = vmatmul.mubr.msk.f32.vlgmr.msra.gmra.mrb[154].mxu0 %vm6303_vm6, %v6302_v14 }
 0xc5b   :  { %v6393_v1 = vpop.xlane.xlu0 %6392 }
 0xc5c   :  { %v10520_v11 = vsub.f32 %v6284_v9, %v6393_v1 }
 0xc5e   :  { %v6395_v17 = vmul.f32 1.442695, %v10520_v11 }
 0xc60   :  { %7605 = vpow2.f32 %v6395_v17 }
 0xc6a   :  { %v7606_v63 = vpop.eup %7605 }
 0xcf5   :  { %v6372_v26 = vpop.f32.mrb[154].mxu0 }
 0xcf6   :  { %v6373_v25 = vadd.f32 %v6623_v18, %v6372_v26  ;;  %v6978_v33 = vpop.f32.mrb[155].mxu0 }
 0xcf8   :  { %v6376_v54 = vmax.f32 %v6373_v25, 0.0 }
 0xcfa   :  { %v6422_v5 = vsel %vm6421_vm7, %v6376_v54, -inf  ;;  %v6409_v47 = vsel %vm6408_vm8, %v6376_v54, -inf }
 0xcfb   :  { %6423 = vmax.xlane.f32.xlu1 %v6422_v5  ;;  %6410 = vmax.xlane.f32.xlu0 %v6409_v47 }
 0xcff   :  { %6379 = vmax.xlane.f32.xlu0 %v6378_v0 }
 0xd15   :  { %6398 = vrot.lane.b32.xlu0 %v7606_v63, %s7651_s11 }
 0xd88   :  { %v6424_v62 = vpop.xlane.xlu1 %6423  ;;  %v6411_v60 = vpop.xlane.xlu0 %6410 }
 0xd89   :  { %v6425_v19 = vsub.f32 %v6376_v54, %v6424_v62  ;;  %v6412_v30 = vsub.f32 %v6376_v54, %v6411_v60 }
 0xd8b   :  { %v6426_v50 = vmul.f32 1.442695, %v6425_v19  ;;  %v6413_v51 = vmul.f32 1.442695, %v6412_v30 }
 0xd8c   :  { %v6380_v6 = vpop.xlane.xlu0 %6379 }
 0xd8d   :  { %7607 = vpow2.f32 %v6426_v50  ;;  %v6381_v42 = vsub.f32 %v6284_v9, %v6380_v6 }
 0xd8e   :  { %7609 = vpow2.f32 %v6413_v51 }
 0xd8f   :  { %v6382_v58 = vmul.f32 1.442695, %v6381_v42 }
 0xd90   :  { %v6399_v3 = vpop.permute.xlu0 %6398 }
 0xd91   :  { %7611 = vpow2.f32 %v6382_v58  ;;  %v6402_v35 = vsel %vm6401_vm10, %v6399_v3, 0.0 }
 0xd97   :  { %v7608_v22 = vpop.eup %7607 }
 0xd98   :  { %6429 = vrot.lane.b32.xlu1 %v7608_v22, %s7652_s13  ;;  %v7610_v39 = vpop.eup %7609 }
 0xd99   :  { %v6415_v32 = vsel %vm6408_vm8, %v7610_v39, 0.0 }
 0xd9b   :  { %v7612_v40 = vpop.eup %7611 }
 0xd9c   :  { %v6384_v21 = vsel %vm6377_vm9, %v7612_v40, 0.0 }
 0xdbc   :  { %6416 = vadd.xlane.f32.xlu1 %v6415_v32 }
 0xdc0   :  { %6385 = vadd.xlane.f32.xlu1 %v6384_v21 }
 0xdc4   :  { %6403 = vadd.xlane.f32.xlu1 %v6402_v35 }
 0xe0a   :  { %v6430_v31 = vpop.permute.xlu1 %6429 }
 0xe0b   :  { %v6433_v48 = vsel %vm6432_vm11, %v6430_v31, 0.0 }
 0xe0c   :  { %6434 = vadd.xlane.f32.xlu0 %v6433_v48 }
 0xe49   :  { %v6417_v53 = vpop.xlane.xlu1 %6416 }
 0xe4a   :  { %7613 = vlog2.f32 %v6417_v53 }
 0xe4d   :  { %v6386_v46 = vpop.xlane.xlu1 %6385 }
 0xe51   :  { %v6404_v7 = vpop.xlane.xlu1 %6403 }
 0xe54   :  { %v7614_v27 = vpop.eup %7613 }
 0xe55   :  { %v6419_v4 = vmul.f32 0.6931472, %v7614_v27 }
 0xe57   :  { %v6420_v49 = vsub.f32 %v6412_v30, %v6419_v4 }
 0xe59   :  { %6440 = vrot.lane.b32.xlu0 %v6420_v49, %s7653_s21 }
 0xe99   :  { %v6435_v20 = vpop.xlane.xlu0 %6434 }
 0xe9a   :  { %7615 = vlog2.f32 %v6435_v20 }
 0xe9b   :  { %7617 = vlog2.f32 %v6404_v7 }
 0xe9c   :  { %7619 = vlog2.f32 %v6386_v46 }
 0xea4   :  { %v7616_v45 = vpop.eup %7615 }
 0xea5   :  { %v6437_v57 = vmul.f32 0.6931472, %v7616_v45  ;;  %v7618_v13 = vpop.eup %7617 }
 0xea6   :  { %v7620_v41 = vpop.eup %7619  ;;  %v6406_v55 = vmul.f32 0.6931472, %v7618_v13 }
 0xea7   :  { %v6438_v29 = vsub.f32 %v6425_v19, %v6437_v57  ;;  %v6388_v34 = vmul.f32 0.6931472, %v7620_v41 }
 0xea8   :  { %v6407_v23 = vsub.f32 %v10520_v11, %v6406_v55 }
 0xea9   :  { %6444 = vrot.lane.b32.xlu1 %v6438_v29, %s7653_s21  ;;  %v6389_v43 = vsub.f32 %v6381_v42, %v6388_v34 }
 0xeab   :  { %v6448_v36 = vsel %vm6447_vm12, %v6389_v43, %v6407_v23 }
 0xecb   :  { %v6441_v56 = vpop.permute.xlu0 %6440 }
 0xecc   :  { %v6450_v15 = vsel %vm6449_vm13, %v6448_v36, %v6441_v56 }
 0xf1b   :  { %v6445_v44 = vpop.permute.xlu1 %6444 }
 0xf1c   :  { %v6452_v16 = vsel %vm6451_vm14, %v6450_v15, %v6445_v44 }
 0xf1d   :  { %v6454_v12 = vsel %vm6453_vm15, %v6452_v16, 0.0 }
 0xf1e   :  { %6455 = vst [vmem:[%s10543_s14] sm:$0x3] %v6454_v12 }

</bundles_post_ra>
